<compile_context>
chip_gen: v6e
topology: v6e:2x2x1
jax: 0.10.0
libtpu: 0.0.40
codegen_flags: <defaults>
</compile_context>

<pallas_src>
import functools
import math

import jax
import jax.numpy as jnp
from jax.experimental import pallas as pl
from jax.experimental.pallas import tpu as pltpu  # noqa: F401  (kept for TPU-specific tuning hooks)


# ------------------------------ configuration ------------------------------
class Config:
    vocab_size = 256
    hidden_size = 64
    num_heads = 4
    head_dim = 16                 # hidden_size // num_heads
    num_layers = 2
    intermediate_size = 128
    num_classes = 5
    lora_rank = 4
    lora_alpha = 8
    rms_eps = 1e-6
    rope_theta = 10000.0


HEAD_PAD = 128   # each head's output dims occupy its own 128-lane block
LANE_PAD = 128   # lane-dense padded width for the lm_head output
POOL_PAD = 8     # pooled rows padded to a full sublane group


# ------------------------------ fused Pallas kernel ------------------------------
def _fused_model_kernel(ids_ref, maskrow_ref, sbias_ref, cos_ref, sin_ref,
                        pool_ref, embed_ref, ln1_ref, ln2_ref,
                        wqkv_ref, wo_ref, wgu_ref, wd_ref,
                        fln_ref, lmw_ref, lmb_ref, out_ref,
                        *, num_layers, num_heads, head_pad, inter, eps, vocab):
    N = ids_ref.shape[0]
    P = num_heads * head_pad

    # ---- embedding lookup as a one-hot MXU matmul (no XLA gather, no HBM round-trip) ----
    ids = ids_ref[...]                                               # [N, 1] int32
    iota = jax.lax.broadcasted_iota(jnp.int32, (N, vocab), 1)
    onehot = (iota == ids).astype(jnp.bfloat16)                      # [N, vocab]
    h = jnp.dot(onehot, embed_ref[...], preferred_element_type=jnp.float32)   # [N, H] f32

    # ---- additive attention bias: static (causal + block-diag batch) + key padding ----
    maskrow = maskrow_ref[...]                                       # [1, N] (1.0 valid / 0.0 pad)
    bias = sbias_ref[...] + (maskrow - 1.0) * 1e9                    # [N, N] f32 (NOT scaled)

    cos = cos_ref[...]                                               # [N, P] f32
    sin = sin_ref[...]                                               # [N, P] f32

    def rms(x, w):
        var = jnp.mean(x * x, axis=-1, keepdims=True)
        return x * jax.lax.rsqrt(var + eps) * w

    for l in range(num_layers):
        # ---------------- self-attention block ----------------
        xn = rms(h, ln1_ref[l]).astype(jnp.bfloat16)                 # [N, H]
        # one fused projection: [Wq*s | (Wq*s)P | Wk | WkP | Wv], head-major 128-lane padded
        proj = jnp.dot(xn, wqkv_ref[l], preferred_element_type=jnp.float32)   # [N, 5P]
        q_c = proj[:, 0 * P:1 * P]
        q_p = proj[:, 1 * P:2 * P]
        k_c = proj[:, 2 * P:3 * P]
        k_p = proj[:, 3 * P:4 * P]
        v = proj[:, 4 * P:5 * P].astype(jnp.bfloat16)
        # RoPE is pure VPU: rotate_half was folded into the *_p weight columns
        q = (q_c * cos + q_p * sin).astype(jnp.bfloat16)             # already scaled by 1/sqrt(d)
        k = (k_c * cos + k_p * sin).astype(jnp.bfloat16)

        oh_list = []
        for hh in range(num_heads):
            cs = slice(hh * head_pad, (hh + 1) * head_pad)           # 128-lane aligned slices
            s = jax.lax.dot_general(q[:, cs], k[:, cs], (((1,), (1,)), ((), ())),
                                    preferred_element_type=jnp.float32) + bias   # [N, N]
            m = jnp.max(s, axis=-1, keepdims=True)
            p = jnp.exp(s - m)
            p = p * pl.reciprocal(jnp.sum(p, axis=-1, keepdims=True), approx=True)
            oh_list.append(jnp.dot(p.astype(jnp.bfloat16), v[:, cs],
                                   preferred_element_type=jnp.float32))          # [N, head_pad]
        o_heads = jnp.concatenate(oh_list, axis=1).astype(jnp.bfloat16)           # [N, P]
        # single o-projection matmul (padded rows of Wo are zero)
        h = h + jnp.dot(o_heads, wo_ref[l], preferred_element_type=jnp.float32)

        # ---------------- MLP block (SwiGLU, fused gate||up) ----------------
        xn2 = rms(h, ln2_ref[l]).astype(jnp.bfloat16)
        gu = jnp.dot(xn2, wgu_ref[l], preferred_element_type=jnp.float32)          # [N, 2I]
        g = gu[:, :inter]
        u = gu[:, inter:2 * inter]
        act = (g * jax.lax.logistic(g) * u).astype(jnp.bfloat16)
        h = h + jnp.dot(act, wd_ref[l], preferred_element_type=jnp.float32)

    # ---- final norm + classifier head only on the pooled rows (row b*S per sample) ----
    pooled = jnp.dot(pool_ref[...], h, preferred_element_type=jnp.float32)         # [8, H]
    hn = rms(pooled, fln_ref[...]).astype(jnp.bfloat16)
    logits = jnp.dot(hn, lmw_ref[...], preferred_element_type=jnp.float32) + lmb_ref[...]
    out_ref[...] = logits.astype(out_ref.dtype)                                    # [8, 128]


def _vmem_spec(shape):
    idx = (0,) * len(shape)
    return pl.BlockSpec(shape, lambda idx=idx: idx)


# --------------------------------- forward (thin JAX glue + one pallas_call) -------------------------------
def llama_classifier_forward(params, x, cfg):
    input_ids = x[0]          # context = x[0]
    attention_mask = x[2]     # mask    = x[2]
    B, S = input_ids.shape
    N = B * S
    fused = params["fused"]   # prepared for this (B, S)

    ids_col = input_ids.reshape(N, 1).astype(jnp.int32)
    mask_row = attention_mask.reshape(1, N).astype(jnp.float32)

    args = (ids_col, mask_row, fused["bias"], fused["cos"], fused["sin"],
            fused["pool"], fused["embed"], fused["ln1"], fused["ln2"],
            fused["wqkv"], fused["wo"], fused["wgu"], fused["wd"],
            fused["final_ln"], fused["lm_w"], fused["lm_b"])

    out = pl.pallas_call(
        functools.partial(_fused_model_kernel,
                          num_layers=cfg.num_layers, num_heads=cfg.num_heads,
                          head_pad=HEAD_PAD, inter=cfg.intermediate_size,
                          eps=cfg.rms_eps, vocab=cfg.vocab_size),
        out_shape=jax.ShapeDtypeStruct((POOL_PAD, LANE_PAD), jnp.float32),
        in_specs=[_vmem_spec(a.shape) for a in args],
        out_specs=_vmem_spec((POOL_PAD, LANE_PAD)),
    )(*args)

    # pooled_output logits = rows [:B], unpad the classes
    return out[:B, :cfg.num_classes]


# ----------------------------- parameter init & prepare -------------------------------
def init_params(cfg, key):
    def nrm(k, shape, scale=0.02):
        return (scale * jax.random.normal(k, shape)).astype(jnp.float32)

    keys = iter(jax.random.split(key, 256))
    H, I, r = cfg.hidden_size, cfg.intermediate_size, cfg.lora_rank
    params = {
        "embed": nrm(next(keys), (cfg.vocab_size, H)),
        "final_ln": jnp.ones((H,), jnp.float32),
        "lm_head_w": nrm(next(keys), (H, cfg.num_classes)),
        "lm_head_b": jnp.zeros((cfg.num_classes,), jnp.float32),
        "layers": [],
    }
    for _ in range(cfg.num_layers):
        layer = {
            "ln1": jnp.ones((H,), jnp.float32),
            "ln2": jnp.ones((H,), jnp.float32),
            "wq": nrm(next(keys), (H, H)),
            "wk": nrm(next(keys), (H, H)),
            "wv": nrm(next(keys), (H, H)),
            "wo": nrm(next(keys), (H, H)),
            # LoRA adapters on q_proj / v_proj (modify_model_for_peft).
            # Real PEFT inits lora_B to zero; use small nonzero values so the
            # merged-LoRA path is numerically exercised.
            "wq_a": nrm(next(keys), (H, r)),
            "wq_b": nrm(next(keys), (r, H)),
            "wv_a": nrm(next(keys), (H, r)),
            "wv_b": nrm(next(keys), (r, H)),
            "wg": nrm(next(keys), (H, I)),
            "wu": nrm(next(keys), (H, I)),
            "wd": nrm(next(keys), (I, H)),
        }
        params["layers"].append(layer)
    return params


def _pad_head_cols(w, num_heads, head_dim, head_pad):
    """Move each head's `head_dim` columns into its own `head_pad`-lane block."""
    out = jnp.zeros(w.shape[:-1] + (num_heads * head_pad,), w.dtype)
    for h in range(num_heads):
        out = out.at[..., h * head_pad:h * head_pad + head_dim].set(
            w[..., h * head_dim:(h + 1) * head_dim])
    return out


def _pad_head_rows(w, num_heads, head_dim, head_pad):
    """Move each head's `head_dim` rows into its own `head_pad`-row block."""
    out = jnp.zeros((num_heads * head_pad,) + w.shape[1:], w.dtype)
    for h in range(num_heads):
        out = out.at[h * head_pad:h * head_pad + head_dim].set(
            w[h * head_dim:(h + 1) * head_dim])
    return out


def prepare_params(raw, cfg, batch, seq):
    """One-time inference prep: merge LoRA, fold RoPE + 1/sqrt(d) into the fused
    qkv weight, fuse gate||up, head-pad layouts, precompute cos/sin, static bias,
    pooled-row selector and padded lm_head. Matmul weights are stored as bf16."""
    H, nH, d = cfg.hidden_size, cfg.num_heads, cfg.head_dim
    N = batch * seq
    scaling = cfg.lora_alpha / cfg.lora_rank
    scale = 1.0 / math.sqrt(d)

    # block-diagonal rotate_half matrix: rotate_half(x) == x @ rope_p (per head)
    half = d // 2
    pd = jnp.zeros((d, d), jnp.float32)
    pd = pd.at[jnp.arange(half) + half, jnp.arange(half)].set(-1.0)
    pd = pd.at[jnp.arange(half), jnp.arange(half) + half].set(1.0)
    rope_p = jnp.kron(jnp.eye(nH, dtype=jnp.float32), pd)            # [H, H]

    ln1, ln2, wqkv, wo, wgu, wd = [], [], [], [], [], []
    for layer in raw["layers"]:
        ln1.append(layer["ln1"].reshape(1, H))
        ln2.append(layer["ln2"].reshape(1, H))
        wq_s = (layer["wq"] + scaling * (layer["wq_a"] @ layer["wq_b"])) * scale  # LoRA + score scale
        wv_m = layer["wv"] + scaling * (layer["wv_a"] @ layer["wv_b"])            # LoRA
        wk = layer["wk"]
        blocks = [wq_s, wq_s @ rope_p, wk, wk @ rope_p, wv_m]        # q, rot(q), k, rot(k), v
        wqkv.append(jnp.concatenate(
            [_pad_head_cols(b, nH, d, HEAD_PAD) for b in blocks], axis=1).astype(jnp.bfloat16))
        wo.append(_pad_head_rows(layer["wo"], nH, d, HEAD_PAD).astype(jnp.bfloat16))
        wgu.append(jnp.concatenate([layer["wg"], layer["wu"]], axis=1).astype(jnp.bfloat16))
        wd.append(layer["wd"].astype(jnp.bfloat16))

    # RoPE tables, tiled over batch & heads, then head-padded to [N, nH*HEAD_PAD]
    inv_freq = 1.0 / (cfg.rope_theta ** (jnp.arange(0, d, 2, dtype=jnp.float32) / d))
    freqs = jnp.arange(seq, dtype=jnp.float32)[:, None] * inv_freq[None, :]       # [S, d/2]
    emb = jnp.concatenate([freqs, freqs], axis=-1)                                # [S, d]
    cos_p = _pad_head_cols(jnp.tile(jnp.cos(emb), (batch, nH)), nH, d, HEAD_PAD).astype(jnp.float32)
    sin_p = _pad_head_cols(jnp.tile(jnp.sin(emb), (batch, nH)), nH, d, HEAD_PAD).astype(jnp.float32)

    # static additive bias over the flattened (batch-concatenated) sequence axis
    pos = jnp.arange(N)
    same_batch = (pos[:, None] // seq) == (pos[None, :] // seq)
    causal = (pos[:, None] % seq) >= (pos[None, :] % seq)
    sbias = jnp.where(same_batch & causal, 0.0, -1e9).astype(jnp.float32)         # [N, N]

    # pooled-row selection (rows b*seq == token 0 of each sample), padded to 8 rows
    pool = jnp.zeros((POOL_PAD, N), jnp.float32)
    pool = pool.at[jnp.arange(batch), jnp.arange(batch) * seq].set(1.0)

    lm_w = jnp.zeros((H, LANE_PAD), jnp.float32).at[:, :cfg.num_classes].set(
        raw["lm_head_w"]).astype(jnp.bfloat16)
    lm_b = jnp.zeros((1, LANE_PAD), jnp.float32).at[0, :cfg.num_classes].set(raw["lm_head_b"])

    fused = {
        "bias": sbias, "cos": cos_p, "sin": sin_p, "pool": pool,
        "embed": raw["embed"].astype(jnp.bfloat16),
        "ln1": jnp.stack(ln1), "ln2": jnp.stack(ln2),
        "wqkv": jnp.stack(wqkv), "wo": jnp.stack(wo),
        "wgu": jnp.stack(wgu), "wd": jnp.stack(wd),
        "final_ln": raw["final_ln"].reshape(1, H),
        "lm_w": lm_w, "lm_b": lm_b,
    }
    return {"fused": fused}


# ----------------------------------- main ------------------------------------
if __name__ == "__main__":
    cfg = Config()
    key = jax.random.PRNGKey(0)
    pkey, ikey = jax.random.split(key)

    B, S = 2, 8
    params = prepare_params(init_params(cfg, pkey), cfg, B, S)

    input_ids = jax.random.randint(ikey, (B, S), 0, cfg.vocab_size, dtype=jnp.int32)
    attention_mask = jnp.array([[1] * S, [1] * (S - 2) + [0] * 2], dtype=jnp.int32)

    # mimic the PyTorch call convention: x = (context, <unused>, mask)
    fwd = jax.jit(lambda p, ids, mask: llama_classifier_forward(p, (ids, None, mask), cfg))
    logits = jax.block_until_ready(fwd(params, input_ids, attention_mask))

    assert logits.shape == (B, cfg.num_classes), logits.shape
    assert bool(jnp.all(jnp.isfinite(logits)))
    print("KERNEL_OK")
</pallas_src>

<mosaic_0001>
module attributes {stable_mosaic.version = 11 : i64} {
  func.func @_fused_model_kernel(%arg0: memref<16x1xi32, #tpu.memory_space<vmem>>, %arg1: memref<1x16xf32, #tpu.memory_space<vmem>>, %arg2: memref<16x16xf32, #tpu.memory_space<vmem>>, %arg3: memref<16x512xf32, #tpu.memory_space<vmem>>, %arg4: memref<16x512xf32, #tpu.memory_space<vmem>>, %arg5: memref<8x16xf32, #tpu.memory_space<vmem>>, %arg6: memref<256x64xbf16, #tpu.memory_space<vmem>>, %arg7: memref<2x1x64xf32, #tpu.memory_space<vmem>>, %arg8: memref<2x1x64xf32, #tpu.memory_space<vmem>>, %arg9: memref<2x64x2560xbf16, #tpu.memory_space<vmem>>, %arg10: memref<2x512x64xbf16, #tpu.memory_space<vmem>>, %arg11: memref<2x64x256xbf16, #tpu.memory_space<vmem>>, %arg12: memref<2x128x64xbf16, #tpu.memory_space<vmem>>, %arg13: memref<1x64xf32, #tpu.memory_space<vmem>>, %arg14: memref<64x128xbf16, #tpu.memory_space<vmem>>, %arg15: memref<1x128xf32, #tpu.memory_space<vmem>>, %arg16: memref<8x128xf32, #tpu.memory_space<vmem>>) attributes {dimension_semantics = [], scalar_prefetch = 0 : i64, scratch_operands = 0 : i64, tpu.core_type = #tpu.core_type<tc>} {
    %c0 = arith.constant 0 : index
    %c0_0 = arith.constant 0 : index
    %0 = vector.load %arg0[%c0, %c0_0] : memref<16x1xi32, #tpu.memory_space<vmem>>, vector<16x1xi32>
    %1 = tpu.iota {dimensions = array<i32: 1>} : vector<16x256xi32>
    %2 = vector.broadcast %0 : vector<16x1xi32> to vector<16x256xi32>
    %3 = arith.cmpi eq, %1, %2 : vector<16x256xi32>
    %4 = arith.extui %3 : vector<16x256xi1> to vector<16x256xi32>
    %5 = arith.sitofp %4 : vector<16x256xi32> to vector<16x256xf32>
    %6 = arith.truncf %5 : vector<16x256xf32> to vector<16x256xbf16>
    %c0_1 = arith.constant 0 : index
    %c0_2 = arith.constant 0 : index
    %7 = vector.load %arg6[%c0_1, %c0_2] : memref<256x64xbf16, #tpu.memory_space<vmem>>, vector<256x64xbf16>
    %cst = arith.constant dense<0.000000e+00> : vector<16x64xf32>
    %8 = tpu.matmul %6, %7, %cst {dimension_numbers = #tpu.dot_dimension_numbers<[1], [0], [0], [1], [0, 0, 1, 1], [], []>} : vector<16x256xbf16>, vector<256x64xbf16>, vector<16x64xf32> -> vector<16x64xf32>
    %c0_3 = arith.constant 0 : index
    %c0_4 = arith.constant 0 : index
    %9 = vector.load %arg1[%c0_3, %c0_4] : memref<1x16xf32, #tpu.memory_space<vmem>>, vector<1x16xf32>
    %c0_5 = arith.constant 0 : index
    %c0_6 = arith.constant 0 : index
    %10 = vector.load %arg2[%c0_5, %c0_6] : memref<16x16xf32, #tpu.memory_space<vmem>>, vector<16x16xf32>
    %cst_7 = arith.constant 1.000000e+00 : f32
    %11 = vector.broadcast %cst_7 : f32 to vector<1x16xf32>
    %12 = arith.subf %9, %11 : vector<1x16xf32>
    %cst_8 = arith.constant 1.000000e+09 : f32
    %13 = vector.broadcast %cst_8 : f32 to vector<1x16xf32>
    %14 = arith.mulf %12, %13 : vector<1x16xf32>
    %15 = vector.broadcast %14 : vector<1x16xf32> to vector<16x16xf32>
    %16 = arith.addf %10, %15 : vector<16x16xf32>
    %c0_9 = arith.constant 0 : index
    %c0_10 = arith.constant 0 : index
    %17 = vector.load %arg3[%c0_9, %c0_10] : memref<16x512xf32, #tpu.memory_space<vmem>>, vector<16x512xf32>
    %c0_11 = arith.constant 0 : index
    %c0_12 = arith.constant 0 : index
    %18 = vector.load %arg4[%c0_11, %c0_12] : memref<16x512xf32, #tpu.memory_space<vmem>>, vector<16x512xf32>
    %c0_13 = arith.constant 0 : index
    %c0_14 = arith.constant 0 : index
    %c0_15 = arith.constant 0 : index
    %19 = vector.load %arg7[%c0_13, %c0_14, %c0_15] : memref<2x1x64xf32, #tpu.memory_space<vmem>>, vector<1x1x64xf32>
    %20 = vector.shape_cast %19 : vector<1x1x64xf32> to vector<1x64xf32>
    %21 = arith.mulf %8, %8 : vector<16x64xf32>
    %cst_16 = arith.constant dense<0.000000e+00> : vector<16xf32>
    %22 = vector.multi_reduction <add>, %21, %cst_16 [1] : vector<16x64xf32> to vector<16xf32>
    %23 = vector.shape_cast %22 : vector<16xf32> to vector<16x1xf32>
    %cst_17 = arith.constant 6.400000e+01 : f32
    %24 = vector.broadcast %cst_17 : f32 to vector<16x1xf32>
    %25 = arith.divf %23, %24 : vector<16x1xf32>
    %cst_18 = arith.constant 9.99999997E-7 : f32
    %26 = vector.broadcast %cst_18 : f32 to vector<16x1xf32>
    %27 = arith.addf %25, %26 : vector<16x1xf32>
    %28 = math.rsqrt %27 : vector<16x1xf32>
    %29 = vector.broadcast %28 : vector<16x1xf32> to vector<16x64xf32>
    %30 = arith.mulf %8, %29 : vector<16x64xf32>
    %31 = vector.broadcast %20 : vector<1x64xf32> to vector<16x64xf32>
    %32 = arith.mulf %30, %31 : vector<16x64xf32>
    %33 = arith.truncf %32 : vector<16x64xf32> to vector<16x64xbf16>
    %c0_19 = arith.constant 0 : index
    %c0_20 = arith.constant 0 : index
    %c0_21 = arith.constant 0 : index
    %34 = vector.load %arg9[%c0_19, %c0_20, %c0_21] : memref<2x64x2560xbf16, #tpu.memory_space<vmem>>, vector<1x64x2560xbf16>
    %35 = vector.shape_cast %34 : vector<1x64x2560xbf16> to vector<64x2560xbf16>
    %cst_22 = arith.constant dense<0.000000e+00> : vector<16x2560xf32>
    %36 = tpu.matmul %33, %35, %cst_22 {dimension_numbers = #tpu.dot_dimension_numbers<[1], [0], [0], [1], [0, 0, 1, 1], [], []>} : vector<16x64xbf16>, vector<64x2560xbf16>, vector<16x2560xf32> -> vector<16x2560xf32>
    %37 = vector.extract_strided_slice %36 {offsets = [0, 0], sizes = [16, 512], strides = [1, 1]} : vector<16x2560xf32> to vector<16x512xf32>
    %38 = vector.extract_strided_slice %36 {offsets = [0, 512], sizes = [16, 512], strides = [1, 1]} : vector<16x2560xf32> to vector<16x512xf32>
    %39 = vector.extract_strided_slice %36 {offsets = [0, 1024], sizes = [16, 512], strides = [1, 1]} : vector<16x2560xf32> to vector<16x512xf32>
    %40 = vector.extract_strided_slice %36 {offsets = [0, 1536], sizes = [16, 512], strides = [1, 1]} : vector<16x2560xf32> to vector<16x512xf32>
    %41 = vector.extract_strided_slice %36 {offsets = [0, 2048], sizes = [16, 512], strides = [1, 1]} : vector<16x2560xf32> to vector<16x512xf32>
    %42 = arith.truncf %41 : vector<16x512xf32> to vector<16x512xbf16>
    %43 = arith.mulf %37, %17 : vector<16x512xf32>
    %44 = arith.mulf %38, %18 : vector<16x512xf32>
    %45 = arith.addf %43, %44 : vector<16x512xf32>
    %46 = arith.truncf %45 : vector<16x512xf32> to vector<16x512xbf16>
    %47 = arith.mulf %39, %17 : vector<16x512xf32>
    %48 = arith.mulf %40, %18 : vector<16x512xf32>
    %49 = arith.addf %47, %48 : vector<16x512xf32>
    %50 = arith.truncf %49 : vector<16x512xf32> to vector<16x512xbf16>
    %51 = vector.extract_strided_slice %46 {offsets = [0, 0], sizes = [16, 128], strides = [1, 1]} : vector<16x512xbf16> to vector<16x128xbf16>
    %52 = vector.extract_strided_slice %50 {offsets = [0, 0], sizes = [16, 128], strides = [1, 1]} : vector<16x512xbf16> to vector<16x128xbf16>
    %cst_23 = arith.constant dense<0.000000e+00> : vector<16x16xf32>
    %53 = tpu.matmul %51, %52, %cst_23 {dimension_numbers = #tpu.dot_dimension_numbers<[1], [1], [0], [0], [0, 0, 1, 0], [], []>} : vector<16x128xbf16>, vector<16x128xbf16>, vector<16x16xf32> -> vector<16x16xf32>
    %54 = arith.addf %53, %16 : vector<16x16xf32>
    %cst_24 = arith.constant dense<0xFF800000> : vector<16xf32>
    %55 = vector.multi_reduction <maximumf>, %54, %cst_24 [1] : vector<16x16xf32> to vector<16xf32>
    %56 = vector.shape_cast %55 : vector<16xf32> to vector<16x1xf32>
    %57 = vector.broadcast %56 : vector<16x1xf32> to vector<16x16xf32>
    %58 = arith.subf %54, %57 : vector<16x16xf32>
    %59 = math.exp %58 : vector<16x16xf32>
    %cst_25 = arith.constant dense<0.000000e+00> : vector<16xf32>
    %60 = vector.multi_reduction <add>, %59, %cst_25 [1] : vector<16x16xf32> to vector<16xf32>
    %61 = vector.shape_cast %60 : vector<16xf32> to vector<16x1xf32>
    %62 = tpu.reciprocal %61 {approx = true} : vector<16x1xf32> -> vector<16x1xf32>
    %63 = vector.broadcast %62 : vector<16x1xf32> to vector<16x16xf32>
    %64 = arith.mulf %59, %63 : vector<16x16xf32>
    %65 = arith.truncf %64 : vector<16x16xf32> to vector<16x16xbf16>
    %66 = vector.extract_strided_slice %42 {offsets = [0, 0], sizes = [16, 128], strides = [1, 1]} : vector<16x512xbf16> to vector<16x128xbf16>
    %cst_26 = arith.constant dense<0.000000e+00> : vector<16x128xf32>
    %67 = tpu.matmul %65, %66, %cst_26 {dimension_numbers = #tpu.dot_dimension_numbers<[1], [0], [0], [1], [0, 0, 1, 1], [], []>} : vector<16x16xbf16>, vector<16x128xbf16>, vector<16x128xf32> -> vector<16x128xf32>
    %68 = vector.extract_strided_slice %46 {offsets = [0, 128], sizes = [16, 128], strides = [1, 1]} : vector<16x512xbf16> to vector<16x128xbf16>
    %69 = vector.extract_strided_slice %50 {offsets = [0, 128], sizes = [16, 128], strides = [1, 1]} : vector<16x512xbf16> to vector<16x128xbf16>
    %cst_27 = arith.constant dense<0.000000e+00> : vector<16x16xf32>
    %70 = tpu.matmul %68, %69, %cst_27 {dimension_numbers = #tpu.dot_dimension_numbers<[1], [1], [0], [0], [0, 0, 1, 0], [], []>} : vector<16x128xbf16>, vector<16x128xbf16>, vector<16x16xf32> -> vector<16x16xf32>
    %71 = arith.addf %70, %16 : vector<16x16xf32>
    %cst_28 = arith.constant dense<0xFF800000> : vector<16xf32>
    %72 = vector.multi_reduction <maximumf>, %71, %cst_28 [1] : vector<16x16xf32> to vector<16xf32>
    %73 = vector.shape_cast %72 : vector<16xf32> to vector<16x1xf32>
    %74 = vector.broadcast %73 : vector<16x1xf32> to vector<16x16xf32>
    %75 = arith.subf %71, %74 : vector<16x16xf32>
    %76 = math.exp %75 : vector<16x16xf32>
    %cst_29 = arith.constant dense<0.000000e+00> : vector<16xf32>
    %77 = vector.multi_reduction <add>, %76, %cst_29 [1] : vector<16x16xf32> to vector<16xf32>
    %78 = vector.shape_cast %77 : vector<16xf32> to vector<16x1xf32>
    %79 = tpu.reciprocal %78 {approx = true} : vector<16x1xf32> -> vector<16x1xf32>
    %80 = vector.broadcast %79 : vector<16x1xf32> to vector<16x16xf32>
    %81 = arith.mulf %76, %80 : vector<16x16xf32>
    %82 = arith.truncf %81 : vector<16x16xf32> to vector<16x16xbf16>
    %83 = vector.extract_strided_slice %42 {offsets = [0, 128], sizes = [16, 128], strides = [1, 1]} : vector<16x512xbf16> to vector<16x128xbf16>
    %cst_30 = arith.constant dense<0.000000e+00> : vector<16x128xf32>
    %84 = tpu.matmul %82, %83, %cst_30 {dimension_numbers = #tpu.dot_dimension_numbers<[1], [0], [0], [1], [0, 0, 1, 1], [], []>} : vector<16x16xbf16>, vector<16x128xbf16>, vector<16x128xf32> -> vector<16x128xf32>
    %85 = vector.extract_strided_slice %46 {offsets = [0, 256], sizes = [16, 128], strides = [1, 1]} : vector<16x512xbf16> to vector<16x128xbf16>
    %86 = vector.extract_strided_slice %50 {offsets = [0, 256], sizes = [16, 128], strides = [1, 1]} : vector<16x512xbf16> to vector<16x128xbf16>
    %cst_31 = arith.constant dense<0.000000e+00> : vector<16x16xf32>
    %87 = tpu.matmul %85, %86, %cst_31 {dimension_numbers = #tpu.dot_dimension_numbers<[1], [1], [0], [0], [0, 0, 1, 0], [], []>} : vector<16x128xbf16>, vector<16x128xbf16>, vector<16x16xf32> -> vector<16x16xf32>
    %88 = arith.addf %87, %16 : vector<16x16xf32>
    %cst_32 = arith.constant dense<0xFF800000> : vector<16xf32>
    %89 = vector.multi_reduction <maximumf>, %88, %cst_32 [1] : vector<16x16xf32> to vector<16xf32>
    %90 = vector.shape_cast %89 : vector<16xf32> to vector<16x1xf32>
    %91 = vector.broadcast %90 : vector<16x1xf32> to vector<16x16xf32>
    %92 = arith.subf %88, %91 : vector<16x16xf32>
    %93 = math.exp %92 : vector<16x16xf32>
    %cst_33 = arith.constant dense<0.000000e+00> : vector<16xf32>
    %94 = vector.multi_reduction <add>, %93, %cst_33 [1] : vector<16x16xf32> to vector<16xf32>
    %95 = vector.shape_cast %94 : vector<16xf32> to vector<16x1xf32>
    %96 = tpu.reciprocal %95 {approx = true} : vector<16x1xf32> -> vector<16x1xf32>
    %97 = vector.broadcast %96 : vector<16x1xf32> to vector<16x16xf32>
    %98 = arith.mulf %93, %97 : vector<16x16xf32>
    %99 = arith.truncf %98 : vector<16x16xf32> to vector<16x16xbf16>
    %100 = vector.extract_strided_slice %42 {offsets = [0, 256], sizes = [16, 128], strides = [1, 1]} : vector<16x512xbf16> to vector<16x128xbf16>
    %cst_34 = arith.constant dense<0.000000e+00> : vector<16x128xf32>
    %101 = tpu.matmul %99, %100, %cst_34 {dimension_numbers = #tpu.dot_dimension_numbers<[1], [0], [0], [1], [0, 0, 1, 1], [], []>} : vector<16x16xbf16>, vector<16x128xbf16>, vector<16x128xf32> -> vector<16x128xf32>
    %102 = vector.extract_strided_slice %46 {offsets = [0, 384], sizes = [16, 128], strides = [1, 1]} : vector<16x512xbf16> to vector<16x128xbf16>
    %103 = vector.extract_strided_slice %50 {offsets = [0, 384], sizes = [16, 128], strides = [1, 1]} : vector<16x512xbf16> to vector<16x128xbf16>
    %cst_35 = arith.constant dense<0.000000e+00> : vector<16x16xf32>
    %104 = tpu.matmul %102, %103, %cst_35 {dimension_numbers = #tpu.dot_dimension_numbers<[1], [1], [0], [0], [0, 0, 1, 0], [], []>} : vector<16x128xbf16>, vector<16x128xbf16>, vector<16x16xf32> -> vector<16x16xf32>
    %105 = arith.addf %104, %16 : vector<16x16xf32>
    %cst_36 = arith.constant dense<0xFF800000> : vector<16xf32>
    %106 = vector.multi_reduction <maximumf>, %105, %cst_36 [1] : vector<16x16xf32> to vector<16xf32>
    %107 = vector.shape_cast %106 : vector<16xf32> to vector<16x1xf32>
    %108 = vector.broadcast %107 : vector<16x1xf32> to vector<16x16xf32>
    %109 = arith.subf %105, %108 : vector<16x16xf32>
    %110 = math.exp %109 : vector<16x16xf32>
    %cst_37 = arith.constant dense<0.000000e+00> : vector<16xf32>
    %111 = vector.multi_reduction <add>, %110, %cst_37 [1] : vector<16x16xf32> to vector<16xf32>
    %112 = vector.shape_cast %111 : vector<16xf32> to vector<16x1xf32>
    %113 = tpu.reciprocal %112 {approx = true} : vector<16x1xf32> -> vector<16x1xf32>
    %114 = vector.broadcast %113 : vector<16x1xf32> to vector<16x16xf32>
    %115 = arith.mulf %110, %114 : vector<16x16xf32>
    %116 = arith.truncf %115 : vector<16x16xf32> to vector<16x16xbf16>
    %117 = vector.extract_strided_slice %42 {offsets = [0, 384], sizes = [16, 128], strides = [1, 1]} : vector<16x512xbf16> to vector<16x128xbf16>
    %cst_38 = arith.constant dense<0.000000e+00> : vector<16x128xf32>
    %118 = tpu.matmul %116, %117, %cst_38 {dimension_numbers = #tpu.dot_dimension_numbers<[1], [0], [0], [1], [0, 0, 1, 1], [], []>} : vector<16x16xbf16>, vector<16x128xbf16>, vector<16x128xf32> -> vector<16x128xf32>
    %119 = tpu.concatenate %67, %84, %101, %118 in 1 : vector<16x128xf32>, vector<16x128xf32>, vector<16x128xf32>, vector<16x128xf32> -> vector<16x512xf32>
    %120 = arith.truncf %119 : vector<16x512xf32> to vector<16x512xbf16>
    %c0_39 = arith.constant 0 : index
    %c0_40 = arith.constant 0 : index
    %c0_41 = arith.constant 0 : index
    %121 = vector.load %arg10[%c0_39, %c0_40, %c0_41] : memref<2x512x64xbf16, #tpu.memory_space<vmem>>, vector<1x512x64xbf16>
    %122 = vector.shape_cast %121 : vector<1x512x64xbf16> to vector<512x64xbf16>
    %cst_42 = arith.constant dense<0.000000e+00> : vector<16x64xf32>
    %123 = tpu.matmul %120, %122, %cst_42 {dimension_numbers = #tpu.dot_dimension_numbers<[1], [0], [0], [1], [0, 0, 1, 1], [], []>} : vector<16x512xbf16>, vector<512x64xbf16>, vector<16x64xf32> -> vector<16x64xf32>
    %124 = arith.addf %8, %123 : vector<16x64xf32>
    %c0_43 = arith.constant 0 : index
    %c0_44 = arith.constant 0 : index
    %c0_45 = arith.constant 0 : index
    %125 = vector.load %arg8[%c0_43, %c0_44, %c0_45] : memref<2x1x64xf32, #tpu.memory_space<vmem>>, vector<1x1x64xf32>
    %126 = vector.shape_cast %125 : vector<1x1x64xf32> to vector<1x64xf32>
    %127 = arith.mulf %124, %124 : vector<16x64xf32>
    %cst_46 = arith.constant dense<0.000000e+00> : vector<16xf32>
    %128 = vector.multi_reduction <add>, %127, %cst_46 [1] : vector<16x64xf32> to vector<16xf32>
    %129 = vector.shape_cast %128 : vector<16xf32> to vector<16x1xf32>
    %cst_47 = arith.constant 6.400000e+01 : f32
    %130 = vector.broadcast %cst_47 : f32 to vector<16x1xf32>
    %131 = arith.divf %129, %130 : vector<16x1xf32>
    %cst_48 = arith.constant 9.99999997E-7 : f32
    %132 = vector.broadcast %cst_48 : f32 to vector<16x1xf32>
    %133 = arith.addf %131, %132 : vector<16x1xf32>
    %134 = math.rsqrt %133 : vector<16x1xf32>
    %135 = vector.broadcast %134 : vector<16x1xf32> to vector<16x64xf32>
    %136 = arith.mulf %124, %135 : vector<16x64xf32>
    %137 = vector.broadcast %126 : vector<1x64xf32> to vector<16x64xf32>
    %138 = arith.mulf %136, %137 : vector<16x64xf32>
    %139 = arith.truncf %138 : vector<16x64xf32> to vector<16x64xbf16>
    %c0_49 = arith.constant 0 : index
    %c0_50 = arith.constant 0 : index
    %c0_51 = arith.constant 0 : index
    %140 = vector.load %arg11[%c0_49, %c0_50, %c0_51] : memref<2x64x256xbf16, #tpu.memory_space<vmem>>, vector<1x64x256xbf16>
    %141 = vector.shape_cast %140 : vector<1x64x256xbf16> to vector<64x256xbf16>
    %cst_52 = arith.constant dense<0.000000e+00> : vector<16x256xf32>
    %142 = tpu.matmul %139, %141, %cst_52 {dimension_numbers = #tpu.dot_dimension_numbers<[1], [0], [0], [1], [0, 0, 1, 1], [], []>} : vector<16x64xbf16>, vector<64x256xbf16>, vector<16x256xf32> -> vector<16x256xf32>
    %143 = vector.extract_strided_slice %142 {offsets = [0, 0], sizes = [16, 128], strides = [1, 1]} : vector<16x256xf32> to vector<16x128xf32>
    %144 = vector.extract_strided_slice %142 {offsets = [0, 128], sizes = [16, 128], strides = [1, 1]} : vector<16x256xf32> to vector<16x128xf32>
    %145 = arith.negf %143 : vector<16x128xf32>
    %146 = math.exp %145 : vector<16x128xf32>
    %cst_53 = arith.constant 1.000000e+00 : f32
    %147 = vector.broadcast %cst_53 : f32 to vector<16x128xf32>
    %148 = arith.addf %147, %146 : vector<16x128xf32>
    %149 = arith.divf %147, %148 : vector<16x128xf32>
    %150 = arith.mulf %143, %149 : vector<16x128xf32>
    %151 = arith.mulf %150, %144 : vector<16x128xf32>
    %152 = arith.truncf %151 : vector<16x128xf32> to vector<16x128xbf16>
    %c0_54 = arith.constant 0 : index
    %c0_55 = arith.constant 0 : index
    %c0_56 = arith.constant 0 : index
    %153 = vector.load %arg12[%c0_54, %c0_55, %c0_56] : memref<2x128x64xbf16, #tpu.memory_space<vmem>>, vector<1x128x64xbf16>
    %154 = vector.shape_cast %153 : vector<1x128x64xbf16> to vector<128x64xbf16>
    %cst_57 = arith.constant dense<0.000000e+00> : vector<16x64xf32>
    %155 = tpu.matmul %152, %154, %cst_57 {dimension_numbers = #tpu.dot_dimension_numbers<[1], [0], [0], [1], [0, 0, 1, 1], [], []>} : vector<16x128xbf16>, vector<128x64xbf16>, vector<16x64xf32> -> vector<16x64xf32>
    %156 = arith.addf %124, %155 : vector<16x64xf32>
    %c1 = arith.constant 1 : index
    %c0_58 = arith.constant 0 : index
    %c0_59 = arith.constant 0 : index
    %157 = vector.load %arg7[%c1, %c0_58, %c0_59] : memref<2x1x64xf32, #tpu.memory_space<vmem>>, vector<1x1x64xf32>
    %158 = vector.shape_cast %157 : vector<1x1x64xf32> to vector<1x64xf32>
    %159 = arith.mulf %156, %156 : vector<16x64xf32>
    %cst_60 = arith.constant dense<0.000000e+00> : vector<16xf32>
    %160 = vector.multi_reduction <add>, %159, %cst_60 [1] : vector<16x64xf32> to vector<16xf32>
    %161 = vector.shape_cast %160 : vector<16xf32> to vector<16x1xf32>
    %cst_61 = arith.constant 6.400000e+01 : f32
    %162 = vector.broadcast %cst_61 : f32 to vector<16x1xf32>
    %163 = arith.divf %161, %162 : vector<16x1xf32>
    %cst_62 = arith.constant 9.99999997E-7 : f32
    %164 = vector.broadcast %cst_62 : f32 to vector<16x1xf32>
    %165 = arith.addf %163, %164 : vector<16x1xf32>
    %166 = math.rsqrt %165 : vector<16x1xf32>
    %167 = vector.broadcast %166 : vector<16x1xf32> to vector<16x64xf32>
    %168 = arith.mulf %156, %167 : vector<16x64xf32>
    %169 = vector.broadcast %158 : vector<1x64xf32> to vector<16x64xf32>
    %170 = arith.mulf %168, %169 : vector<16x64xf32>
    %171 = arith.truncf %170 : vector<16x64xf32> to vector<16x64xbf16>
    %c1_63 = arith.constant 1 : index
    %c0_64 = arith.constant 0 : index
    %c0_65 = arith.constant 0 : index
    %172 = vector.load %arg9[%c1_63, %c0_64, %c0_65] : memref<2x64x2560xbf16, #tpu.memory_space<vmem>>, vector<1x64x2560xbf16>
    %173 = vector.shape_cast %172 : vector<1x64x2560xbf16> to vector<64x2560xbf16>
    %cst_66 = arith.constant dense<0.000000e+00> : vector<16x2560xf32>
    %174 = tpu.matmul %171, %173, %cst_66 {dimension_numbers = #tpu.dot_dimension_numbers<[1], [0], [0], [1], [0, 0, 1, 1], [], []>} : vector<16x64xbf16>, vector<64x2560xbf16>, vector<16x2560xf32> -> vector<16x2560xf32>
    %175 = vector.extract_strided_slice %174 {offsets = [0, 0], sizes = [16, 512], strides = [1, 1]} : vector<16x2560xf32> to vector<16x512xf32>
    %176 = vector.extract_strided_slice %174 {offsets = [0, 512], sizes = [16, 512], strides = [1, 1]} : vector<16x2560xf32> to vector<16x512xf32>
    %177 = vector.extract_strided_slice %174 {offsets = [0, 1024], sizes = [16, 512], strides = [1, 1]} : vector<16x2560xf32> to vector<16x512xf32>
    %178 = vector.extract_strided_slice %174 {offsets = [0, 1536], sizes = [16, 512], strides = [1, 1]} : vector<16x2560xf32> to vector<16x512xf32>
    %179 = vector.extract_strided_slice %174 {offsets = [0, 2048], sizes = [16, 512], strides = [1, 1]} : vector<16x2560xf32> to vector<16x512xf32>
    %180 = arith.truncf %179 : vector<16x512xf32> to vector<16x512xbf16>
    %181 = arith.mulf %175, %17 : vector<16x512xf32>
    %182 = arith.mulf %176, %18 : vector<16x512xf32>
    %183 = arith.addf %181, %182 : vector<16x512xf32>
    %184 = arith.truncf %183 : vector<16x512xf32> to vector<16x512xbf16>
    %185 = arith.mulf %177, %17 : vector<16x512xf32>
    %186 = arith.mulf %178, %18 : vector<16x512xf32>
    %187 = arith.addf %185, %186 : vector<16x512xf32>
    %188 = arith.truncf %187 : vector<16x512xf32> to vector<16x512xbf16>
    %189 = vector.extract_strided_slice %184 {offsets = [0, 0], sizes = [16, 128], strides = [1, 1]} : vector<16x512xbf16> to vector<16x128xbf16>
    %190 = vector.extract_strided_slice %188 {offsets = [0, 0], sizes = [16, 128], strides = [1, 1]} : vector<16x512xbf16> to vector<16x128xbf16>
    %cst_67 = arith.constant dense<0.000000e+00> : vector<16x16xf32>
    %191 = tpu.matmul %189, %190, %cst_67 {dimension_numbers = #tpu.dot_dimension_numbers<[1], [1], [0], [0], [0, 0, 1, 0], [], []>} : vector<16x128xbf16>, vector<16x128xbf16>, vector<16x16xf32> -> vector<16x16xf32>
    %192 = arith.addf %191, %16 : vector<16x16xf32>
    %cst_68 = arith.constant dense<0xFF800000> : vector<16xf32>
    %193 = vector.multi_reduction <maximumf>, %192, %cst_68 [1] : vector<16x16xf32> to vector<16xf32>
    %194 = vector.shape_cast %193 : vector<16xf32> to vector<16x1xf32>
    %195 = vector.broadcast %194 : vector<16x1xf32> to vector<16x16xf32>
    %196 = arith.subf %192, %195 : vector<16x16xf32>
    %197 = math.exp %196 : vector<16x16xf32>
    %cst_69 = arith.constant dense<0.000000e+00> : vector<16xf32>
    %198 = vector.multi_reduction <add>, %197, %cst_69 [1] : vector<16x16xf32> to vector<16xf32>
    %199 = vector.shape_cast %198 : vector<16xf32> to vector<16x1xf32>
    %200 = tpu.reciprocal %199 {approx = true} : vector<16x1xf32> -> vector<16x1xf32>
    %201 = vector.broadcast %200 : vector<16x1xf32> to vector<16x16xf32>
    %202 = arith.mulf %197, %201 : vector<16x16xf32>
    %203 = arith.truncf %202 : vector<16x16xf32> to vector<16x16xbf16>
    %204 = vector.extract_strided_slice %180 {offsets = [0, 0], sizes = [16, 128], strides = [1, 1]} : vector<16x512xbf16> to vector<16x128xbf16>
    %cst_70 = arith.constant dense<0.000000e+00> : vector<16x128xf32>
    %205 = tpu.matmul %203, %204, %cst_70 {dimension_numbers = #tpu.dot_dimension_numbers<[1], [0], [0], [1], [0, 0, 1, 1], [], []>} : vector<16x16xbf16>, vector<16x128xbf16>, vector<16x128xf32> -> vector<16x128xf32>
    %206 = vector.extract_strided_slice %184 {offsets = [0, 128], sizes = [16, 128], strides = [1, 1]} : vector<16x512xbf16> to vector<16x128xbf16>
    %207 = vector.extract_strided_slice %188 {offsets = [0, 128], sizes = [16, 128], strides = [1, 1]} : vector<16x512xbf16> to vector<16x128xbf16>
    %cst_71 = arith.constant dense<0.000000e+00> : vector<16x16xf32>
    %208 = tpu.matmul %206, %207, %cst_71 {dimension_numbers = #tpu.dot_dimension_numbers<[1], [1], [0], [0], [0, 0, 1, 0], [], []>} : vector<16x128xbf16>, vector<16x128xbf16>, vector<16x16xf32> -> vector<16x16xf32>
    %209 = arith.addf %208, %16 : vector<16x16xf32>
    %cst_72 = arith.constant dense<0xFF800000> : vector<16xf32>
    %210 = vector.multi_reduction <maximumf>, %209, %cst_72 [1] : vector<16x16xf32> to vector<16xf32>
    %211 = vector.shape_cast %210 : vector<16xf32> to vector<16x1xf32>
    %212 = vector.broadcast %211 : vector<16x1xf32> to vector<16x16xf32>
    %213 = arith.subf %209, %212 : vector<16x16xf32>
    %214 = math.exp %213 : vector<16x16xf32>
    %cst_73 = arith.constant dense<0.000000e+00> : vector<16xf32>
    %215 = vector.multi_reduction <add>, %214, %cst_73 [1] : vector<16x16xf32> to vector<16xf32>
    %216 = vector.shape_cast %215 : vector<16xf32> to vector<16x1xf32>
    %217 = tpu.reciprocal %216 {approx = true} : vector<16x1xf32> -> vector<16x1xf32>
    %218 = vector.broadcast %217 : vector<16x1xf32> to vector<16x16xf32>
    %219 = arith.mulf %214, %218 : vector<16x16xf32>
    %220 = arith.truncf %219 : vector<16x16xf32> to vector<16x16xbf16>
    %221 = vector.extract_strided_slice %180 {offsets = [0, 128], sizes = [16, 128], strides = [1, 1]} : vector<16x512xbf16> to vector<16x128xbf16>
    %cst_74 = arith.constant dense<0.000000e+00> : vector<16x128xf32>
    %222 = tpu.matmul %220, %221, %cst_74 {dimension_numbers = #tpu.dot_dimension_numbers<[1], [0], [0], [1], [0, 0, 1, 1], [], []>} : vector<16x16xbf16>, vector<16x128xbf16>, vector<16x128xf32> -> vector<16x128xf32>
    %223 = vector.extract_strided_slice %184 {offsets = [0, 256], sizes = [16, 128], strides = [1, 1]} : vector<16x512xbf16> to vector<16x128xbf16>
    %224 = vector.extract_strided_slice %188 {offsets = [0, 256], sizes = [16, 128], strides = [1, 1]} : vector<16x512xbf16> to vector<16x128xbf16>
    %cst_75 = arith.constant dense<0.000000e+00> : vector<16x16xf32>
    %225 = tpu.matmul %223, %224, %cst_75 {dimension_numbers = #tpu.dot_dimension_numbers<[1], [1], [0], [0], [0, 0, 1, 0], [], []>} : vector<16x128xbf16>, vector<16x128xbf16>, vector<16x16xf32> -> vector<16x16xf32>
    %226 = arith.addf %225, %16 : vector<16x16xf32>
    %cst_76 = arith.constant dense<0xFF800000> : vector<16xf32>
    %227 = vector.multi_reduction <maximumf>, %226, %cst_76 [1] : vector<16x16xf32> to vector<16xf32>
    %228 = vector.shape_cast %227 : vector<16xf32> to vector<16x1xf32>
    %229 = vector.broadcast %228 : vector<16x1xf32> to vector<16x16xf32>
    %230 = arith.subf %226, %229 : vector<16x16xf32>
    %231 = math.exp %230 : vector<16x16xf32>
    %cst_77 = arith.constant dense<0.000000e+00> : vector<16xf32>
    %232 = vector.multi_reduction <add>, %231, %cst_77 [1] : vector<16x16xf32> to vector<16xf32>
    %233 = vector.shape_cast %232 : vector<16xf32> to vector<16x1xf32>
    %234 = tpu.reciprocal %233 {approx = true} : vector<16x1xf32> -> vector<16x1xf32>
    %235 = vector.broadcast %234 : vector<16x1xf32> to vector<16x16xf32>
    %236 = arith.mulf %231, %235 : vector<16x16xf32>
    %237 = arith.truncf %236 : vector<16x16xf32> to vector<16x16xbf16>
    %238 = vector.extract_strided_slice %180 {offsets = [0, 256], sizes = [16, 128], strides = [1, 1]} : vector<16x512xbf16> to vector<16x128xbf16>
    %cst_78 = arith.constant dense<0.000000e+00> : vector<16x128xf32>
    %239 = tpu.matmul %237, %238, %cst_78 {dimension_numbers = #tpu.dot_dimension_numbers<[1], [0], [0], [1], [0, 0, 1, 1], [], []>} : vector<16x16xbf16>, vector<16x128xbf16>, vector<16x128xf32> -> vector<16x128xf32>
    %240 = vector.extract_strided_slice %184 {offsets = [0, 384], sizes = [16, 128], strides = [1, 1]} : vector<16x512xbf16> to vector<16x128xbf16>
    %241 = vector.extract_strided_slice %188 {offsets = [0, 384], sizes = [16, 128], strides = [1, 1]} : vector<16x512xbf16> to vector<16x128xbf16>
    %cst_79 = arith.constant dense<0.000000e+00> : vector<16x16xf32>
    %242 = tpu.matmul %240, %241, %cst_79 {dimension_numbers = #tpu.dot_dimension_numbers<[1], [1], [0], [0], [0, 0, 1, 0], [], []>} : vector<16x128xbf16>, vector<16x128xbf16>, vector<16x16xf32> -> vector<16x16xf32>
    %243 = arith.addf %242, %16 : vector<16x16xf32>
    %cst_80 = arith.constant dense<0xFF800000> : vector<16xf32>
    %244 = vector.multi_reduction <maximumf>, %243, %cst_80 [1] : vector<16x16xf32> to vector<16xf32>
    %245 = vector.shape_cast %244 : vector<16xf32> to vector<16x1xf32>
    %246 = vector.broadcast %245 : vector<16x1xf32> to vector<16x16xf32>
    %247 = arith.subf %243, %246 : vector<16x16xf32>
    %248 = math.exp %247 : vector<16x16xf32>
    %cst_81 = arith.constant dense<0.000000e+00> : vector<16xf32>
    %249 = vector.multi_reduction <add>, %248, %cst_81 [1] : vector<16x16xf32> to vector<16xf32>
    %250 = vector.shape_cast %249 : vector<16xf32> to vector<16x1xf32>
    %251 = tpu.reciprocal %250 {approx = true} : vector<16x1xf32> -> vector<16x1xf32>
    %252 = vector.broadcast %251 : vector<16x1xf32> to vector<16x16xf32>
    %253 = arith.mulf %248, %252 : vector<16x16xf32>
    %254 = arith.truncf %253 : vector<16x16xf32> to vector<16x16xbf16>
    %255 = vector.extract_strided_slice %180 {offsets = [0, 384], sizes = [16, 128], strides = [1, 1]} : vector<16x512xbf16> to vector<16x128xbf16>
    %cst_82 = arith.constant dense<0.000000e+00> : vector<16x128xf32>
    %256 = tpu.matmul %254, %255, %cst_82 {dimension_numbers = #tpu.dot_dimension_numbers<[1], [0], [0], [1], [0, 0, 1, 1], [], []>} : vector<16x16xbf16>, vector<16x128xbf16>, vector<16x128xf32> -> vector<16x128xf32>
    %257 = tpu.concatenate %205, %222, %239, %256 in 1 : vector<16x128xf32>, vector<16x128xf32>, vector<16x128xf32>, vector<16x128xf32> -> vector<16x512xf32>
    %258 = arith.truncf %257 : vector<16x512xf32> to vector<16x512xbf16>
    %c1_83 = arith.constant 1 : index
    %c0_84 = arith.constant 0 : index
    %c0_85 = arith.constant 0 : index
    %259 = vector.load %arg10[%c1_83, %c0_84, %c0_85] : memref<2x512x64xbf16, #tpu.memory_space<vmem>>, vector<1x512x64xbf16>
    %260 = vector.shape_cast %259 : vector<1x512x64xbf16> to vector<512x64xbf16>
    %cst_86 = arith.constant dense<0.000000e+00> : vector<16x64xf32>
    %261 = tpu.matmul %258, %260, %cst_86 {dimension_numbers = #tpu.dot_dimension_numbers<[1], [0], [0], [1], [0, 0, 1, 1], [], []>} : vector<16x512xbf16>, vector<512x64xbf16>, vector<16x64xf32> -> vector<16x64xf32>
    %262 = arith.addf %156, %261 : vector<16x64xf32>
    %c1_87 = arith.constant 1 : index
    %c0_88 = arith.constant 0 : index
    %c0_89 = arith.constant 0 : index
    %263 = vector.load %arg8[%c1_87, %c0_88, %c0_89] : memref<2x1x64xf32, #tpu.memory_space<vmem>>, vector<1x1x64xf32>
    %264 = vector.shape_cast %263 : vector<1x1x64xf32> to vector<1x64xf32>
    %265 = arith.mulf %262, %262 : vector<16x64xf32>
    %cst_90 = arith.constant dense<0.000000e+00> : vector<16xf32>
    %266 = vector.multi_reduction <add>, %265, %cst_90 [1] : vector<16x64xf32> to vector<16xf32>
    %267 = vector.shape_cast %266 : vector<16xf32> to vector<16x1xf32>
    %cst_91 = arith.constant 6.400000e+01 : f32
    %268 = vector.broadcast %cst_91 : f32 to vector<16x1xf32>
    %269 = arith.divf %267, %268 : vector<16x1xf32>
    %cst_92 = arith.constant 9.99999997E-7 : f32
    %270 = vector.broadcast %cst_92 : f32 to vector<16x1xf32>
    %271 = arith.addf %269, %270 : vector<16x1xf32>
    %272 = math.rsqrt %271 : vector<16x1xf32>
    %273 = vector.broadcast %272 : vector<16x1xf32> to vector<16x64xf32>
    %274 = arith.mulf %262, %273 : vector<16x64xf32>
    %275 = vector.broadcast %264 : vector<1x64xf32> to vector<16x64xf32>
    %276 = arith.mulf %274, %275 : vector<16x64xf32>
    %277 = arith.truncf %276 : vector<16x64xf32> to vector<16x64xbf16>
    %c1_93 = arith.constant 1 : index
    %c0_94 = arith.constant 0 : index
    %c0_95 = arith.constant 0 : index
    %278 = vector.load %arg11[%c1_93, %c0_94, %c0_95] : memref<2x64x256xbf16, #tpu.memory_space<vmem>>, vector<1x64x256xbf16>
    %279 = vector.shape_cast %278 : vector<1x64x256xbf16> to vector<64x256xbf16>
    %cst_96 = arith.constant dense<0.000000e+00> : vector<16x256xf32>
    %280 = tpu.matmul %277, %279, %cst_96 {dimension_numbers = #tpu.dot_dimension_numbers<[1], [0], [0], [1], [0, 0, 1, 1], [], []>} : vector<16x64xbf16>, vector<64x256xbf16>, vector<16x256xf32> -> vector<16x256xf32>
    %281 = vector.extract_strided_slice %280 {offsets = [0, 0], sizes = [16, 128], strides = [1, 1]} : vector<16x256xf32> to vector<16x128xf32>
    %282 = vector.extract_strided_slice %280 {offsets = [0, 128], sizes = [16, 128], strides = [1, 1]} : vector<16x256xf32> to vector<16x128xf32>
    %283 = arith.negf %281 : vector<16x128xf32>
    %284 = math.exp %283 : vector<16x128xf32>
    %cst_97 = arith.constant 1.000000e+00 : f32
    %285 = vector.broadcast %cst_97 : f32 to vector<16x128xf32>
    %286 = arith.addf %285, %284 : vector<16x128xf32>
    %287 = arith.divf %285, %286 : vector<16x128xf32>
    %288 = arith.mulf %281, %287 : vector<16x128xf32>
    %289 = arith.mulf %288, %282 : vector<16x128xf32>
    %290 = arith.truncf %289 : vector<16x128xf32> to vector<16x128xbf16>
    %c1_98 = arith.constant 1 : index
    %c0_99 = arith.constant 0 : index
    %c0_100 = arith.constant 0 : index
    %291 = vector.load %arg12[%c1_98, %c0_99, %c0_100] : memref<2x128x64xbf16, #tpu.memory_space<vmem>>, vector<1x128x64xbf16>
    %292 = vector.shape_cast %291 : vector<1x128x64xbf16> to vector<128x64xbf16>
    %cst_101 = arith.constant dense<0.000000e+00> : vector<16x64xf32>
    %293 = tpu.matmul %290, %292, %cst_101 {dimension_numbers = #tpu.dot_dimension_numbers<[1], [0], [0], [1], [0, 0, 1, 1], [], []>} : vector<16x128xbf16>, vector<128x64xbf16>, vector<16x64xf32> -> vector<16x64xf32>
    %294 = arith.addf %262, %293 : vector<16x64xf32>
    %c0_102 = arith.constant 0 : index
    %c0_103 = arith.constant 0 : index
    %295 = vector.load %arg5[%c0_102, %c0_103] : memref<8x16xf32, #tpu.memory_space<vmem>>, vector<8x16xf32>
    %cst_104 = arith.constant dense<0.000000e+00> : vector<8x64xf32>
    %296 = tpu.matmul %295, %294, %cst_104 {dimension_numbers = #tpu.dot_dimension_numbers<[1], [0], [0], [1], [0, 0, 1, 1], [], []>} : vector<8x16xf32>, vector<16x64xf32>, vector<8x64xf32> -> vector<8x64xf32>
    %c0_105 = arith.constant 0 : index
    %c0_106 = arith.constant 0 : index
    %297 = vector.load %arg13[%c0_105, %c0_106] : memref<1x64xf32, #tpu.memory_space<vmem>>, vector<1x64xf32>
    %298 = arith.mulf %296, %296 : vector<8x64xf32>
    %cst_107 = arith.constant dense<0.000000e+00> : vector<8xf32>
    %299 = vector.multi_reduction <add>, %298, %cst_107 [1] : vector<8x64xf32> to vector<8xf32>
    %300 = vector.shape_cast %299 : vector<8xf32> to vector<8x1xf32>
    %cst_108 = arith.constant 6.400000e+01 : f32
    %301 = vector.broadcast %cst_108 : f32 to vector<8x1xf32>
    %302 = arith.divf %300, %301 : vector<8x1xf32>
    %cst_109 = arith.constant 9.99999997E-7 : f32
    %303 = vector.broadcast %cst_109 : f32 to vector<8x1xf32>
    %304 = arith.addf %302, %303 : vector<8x1xf32>
    %305 = math.rsqrt %304 : vector<8x1xf32>
    %306 = vector.broadcast %305 : vector<8x1xf32> to vector<8x64xf32>
    %307 = arith.mulf %296, %306 : vector<8x64xf32>
    %308 = vector.broadcast %297 : vector<1x64xf32> to vector<8x64xf32>
    %309 = arith.mulf %307, %308 : vector<8x64xf32>
    %310 = arith.truncf %309 : vector<8x64xf32> to vector<8x64xbf16>
    %c0_110 = arith.constant 0 : index
    %c0_111 = arith.constant 0 : index
    %311 = vector.load %arg14[%c0_110, %c0_111] : memref<64x128xbf16, #tpu.memory_space<vmem>>, vector<64x128xbf16>
    %cst_112 = arith.constant dense<0.000000e+00> : vector<8x128xf32>
    %312 = tpu.matmul %310, %311, %cst_112 {dimension_numbers = #tpu.dot_dimension_numbers<[1], [0], [0], [1], [0, 0, 1, 1], [], []>} : vector<8x64xbf16>, vector<64x128xbf16>, vector<8x128xf32> -> vector<8x128xf32>
    %c0_113 = arith.constant 0 : index
    %c0_114 = arith.constant 0 : index
    %313 = vector.load %arg15[%c0_113, %c0_114] : memref<1x128xf32, #tpu.memory_space<vmem>>, vector<1x128xf32>
    %314 = vector.broadcast %313 : vector<1x128xf32> to vector<8x128xf32>
    %315 = arith.addf %312, %314 : vector<8x128xf32>
    %c0_115 = arith.constant 0 : index
    %c0_116 = arith.constant 0 : index
    %316 = vector.load %arg16[%c0_115, %c0_116] : memref<8x128xf32, #tpu.memory_space<vmem>>, vector<8x128xf32>
    tpu.vector_store %arg16[%c0_115, %c0_116], %315 {strides = array<i32>} : memref<8x128xf32, #tpu.memory_space<vmem>>, vector<8x128xf32>,
    return
  }
}

</mosaic_0001>

<bundles_post_ra>
// kernel: _lambda_.1
= control target key start
LH: loop header
LB: loop body
LE: loop exit
PB: predicated region body
PF: predicated region fallthrough
CT: control target
= control target key end

     0   :  { %s6738_s0 = inlined_call_operand.vmem [shape: s32[16,1], index: 0, kind: input, shape index: {}]   ;;  %s6739_s1 = inlined_call_operand.vmem [shape: f32[1,16], index: 1, kind: input, shape index: {}]   ;;  %s6740_s2 = inlined_call_operand.vmem [shape: f32[16,16], index: 2, kind: input, shape index: {}]   ;;  %s6741_s3 = inlined_call_operand.vmem [shape: f32[16,512], index: 3, kind: input, shape index: {}]   ;;  %s6742_s4 = inlined_call_operand.vmem [shape: f32[16,512], index: 4, kind: input, shape index: {}]   ;;  %s6743_s5 = inlined_call_operand.vmem [shape: f32[8,16], index: 5, kind: input, shape index: {}]   ;;  %s6744_s6 = inlined_call_operand.vmem [shape: bf16[256,64], index: 6, kind: input, shape index: {}]   ;;  %s6745_s7 = inlined_call_operand.vmem [shape: f32[2,1,64], index: 7, kind: input, shape index: {}]   ;;  %s6746_s8 = inlined_call_operand.vmem [shape: f32[2,1,64], index: 8, kind: input, shape index: {}]   ;;  %s6747_s9 = inlined_call_operand.hbm [shape: bf16[2,64,2560], index: 9, kind: input, shape index: {}]   ;;  %s6748_s10 = inlined_call_operand.vmem [shape: bf16[2,512,64], index: 10, kind: input, shape index: {}]   ;;  %s6749_s11 = inlined_call_operand.vmem [shape: bf16[2,64,256], index: 11, kind: input, shape index: {}]   ;;  %s6750_s12 = inlined_call_operand.vmem [shape: bf16[2,128,64], index: 12, kind: input, shape index: {}]   ;;  %s6751_s13 = inlined_call_operand.vmem [shape: f32[1,64], index: 13, kind: input, shape index: {}]   ;;  %s6752_s14 = inlined_call_operand.vmem [shape: bf16[64,128], index: 14, kind: input, shape index: {}]   ;;  %s6753_s15 = inlined_call_operand.vmem [shape: f32[1,128], index: 15, kind: input, shape index: {}]   ;;  %s6754_s16 = inlined_call_operand.vmem [shape: f32[8,128], index: 16, kind: output, shape index: {}]  }
   0x1   :  { %6756 = sst [smem:[#allocation5_spill]] %s6738_s0 }
   0x2   :  { %21 = vsyncpa [#allocation3], 0  ;;  %s5765_s21 = smov [#allocation2]  }
   0x3   :  { %s45_s22 = sshll.u32 %s5765_s21, 4  ;;  %s46_s22 = int_to_ptr.vmem [resolvable:$true] %s45_s22 }
   0x4   :  { %s5751_s23 = scalar_lea.vmem %s46_s22, 20480  ;;  %p5756_p1 = scmp.lt.s32.totalorder %s46_s22, %s46_s22 }
   0x5   :  { %p5752_p0 = scmp.ne.s32.totalorder %s46_s22, %s5751_s23  ;;  %p5757_p2 = scmp.lt.s32.totalorder %s5751_s23, %s5751_s23 }
   0x7   :  { %p5758_p3 = por %p5757_p2, %p5756_p1 }
   0x9   :  { %p5759_p4 = pnand %p5758_p3, %p5752_p0 }
   0xb   :  { %5762 = shalt.err (!%p5759_p4)
}
   0xc   :  { %s5766_s24 = smov 1280   ;;  %s5767_s25 = smov 80  }
   0xd   :  { %51 = dma.hbm_to_vmem [thread:$0]  %s6747_s9, 20480, %s46_s22, [#allocation3], %s5766_s24, %s5766_s24, %s5767_s25  }
   0xe   :  { %5763 = dma.done.wait [#allocation3], 20480  }
   0xf   :  { %5764 = vsyncadd [#allocation3], 4294946816  ;;  %v5768_v0 = vmov 0   ;;  %s6757_s30 = sld [smem:[#allocation5_spill]]  ;;  %v5265_v3 = vld [vmem:[%s6744_s6 + $0x78] sm:$0xff]   ;;  %v5267_v5 = vld [vmem:[%s6744_s6 + $0x70] sm:$0xff]   ;;  %v70_v19 = vlaneseq }
  0x10   :  { %5264 = vset.pattern.permute.xlu0 %v5768_v0  ;;  %834 = vmatprep.mubr.bf16.mxu1 %v5768_v0  ;;  %v5266_v4 = vld [vmem:[%s6744_s6 + $0x38] sm:$0xff]   ;;  %v5268_v6 = vld [vmem:[%s6744_s6 + $0x30] sm:$0xff]   ;;  %v5269_v7 = vld [vmem:[%s6744_s6 + $0x68] sm:$0xff]   ;;  %v5769_v24 = vmov 1.0|1.0   ;;  %vm294_vm6 = vcmask 523264  }
  0x11   :  { %4934 = vmatprep.subr.bf16.mxu0 %v5265_v3  ;;  %v5270_v8 = vld [vmem:[%s6744_s6 + $0x28] sm:$0xff]   ;;  %v5271_v9 = vld [vmem:[%s6744_s6 + $0x60] sm:$0xff]   ;;  %v5273_v11 = vld [vmem:[%s6744_s6 + $0x58] sm:$0xff]   ;;  %v71_v20 = vand.u32 127, %v70_v19  ;;  %vm5771_vm7 = vmmov 0   ;;  %vm1333_vm8 = vcmask 130048  }
  0x12   :  { %4935 = vmatpush3.bf16.msra.mxu0 %v5266_v4  ;;  %v5272_v10 = vld [vmem:[%s6744_s6 + $0x20] sm:$0xff]   ;;  %v5274_v12 = vld [vmem:[%s6744_s6 + $0x18] sm:$0xff]   ;;  %v5275_v13 = vld [vmem:[%s6744_s6 + $0x50] sm:$0xff]  }
  0x13   :  { %4936 = vmatprep.subr.bf16.mxu0 %v5267_v5  ;;  %v5276_v14 = vld [vmem:[%s6744_s6 + $0x10] sm:$0xff]   ;;  %v5277_v15 = vld [vmem:[%s6744_s6 + $0x48] sm:$0xff]   ;;  %v5279_v17 = vld [vmem:[%s6744_s6 + $0x40] sm:$0xff]   ;;  %v72_v21 = vadd.s32 128, %v71_v20 }
  0x14   :  { %v5278_v16 = vld [vmem:[%s6744_s6 + $0x8] sm:$0xff]   ;;  %v5280_v18 = vld [vmem:[%s6744_s6] sm:$0xff]  }
  0x15   :  { %v68_v1 = vld [vmem:[%s6757_s30] sm:$0xff]  ;;  %v69_v2 = vld [vmem:[%s6757_s30 + $0x8] sm:$0xff] }
  0x16   :  { %74 = vperm.xlu0 %5264, %v68_v1   ;;  %4937 = vmatpush3.bf16.msra.mxu0 %v5268_v6  ;;  %v5281_v35 = vld [vmem:[#allocation2 + $0x1e4] ss:$80 sps:$4 sm:$0xff]   ;;  %v5283_v37 = vld [vmem:[#allocation2 + $0x1f0] ss:$80 sps:$4 sm:$0xff]   ;;  %v5307_v51 = vld [vmem:[#allocation2 + $0x1ec] ss:$80 sps:$4 sm:$0xff]  }
  0x17   :  { %4938 = vmatprep.subr.bf16.mxu0 %v5269_v7  ;;  %v5285_v36 = vld [vmem:[#allocation2 + $0x1f4] ss:$80 sps:$4 sm:$0xff]   ;;  %v5286_v38 = vld [vmem:[#allocation2 + $0x1e0] ss:$80 sps:$4 sm:$0xff]   ;;  %810 = vmatprep.subr.bf16.mxu1 %v5281_v35  ;;  %v5305_v3 = vld [vmem:[#allocation2 + $0x1e8] ss:$80 sps:$4 sm:$0xff]  }
  0x18   :  { %811 = vmatpush1.bf16.msra.mxu1 %v5286_v38  ;;  %v5287_v39 = vld [vmem:[#allocation2 + $0x144] ss:$80 sps:$4 sm:$0xff]   ;;  %v5289_v41 = vld [vmem:[#allocation2 + $0x150] ss:$80 sps:$4 sm:$0xff]   ;;  %v5313_v6 = vld [vmem:[#allocation2 + $0x14c] ss:$80 sps:$4 sm:$0xff]  }
  0x19   :  { %v5291_v40 = vld [vmem:[#allocation2 + $0x154] ss:$80 sps:$4 sm:$0xff]   ;;  %v5292_v42 = vld [vmem:[#allocation2 + $0x140] ss:$80 sps:$4 sm:$0xff]   ;;  %812 = vmatprep.subr.bf16.mxu1 %v5287_v39  ;;  %v5347_v35 = vld [vmem:[#allocation2 + $0x18] ss:$80 sps:$4 sm:$0xff]  }
  0x1a   :  { %77 = vperm.xlu0 %5264, %v69_v2   ;;  %4939 = vmatpush3.bf16.msra.mxu0 %v5270_v8  ;;  %v5293_v43 = vld [vmem:[#allocation2 + $0xa4] ss:$80 sps:$4 sm:$0xff]   ;;  %v5295_v45 = vld [vmem:[#allocation2 + $0xb0] ss:$80 sps:$4 sm:$0xff]   ;;  %v5311_v8 = vld [vmem:[#allocation2 + $0x148] ss:$80 sps:$4 sm:$0xff]  }
  0x1b   :  { %4940 = vmatprep.subr.bf16.mxu0 %v5271_v9  ;;  %v5297_v44 = vld [vmem:[#allocation2 + $0xb4] ss:$80 sps:$4 sm:$0xff]   ;;  %v5298_v46 = vld [vmem:[#allocation2 + $0xa0] ss:$80 sps:$4 sm:$0xff]   ;;  %v5353_v39 = vld [vmem:[#allocation2 + $0x208] ss:$80 sps:$4 sm:$0xff]  }
  0x1c   :  { %813 = vmatpush1.bf16.msra.mxu1 %v5292_v42  ;;  %v5299_v47 = vld [vmem:[#allocation2 + $0x4] ss:$80 sps:$4 sm:$0xff]   ;;  %v5301_v49 = vld [vmem:[#allocation2 + $0x10] ss:$80 sps:$4 sm:$0xff]  }
  0x1d   :  { %814 = vmatprep.subr.bf16.mxu1 %v5293_v43  ;;  %v5303_v48 = vld [vmem:[#allocation2 + $0x14] ss:$80 sps:$4 sm:$0xff]   ;;  %v5304_v50 = vld [vmem:[#allocation2] ss:$80 sps:$4 sm:$0xff]   ;;  %v5359_v43 = vld [vmem:[#allocation2 + $0x168] ss:$80 sps:$4 sm:$0xff]  }
  0x1e   :  { %4941 = vmatpush3.bf16.msra.mxu0 %v5272_v10  ;;  %v5310_v52 = vld [vmem:[#allocation2 + $0x204] ss:$80 sps:$4 sm:$0xff]   ;;  %v4542_v62 = vld [vmem:[%s6745_s7] ss:$0 sm:$0xff]  ;;  %v5319_v10 = vld [vmem:[#allocation2 + $0xac] ss:$80 sps:$4 sm:$0xff]  }
  0x1f   :  { %4942 = vmatprep.subr.bf16.mxu0 %v5273_v11  ;;  %v5308_v4 = vld [vmem:[#allocation2 + $0x200] ss:$80 sps:$4 sm:$0xff]   ;;  %v5316_v7 = vld [vmem:[#allocation2 + $0x164] ss:$80 sps:$4 sm:$0xff]  }
  0x20   :  { %815 = vmatpush1.bf16.msra.mxu1 %v5298_v46  ;;  %v5314_v9 = vld [vmem:[#allocation2 + $0x160] ss:$80 sps:$4 sm:$0xff]   ;;  %v5322_v11 = vld [vmem:[#allocation2 + $0xc4] ss:$80 sps:$4 sm:$0xff]  }
  0x21   :  { %816 = vmatprep.subr.bf16.mxu1 %v5299_v47  ;;  %v5358_v38 = vld [vmem:[#allocation2 + $0x224] ss:$80 sps:$4 sm:$0xff]   ;;  %v5365_v47 = vld [vmem:[#allocation2 + $0xc8] ss:$80 sps:$4 sm:$0xff]  }
  0x22   :  { %4943 = vmatpush3.bf16.msra.mxu0 %v5274_v12  ;;  %v5317_v12 = vld [vmem:[#allocation2 + $0xa8] ss:$80 sps:$4 sm:$0xff]   ;;  %v5364_v42 = vld [vmem:[#allocation2 + $0x184] ss:$80 sps:$4 sm:$0xff]  }
  0x23   :  { %4944 = vmatprep.subr.bf16.mxu0 %v5275_v13  ;;  %v5320_v13 = vld [vmem:[#allocation2 + $0xc0] ss:$80 sps:$4 sm:$0xff]   ;;  %v5370_v46 = vld [vmem:[#allocation2 + $0xe4] ss:$80 sps:$4 sm:$0xff]  }
  0x24   :  { %817 = vmatpush1.bf16.msra.mxu1 %v5304_v50  ;;  %v5376_v50 = vld [vmem:[#allocation2 + $0x44] ss:$80 sps:$4 sm:$0xff]  }
  0x25   :  { %853 = vmatprep.subr.bf16.mxu1 %v5307_v51  ;;  %v5371_v51 = vld [vmem:[#allocation2 + $0x28] ss:$80 sps:$4 sm:$0xff]  }
  0x26   :  { %4945 = vmatpush3.bf16.msra.mxu0 %v5276_v14  ;;  %v5325_v14 = vld [vmem:[#allocation2 + $0xc] ss:$80 sps:$4 sm:$0xff]  }
  0x27   :  { %4946 = vmatprep.subr.bf16.mxu0 %v5277_v15  ;;  %v5328_v15 = vld [vmem:[#allocation2 + $0x24] ss:$80 sps:$4 sm:$0xff]  }
  0x2a   :  { %4947 = vmatpush3.bf16.msra.mxu0 %v5278_v16  ;;  %v5323_v16 = vld [vmem:[#allocation2 + $0x8] ss:$80 sps:$4 sm:$0xff]  }
  0x2b   :  { %4948 = vmatprep.subr.bf16.mxu0 %v5279_v17  ;;  %v5326_v17 = vld [vmem:[#allocation2 + $0x20] ss:$80 sps:$4 sm:$0xff]  }
  0x2e   :  { %4949 = vmatpush3.bf16.msra.mxu0 %v5280_v18  ;;  %v5331_v18 = vld [vmem:[#allocation2 + $0x1fc] ss:$80 sps:$4 sm:$0xff]  }
  0x2f   :  { %896 = vmatprep.subr.bf16.mxu0 %v5285_v36  ;;  %v5350_v36 = vld [vmem:[#allocation2 + $0x30] ss:$80 sps:$4 sm:$0xff]  }
  0x91   :  { %v75_v22 = vpop.permute.xlu0 %74 }
  0x92   :  { %vm79_vm0 = vcmp.eq.s32.totalorder %v71_v20, %v75_v22  ;;  %vm80_vm4 = vcmp.eq.s32.totalorder %v72_v21, %v75_v22  ;;  %v5332_v22 = vld [vmem:[#allocation2 + $0x210] ss:$80 sps:$4 sm:$0xff]  }
  0x95   :  { %v78_v23 = vpop.permute.xlu0 %77 }
  0x96   :  { %vm81_vm1 = vcmp.eq.s32.totalorder %v71_v20, %v78_v23  ;;  %vm82_vm2 = vcmp.eq.s32.totalorder %v72_v21, %v78_v23  ;;  %v5334_v20 = vld [vmem:[#allocation2 + $0x214] ss:$80 sps:$4 sm:$0xff]   ;;  %v5329_v21 = vld [vmem:[#allocation2 + $0x1f8] ss:$80 sps:$4 sm:$0xff]   ;;  %v5337_v23 = vld [vmem:[#allocation2 + $0x15c] ss:$80 sps:$4 sm:$0xff]  }
  0x97   :  { %vm4539_vm3 = vmpackc.low %vm81_vm1, %vm79_vm0 }
  0x98   :  { %vm4537_vm5 = vmpackc.low %vm82_vm2, %vm80_vm4 }
  0x99   :  { %4538 = vmatprep.mubr.msk.bf16.mxu0 %vm4537_vm5, %v5769_v24 }
  0x9a   :  { %4540 = vmatmul.mubr.msk.bf16.vlgmr.msra.gmra.mxu0 %vm4539_vm3, %v5769_v24  ;;  %v5340_v24 = vld [vmem:[#allocation2 + $0x174] ss:$80 sps:$4 sm:$0xff]  }
  0x9b   :  { %920 = vmatprep.mubr.bf16.mxu0 %v5768_v0  ;;  %897 = vmatpush1.bf16.msra.mxu0 %v5283_v37  ;;  %v5355_v37 = vld [vmem:[#allocation2 + $0x20c] ss:$80 sps:$4 sm:$0xff]  }
  0x9c   :  { %898 = vmatprep.subr.bf16.mxu0 %v5291_v40  ;;  %v5356_v40 = vld [vmem:[#allocation2 + $0x220] ss:$80 sps:$4 sm:$0xff]  }
  0x9f   :  { %899 = vmatpush1.bf16.msra.mxu0 %v5289_v41  ;;  %v5361_v41 = vld [vmem:[#allocation2 + $0x16c] ss:$80 sps:$4 sm:$0xff]  }
  0xa0   :  { %900 = vmatprep.subr.bf16.mxu0 %v5297_v44  ;;  %v5362_v44 = vld [vmem:[#allocation2 + $0x180] ss:$80 sps:$4 sm:$0xff]  }
  0xa3   :  { %901 = vmatpush1.bf16.msra.mxu0 %v5295_v45  ;;  %v5367_v45 = vld [vmem:[#allocation2 + $0xcc] ss:$80 sps:$4 sm:$0xff]  }
  0xa4   :  { %902 = vmatprep.subr.bf16.mxu0 %v5303_v48  ;;  %v5368_v48 = vld [vmem:[#allocation2 + $0xe0] ss:$80 sps:$4 sm:$0xff]  }
  0xa7   :  { %903 = vmatpush1.bf16.msra.mxu0 %v5301_v49  ;;  %v5373_v49 = vld [vmem:[#allocation2 + $0x2c] ss:$80 sps:$4 sm:$0xff]  }
  0xa8   :  { %982 = vmatprep.subr.bf16.mxu0 %v5310_v52  ;;  %v5374_v52 = vld [vmem:[#allocation2 + $0x40] ss:$80 sps:$4 sm:$0xff]  }
 0x15a   :  { %v4950_v25 = vpop.f32.mrf.mxu0 }
 0x15c   :  { %v4951_v26 = vpop.f32.mrf.mxu0 }
 0x15d   :  { %v5918_v27 = vadd.f32 %v4951_v26, %v4950_v25  ;;  %v5335_v25 = vld [vmem:[#allocation2 + $0x158] ss:$80 sps:$4 sm:$0xff]   ;;  %v5338_v26 = vld [vmem:[#allocation2 + $0x170] ss:$80 sps:$4 sm:$0xff]  }
 0x15e   :  { %v4953_v28 = vpop.f32.mrf.mxu0 }
 0x15f   :  { %v292_v29 = vmul.f32 %v5918_v27, %v5918_v27 }
 0x160   :  { %v4954_v30 = vpop.f32.mrf.mxu0 }
 0x161   :  { %v5922_v31 = vadd.f32 %v4954_v30, %v4953_v28  ;;  %v295_v32 = vsel %vm294_vm6, %v292_v29, 0.0  ;;  %v5343_v28 = vld [vmem:[#allocation2 + $0xbc] ss:$80 sps:$4 sm:$0xff]   ;;  %v5346_v29 = vld [vmem:[#allocation2 + $0xd4] ss:$80 sps:$4 sm:$0xff]  }
 0x162   :  { %296 = vadd.xlane.f32.xlu1 %v295_v32  ;;  %v5341_v30 = vld [vmem:[#allocation2 + $0xb8] ss:$80 sps:$4 sm:$0xff]   ;;  %v5344_v32 = vld [vmem:[#allocation2 + $0xd0] ss:$80 sps:$4 sm:$0xff]  }
 0x163   :  { %v293_v33 = vmul.f32 %v5922_v31, %v5922_v31 }
 0x165   :  { %v298_v34 = vsel %vm294_vm6, %v293_v33, 0.0  ;;  %v5349_v33 = vld [vmem:[#allocation2 + $0x1c] ss:$80 sps:$4 sm:$0xff]  }
 0x166   :  { %299 = vadd.xlane.f32.xlu1 %v298_v34  ;;  %v5352_v34 = vld [vmem:[#allocation2 + $0x34] ss:$80 sps:$4 sm:$0xff]  }
 0x1eb   :  { %v297_v53 = vpop.xlane.xlu1 %296 }
 0x1ec   :  { %v302_v54 = vmul.f32 0.015625, %v297_v53  ;;  %v5379_v53 = vld [vmem:[#allocation2 + $0x21c] ss:$80 sps:$4 sm:$0xff]  }
 0x1ee   :  { %v304_v55 = vadd.f32 1e-06, %v302_v54  ;;  %v5377_v54 = vld [vmem:[#allocation2 + $0x218] ss:$80 sps:$4 sm:$0xff]  }
 0x1ef   :  { %v300_v56 = vpop.xlane.xlu1 %299 }
 0x1f0   :  { %5629 = vrsqrt.f32 %v304_v55  ;;  %v303_v57 = vmul.f32 0.015625, %v300_v56  ;;  %v5382_v55 = vld [vmem:[#allocation2 + $0x17c] ss:$80 sps:$4 sm:$0xff]   ;;  %v5380_v56 = vld [vmem:[#allocation2 + $0x178] ss:$80 sps:$4 sm:$0xff]  }
 0x1f2   :  { %v305_v58 = vadd.f32 1e-06, %v303_v57  ;;  %v5385_v57 = vld [vmem:[#allocation2 + $0xdc] ss:$80 sps:$4 sm:$0xff]  }
 0x1f4   :  { %5631 = vrsqrt.f32 %v305_v58  ;;  %v5383_v58 = vld [vmem:[#allocation2 + $0xd8] ss:$80 sps:$4 sm:$0xff]  }
 0x1fd   :  { %v5630_v59 = vpop.eup %5629 }
 0x1fe   :  { %v308_v60 = vmul.f32 %v5630_v59, %v5918_v27  ;;  %v5388_v59 = vld [vmem:[#allocation2 + $0x3c] ss:$80 sps:$4 sm:$0xff]  }
 0x200   :  { %v316_v1 = vmul.f32 %v4542_v62, %v308_v60  ;;  %v5386_v60 = vld [vmem:[#allocation2 + $0x38] ss:$80 sps:$4 sm:$0xff]  }
 0x201   :  { %v5632_v61 = vpop.eup %5631 }
 0x202   :  { %v309_v63 = vmul.f32 %v5632_v61, %v5922_v31  ;;  %v5391_v61 = vld [vmem:[#allocation2 + $0x22c] ss:$80 sps:$4 sm:$0xff]  }
 0x204   :  { %v317_v2 = vmul.f32 %v4542_v62, %v309_v63  ;;  %v5389_v62 = vld [vmem:[#allocation2 + $0x228] ss:$80 sps:$4 sm:$0xff]   ;;  %v5394_v63 = vld [vmem:[#allocation2 + $0x18c] ss:$80 sps:$4 sm:$0xff]  }
 0x206   :  { %v5933_v5 = vpack.c.bf16 %v317_v2, %v316_v1  ;;  %v5392_v1 = vld [vmem:[#allocation2 + $0x188] ss:$80 sps:$4 sm:$0xff]   ;;  %v5397_v2 = vld [vmem:[#allocation2 + $0xec] ss:$80 sps:$4 sm:$0xff]  }
 0x208   :  { %4623 = vmatmul.mubr.msk.bf16.vlgmr.msra.gmra.mxu1 %vm294_vm6, %v5933_v5  ;;  %4625 = vmatmul.mubr.msk.bf16.vlgmr.msra.gmra.mxu0 %vm294_vm6, %v5933_v5 }
 0x209   :  { %854 = vmatpush1.bf16.msra.mxu1 %v5305_v3  ;;  %983 = vmatpush1.bf16.msra.mxu0 %v5308_v4  ;;  %v5395_v3 = vld [vmem:[#allocation2 + $0xe8] ss:$80 sps:$4 sm:$0xff]   ;;  %v5400_v4 = vld [vmem:[#allocation2 + $0x4c] ss:$80 sps:$4 sm:$0xff]  }
 0x20a   :  { %855 = vmatprep.subr.bf16.mxu1 %v5313_v6  ;;  %984 = vmatprep.subr.bf16.mxu0 %v5316_v7  ;;  %v5398_v6 = vld [vmem:[#allocation2 + $0x48] ss:$80 sps:$4 sm:$0xff]   ;;  %v5770_v7 = vmov 0.0  }
 0x20b   :  { %877 = vmatprep.mubr.bf16.mxu1 %v5768_v0  ;;  %1006 = vmatprep.mubr.bf16.mxu0 %v5768_v0 }
 0x20d   :  { %856 = vmatpush1.bf16.msra.mxu1 %v5311_v8  ;;  %985 = vmatpush1.bf16.msra.mxu0 %v5314_v9 }
 0x20e   :  { %857 = vmatprep.subr.bf16.mxu1 %v5319_v10  ;;  %986 = vmatprep.subr.bf16.mxu0 %v5322_v11 }
 0x211   :  { %858 = vmatpush1.bf16.msra.mxu1 %v5317_v12  ;;  %987 = vmatpush1.bf16.msra.mxu0 %v5320_v13 }
 0x212   :  { %859 = vmatprep.subr.bf16.mxu1 %v5325_v14  ;;  %988 = vmatprep.subr.bf16.mxu0 %v5328_v15 }
 0x215   :  { %860 = vmatpush1.bf16.msra.mxu1 %v5323_v16  ;;  %989 = vmatpush1.bf16.msra.mxu0 %v5326_v17 }
 0x216   :  { %939 = vmatprep.subr.bf16.mxu1 %v5331_v18  ;;  %1068 = vmatprep.subr.bf16.mxu0 %v5334_v20 }
 0x218   :  { %4624 = vmatmul.mubr.msk.bf16.vlgmr.msra.gmra.mxu1 %vm294_vm6, %v5933_v5  ;;  %4627 = vmatmul.mubr.msk.bf16.vlgmr.msra.gmra.mxu0 %vm294_vm6, %v5933_v5 }
 0x219   :  { %940 = vmatpush1.bf16.msra.mxu1 %v5329_v21  ;;  %1069 = vmatpush1.bf16.msra.mxu0 %v5332_v22 }
 0x21a   :  { %941 = vmatprep.subr.bf16.mxu1 %v5337_v23  ;;  %1070 = vmatprep.subr.bf16.mxu0 %v5340_v24  ;;  %v283_v24 = vld [vmem:[%s6742_s4] sm:$0xff] }
 0x21b   :  { %963 = vmatprep.mubr.bf16.mxu1 %v5768_v0  ;;  %1092 = vmatprep.mubr.bf16.mxu0 %v5768_v0 }
 0x21d   :  { %942 = vmatpush1.bf16.msra.mxu1 %v5335_v25  ;;  %1071 = vmatpush1.bf16.msra.mxu0 %v5338_v26 }
 0x21e   :  { %943 = vmatprep.subr.bf16.mxu1 %v5343_v28  ;;  %1072 = vmatprep.subr.bf16.mxu0 %v5346_v29  ;;  %v275_v29 = vld [vmem:[%s6741_s3] sm:$0xff] }
 0x221   :  { %944 = vmatpush1.bf16.msra.mxu1 %v5341_v30  ;;  %1073 = vmatpush1.bf16.msra.mxu0 %v5344_v32  ;;  %v279_v30 = vld [vmem:[%s6741_s3 + $0x20] sm:$0xff] }
 0x222   :  { %945 = vmatprep.subr.bf16.mxu1 %v5349_v33  ;;  %1074 = vmatprep.subr.bf16.mxu0 %v5352_v34  ;;  %v287_v32 = vld [vmem:[%s6742_s4 + $0x20] sm:$0xff] }
 0x225   :  { %946 = vmatpush1.bf16.msra.mxu1 %v5347_v35  ;;  %1075 = vmatpush1.bf16.msra.mxu0 %v5350_v36 }
 0x226   :  { %1025 = vmatprep.subr.bf16.mxu1 %v5355_v37  ;;  %1154 = vmatprep.subr.bf16.mxu0 %v5358_v38 }
 0x228   :  { %4626 = vmatmul.mubr.msk.bf16.vlgmr.msra.gmra.mxu1 %vm294_vm6, %v5933_v5  ;;  %4629 = vmatmul.mubr.msk.bf16.vlgmr.msra.gmra.mxu0 %vm294_vm6, %v5933_v5 }
 0x229   :  { %1026 = vmatpush1.bf16.msra.mxu1 %v5353_v39  ;;  %1155 = vmatpush1.bf16.msra.mxu0 %v5356_v40 }
 0x22a   :  { %1027 = vmatprep.subr.bf16.mxu1 %v5361_v41  ;;  %1156 = vmatprep.subr.bf16.mxu0 %v5364_v42 }
 0x22b   :  { %1049 = vmatprep.mubr.bf16.mxu1 %v5768_v0  ;;  %1178 = vmatprep.mubr.bf16.mxu0 %v5768_v0 }
 0x22d   :  { %1028 = vmatpush1.bf16.msra.mxu1 %v5359_v43  ;;  %1157 = vmatpush1.bf16.msra.mxu0 %v5362_v44  ;;  %v288_v43 = vld [vmem:[%s6742_s4 + $0x28] sm:$0xff] }
 0x22e   :  { %1029 = vmatprep.subr.bf16.mxu1 %v5367_v45  ;;  %1158 = vmatprep.subr.bf16.mxu0 %v5370_v46 }
 0x231   :  { %1030 = vmatpush1.bf16.msra.mxu1 %v5365_v47  ;;  %1159 = vmatpush1.bf16.msra.mxu0 %v5368_v48 }
 0x232   :  { %1031 = vmatprep.subr.bf16.mxu1 %v5373_v49  ;;  %1160 = vmatprep.subr.bf16.mxu0 %v5376_v50  ;;  %v284_v49 = vld [vmem:[%s6742_s4 + $0x8] sm:$0xff] }
 0x233   :  { %v280_v50 = vld [vmem:[%s6741_s3 + $0x28] sm:$0xff] }
 0x235   :  { %1032 = vmatpush1.bf16.msra.mxu1 %v5371_v51  ;;  %1161 = vmatpush1.bf16.msra.mxu0 %v5374_v52 }
 0x236   :  { %1111 = vmatprep.subr.bf16.mxu1 %v5379_v53  ;;  %5102 = vmatprep.subr.bf16.mxu0 %v5770_v7  ;;  %v276_v53 = vld [vmem:[%s6741_s3 + $0x8] sm:$0xff] }
 0x238   :  { %4628 = vmatmul.mubr.msk.bf16.vlgmr.msra.gmra.mxu1 %vm294_vm6, %v5933_v5  ;;  %4631 = vmatmul.mubr.msk.bf16.vlgmr.msra.gmra.mxu0 %vm294_vm6, %v5933_v5 }
 0x239   :  { %1112 = vmatpush1.bf16.msra.mxu1 %v5377_v54  ;;  %1135 = vmatprep.mubr.bf16.mxu1 %v5768_v0 }
 0x23a   :  { %1113 = vmatprep.subr.bf16.mxu1 %v5382_v55  ;;  %5104 = vmatprep.mubr.msk.bf16.mxu0 %vm5771_vm7, %v5770_v7 }
 0x23d   :  { %1114 = vmatpush1.bf16.msra.mxu1 %v5380_v56 }
 0x23e   :  { %1115 = vmatprep.subr.bf16.mxu1 %v5385_v57 }
 0x241   :  { %1116 = vmatpush1.bf16.msra.mxu1 %v5383_v58 }
 0x242   :  { %1117 = vmatprep.subr.bf16.mxu1 %v5388_v59 }
 0x245   :  { %1118 = vmatpush1.bf16.msra.mxu1 %v5386_v60 }
 0x246   :  { %1197 = vmatprep.subr.bf16.mxu1 %v5391_v61 }
 0x248   :  { %4630 = vmatmul.mubr.msk.bf16.vlgmr.msra.gmra.mxu1 %vm294_vm6, %v5933_v5 }
 0x249   :  { %1198 = vmatpush1.bf16.msra.mxu1 %v5389_v62  ;;  %1221 = vmatprep.mubr.bf16.mxu1 %v5768_v0 }
 0x24a   :  { %1199 = vmatprep.subr.bf16.mxu1 %v5394_v63 }
 0x24d   :  { %1200 = vmatpush1.bf16.msra.mxu1 %v5392_v1 }
 0x24e   :  { %1201 = vmatprep.subr.bf16.mxu1 %v5397_v2 }
 0x251   :  { %1202 = vmatpush1.bf16.msra.mxu1 %v5395_v3 }
 0x252   :  { %1203 = vmatprep.subr.bf16.mxu1 %v5400_v4 }
 0x255   :  { %1204 = vmatpush1.bf16.msra.mxu1 %v5398_v6 }
 0x256   :  { %5108 = vmatprep.subr.bf16.mxu1 %v5770_v7 }
 0x258   :  { %4632 = vmatmul.mubr.msk.bf16.vlgmr.msra.gmra.mxu1 %vm294_vm6, %v5933_v5 }
 0x259   :  { %5110 = vmatprep.mubr.msk.bf16.mxu1 %vm5771_vm7, %v5770_v7 }
 0x2c8   :  { %v922_v8 = vpop.f32.mrf.mxu0  ;;  %v836_v9 = vpop.f32.mrf.mxu1 }
 0x2c9   :  { %v1236_v47 = vmul.f32 %v836_v9, %v275_v29  ;;  %v1244_v48 = vmul.f32 %v922_v8, %v283_v24 }
 0x2ca   :  { %v924_v10 = vpop.f32.mrf.mxu0  ;;  %v838_v11 = vpop.f32.mrf.mxu1 }
 0x2cb   :  { %v1252_v58 = vadd.f32 %v1244_v48, %v1236_v47  ;;  %v1237_v3 = vmul.f32 %v838_v11, %v276_v53  ;;  %v1245_v4 = vmul.f32 %v924_v10, %v284_v49 }
 0x2cc   :  { %v926_v12 = vpop.f32.mrf.mxu0  ;;  %v840_v13 = vpop.f32.mrf.mxu1 }
 0x2cd   :  { %v1240_v41 = vmul.f32 %v840_v13, %v279_v30  ;;  %v1248_v42 = vmul.f32 %v926_v12, %v287_v32 }
 0x2ce   :  { %v928_v14 = vpop.f32.mrf.mxu0  ;;  %v842_v15 = vpop.f32.mrf.mxu1 }
 0x2cf   :  { %v1256_v54 = vadd.f32 %v1248_v42, %v1240_v41  ;;  %v1241_v61 = vmul.f32 %v842_v15, %v280_v50  ;;  %v1249_v62 = vmul.f32 %v928_v14, %v288_v43 }
 0x2d1   :  { %v1260_v60 = vpack.c.bf16 %v1256_v54, %v1252_v58  ;;  %v1257_v9 = vadd.f32 %v1249_v62, %v1241_v61  ;;  %v262_v62 = vld [vmem:[%s6739_s1] sm:$0x1] }
 0x2d8   :  { %v1008_v5 = vpop.f32.mrf.mxu0  ;;  %v5969_v16 = vpop.f32.mrf.mxu1 }
 0x2d9   :  { %v1264_v35 = vmul.f32 %v1008_v5, %v275_v29  ;;  %v1253_v5 = vadd.f32 %v1245_v4, %v1237_v3  ;;  %v263_v3 = vld [vmem:[%s6740_s2] sm:$0xff] }
 0x2da   :  { %v1010_v17 = vpop.f32.mrf.mxu0  ;;  %v5971_v18 = vpop.f32.mrf.mxu1 }
 0x2db   :  { %v1265_v56 = vmul.f32 %v1010_v17, %v276_v53  ;;  %v1261_v15 = vpack.c.bf16 %v1257_v9, %v1253_v5 }
 0x2dc   :  { %v1012_v20 = vpop.f32.mrf.mxu0  ;;  %v5973_v21 = vpop.f32.mrf.mxu1 }
 0x2dd   :  { %v1268_v36 = vmul.f32 %v1012_v20, %v279_v30  ;;  %v285_v20 = vld [vmem:[%s6742_s4 + $0x10] sm:$0xff] }
 0x2de   :  { %v1014_v22 = vpop.f32.mrf.mxu0  ;;  %v5978_v25 = vpop.f32.mrf.mxu1 }
 0x2df   :  { %v1269_v51 = vmul.f32 %v1014_v22, %v280_v50  ;;  %v278_v50 = vld [vmem:[%s6741_s3 + $0x18] sm:$0xff] }
 0x2e8   :  { %v1094_v23 = vpop.f32.mrf.mxu0  ;;  %v5989_v33 = vpop.f32.mrf.mxu1 }
 0x2e9   :  { %v1272_v28 = vmul.f32 %v1094_v23, %v283_v24  ;;  %v277_v24 = vld [vmem:[%s6741_s3 + $0x10] sm:$0xff] }
 0x2ea   :  { %v1096_v26 = vpop.f32.mrf.mxu0  ;;  %v5994_v44 = vpop.f32.mrf.mxu1 }
 0x2eb   :  { %v1280_v39 = vadd.f32 %v1272_v28, %v1264_v35  ;;  %v1273_v52 = vmul.f32 %v1096_v26, %v284_v49  ;;  %v281_v26 = vld [vmem:[%s6741_s3 + $0x30] sm:$0xff]  ;;  %v1238_v49 = vmul.f32 %v5969_v16, %v277_v24  ;;  %v1239_v16 = vmul.f32 %v5971_v18, %v278_v50  ;;  %v264_v18 = vld [vmem:[%s6740_s2 + $0x8] sm:$0xff] }
 0x2ec   :  { %v1098_v34 = vpop.f32.mrf.mxu0  ;;  %v969_v55 = vpop.f32.mrf.mxu1  ;;  %v289_v28 = vld [vmem:[%s6742_s4 + $0x30] sm:$0xff]  ;;  %v1242_v42 = vmul.f32 %v5973_v21, %v281_v26 }
 0x2ed   :  { %v1276_v37 = vmul.f32 %v1098_v34, %v287_v32  ;;  %v1281_v59 = vadd.f32 %v1273_v52, %v1265_v56 }
 0x2ee   :  { %v1100_v38 = vpop.f32.mrf.mxu0  ;;  %v971_v63 = vpop.f32.mrf.mxu1 }
 0x2ef   :  { %v1284_v40 = vadd.f32 %v1276_v37, %v1268_v36  ;;  %v1277_v46 = vmul.f32 %v1100_v38, %v288_v43  ;;  %v1250_v38 = vmul.f32 %v969_v55, %v289_v28  ;;  %v282_v43 = vld [vmem:[%s6741_s3 + $0x38] sm:$0xff] }
 0x2f1   :  { %v1288_v45 = vpack.c.bf16 %v1284_v40, %v1280_v39  ;;  %v1285_v57 = vadd.f32 %v1277_v46, %v1269_v51  ;;  %v290_v39 = vld [vmem:[%s6742_s4 + $0x38] sm:$0xff]  ;;  %v1258_v21 = vadd.f32 %v1250_v38, %v1242_v42 }
 0x2f2   :  { %v286_v46 = vld [vmem:[%s6742_s4 + $0x18] sm:$0xff]  ;;  %v1251_v55 = vmul.f32 %v971_v63, %v290_v39  ;;  %v4541_v63 = vadd.f32 -1.0, %v262_v62 }
 0x2f3   :  { %5103 = vmatpush3.bf16.xpose.msra.mxu0 %v1288_v45  ;;  %v1289_v2 = vpack.c.bf16 %v1285_v57, %v1281_v59  ;;  %v1246_v45 = vmul.f32 %v5989_v33, %v285_v20  ;;  %v1243_v57 = vmul.f32 %v5978_v25, %v282_v43  ;;  %v1247_v58 = vmul.f32 %v5994_v44, %v286_v46 }
 0x2f4   :  { %5114 = vmatprep.subr.bf16.mxu0 %v5770_v7  ;;  %v269_v25 = vshrl.u32 %v70_v19, 7 }
 0x2f5   :  { %v1254_v53 = vadd.f32 %v1246_v45, %v1238_v49  ;;  %v1259_v59 = vadd.f32 %v1251_v55, %v1243_v57 }
 0x2f6   :  { %v270_v44 = vsub.s32 0, %v269_v25 }
 0x2f7   :  { %v1262_v54 = vpack.c.bf16 %v1258_v21, %v1254_v53 }
 0x2f8   :  { %v1180_v1 = vpop.f32.mrf.mxu0  ;;  %v1051_v6 = vpop.f32.mrf.mxu1 }
 0x2f9   :  { %v1266_v30 = vmul.f32 %v1051_v6, %v277_v24 }
 0x2fa   :  { %v6006_v8 = vpop.f32.mrf.mxu0  ;;  %5105 = vmatmul.mubr.bf16.vlgmr.msra.gmra.mxu0 %v1260_v60  ;;  %v1053_v14 = vpop.f32.mrf.mxu1  ;;  %v1255_v60 = vadd.f32 %v1247_v58, %v1239_v16 }
 0x2fb   :  { %5115 = vmatpush3.bf16.xpose.msra.mxu0 %v1289_v2  ;;  %5116 = vmatprep.mubr.msk.bf16.mxu0 %vm5771_vm7, %v5770_v7  ;;  %v1267_v51 = vmul.f32 %v1053_v14, %v278_v50 }
 0x2fc   :  { %v1184_v12 = vpop.f32.mrf.mxu0  ;;  %5126 = vmatprep.subr.bf16.mxu0 %v5770_v7  ;;  %v1055_v10 = vpop.f32.mrf.mxu1  ;;  %v1263_v61 = vpack.c.bf16 %v1259_v59, %v1255_v60 }
 0x2fd   :  { %v1232_v13 = vpack.c.bf16 %v1184_v12, %v1180_v1  ;;  %v1270_v32 = vmul.f32 %v1055_v10, %v281_v26  ;;  %v266_v1 = vmul.f32 1e+09, %v4541_v63 }
 0x2fe   :  { %v1057_v11 = vpop.f32.mrf.mxu1  ;;  %v6059_v6 = vpop.f32.mrf.mxu0 }
 0x2ff   :  { %5109 = vmatpush3.bf16.msra.mxu1 %v1232_v13  ;;  %v1271_v47 = vmul.f32 %v1057_v11, %v282_v43  ;;  %v271_v2 = vrot.slane %v266_v1, %v270_v44 }
 0x300   :  { %5120 = vmatprep.subr.bf16.mxu1 %v5770_v7 }
 0x301   :  { %v6054_v4 = vadd.f32 %v271_v2, %v263_v3  ;;  %v6061_v12 = vadd.f32 %v271_v2, %v264_v18 }
 0x302   :  { %5117 = vmatmul.mubr.bf16.vlgmr.msra.gmra.mxu0 %v1261_v15 }
 0x303   :  { %5128 = vmatprep.mubr.msk.bf16.mxu0 %vm5771_vm7, %v5770_v7 }
 0x308   :  { %v1137_v17 = vpop.f32.mrf.mxu1 }
 0x309   :  { %v1274_v23 = vmul.f32 %v1137_v17, %v285_v20 }
 0x30a   :  { %v1139_v22 = vpop.f32.mrf.mxu1 }
 0x30b   :  { %v1282_v36 = vadd.f32 %v1274_v23, %v1266_v30  ;;  %v1275_v48 = vmul.f32 %v1139_v22, %v286_v46 }
 0x30c   :  { %v1141_v29 = vpop.f32.mrf.mxu1 }
 0x30d   :  { %v1278_v34 = vmul.f32 %v1141_v29, %v289_v28  ;;  %v1283_v33 = vadd.f32 %v1275_v48, %v1267_v51 }
 0x30e   :  { %v1143_v35 = vpop.f32.mrf.mxu1 }
 0x30f   :  { %v1286_v37 = vadd.f32 %v1278_v34, %v1270_v32  ;;  %v1279_v41 = vmul.f32 %v1143_v35, %v290_v39 }
 0x311   :  { %v1290_v40 = vpack.c.bf16 %v1286_v37, %v1282_v36  ;;  %v1287_v52 = vadd.f32 %v1279_v41, %v1271_v47 }
 0x313   :  { %5127 = vmatpush3.bf16.xpose.msra.mxu0 %v1290_v40  ;;  %v1291_v56 = vpack.c.bf16 %v1287_v52, %v1283_v33 }
 0x314   :  { %5138 = vmatprep.subr.bf16.mxu0 %v5770_v7 }
 0x31a   :  { %5129 = vmatmul.mubr.bf16.vlgmr.msra.gmra.mxu0 %v1262_v54 }
 0x31b   :  { %5139 = vmatpush3.bf16.xpose.msra.mxu0 %v1291_v56  ;;  %5140 = vmatprep.mubr.msk.bf16.mxu0 %vm5771_vm7, %v5770_v7 }
 0x322   :  { %5141 = vmatmul.mubr.bf16.vlgmr.msra.gmra.mxu0 %v1263_v61 }
 0x3ba   :  { %v1326_v9 = vpop.f32.mrf.mxu0 }
 0x3bb   :  { %v1327_v19 = vadd.f32 %v1326_v9, %v6054_v4 }
 0x3bc   :  { %v5106_v13 = vpop.f32.mrf.mxu0 }
 0x3bd   :  { %v1334_v5 = vsel %vm1333_vm8, %v1327_v19, -inf }
 0x3be   :  { %1335 = vmax.xlane.f32.xlu0 %v1334_v5  ;;  %v1329_v14 = vpop.f32.mrf.mxu0 }
 0x3bf   :  { %v1330_v15 = vadd.f32 %v1329_v14, %v6061_v12 }
 0x3c0   :  { %v5107_v10 = vpop.f32.mrf.mxu0 }
 0x3c1   :  { %v1337_v11 = vsel %vm1333_vm8, %v1330_v15, -inf }
 0x3c2   :  { %1338 = vmax.xlane.f32.xlu1 %v1337_v11  ;;  %v1435_v17 = vpop.f32.mrf.mxu0 }
 0x3c3   :  { %v1436_v20 = vadd.f32 %v1435_v17, %v6054_v4 }
 0x3c4   :  { %v5118_v22 = vpop.f32.mrf.mxu0 }
 0x3c5   :  { %v1442_v23 = vsel %vm1333_vm8, %v1436_v20, -inf }
 0x3c6   :  { %1443 = vmax.xlane.f32.xlu1 %v1442_v23  ;;  %v1438_v24 = vpop.f32.mrf.mxu0 }
 0x3c7   :  { %v1439_v26 = vadd.f32 %v1438_v24, %v6061_v12 }
 0x3c8   :  { %v5119_v28 = vpop.f32.mrf.mxu0 }
 0x3c9   :  { %v1445_v29 = vsel %vm1333_vm8, %v1439_v26, -inf }
 0x3ca   :  { %1446 = vmax.xlane.f32.xlu1 %v1445_v29 }
 0x3da   :  { %v1543_v30 = vpop.f32.mrf.mxu0 }
 0x3db   :  { %v1544_v32 = vadd.f32 %v1543_v30, %v6054_v4  ;;  %v5401_v30 = vld [vmem:[%s6748_s10 + $0x78] sm:$0xff]  }
 0x3dc   :  { %v5130_v34 = vpop.f32.mrf.mxu0  ;;  %4972 = vmatprep.subr.bf16.mxu0 %v5401_v30  ;;  %v5424_v30 = vld [vmem:[%s6748_s10 + $0xa0] sm:$0xff]  }
 0x3dd   :  { %v1550_v35 = vsel %vm1333_vm8, %v1544_v32, -inf  ;;  %v5403_v34 = vld [vmem:[%s6748_s10 + $0x70] sm:$0xff]  }
 0x3de   :  { %1551 = vmax.xlane.f32.xlu1 %v1550_v35  ;;  %v1546_v36 = vpop.f32.mrf.mxu0  ;;  %v5404_v35 = vld [vmem:[%s6748_s10 + $0x30] sm:$0xff]  }
 0x3df   :  { %v1547_v37 = vadd.f32 %v1546_v36, %v6061_v12  ;;  %v5405_v36 = vld [vmem:[%s6748_s10 + $0x68] sm:$0xff]  }
 0x3e0   :  { %v5131_v38 = vpop.f32.mrf.mxu0 }
 0x3e1   :  { %v1553_v39 = vsel %vm1333_vm8, %v1547_v37, -inf  ;;  %v5407_v38 = vld [vmem:[%s6748_s10 + $0x60] sm:$0xff]  }
 0x3e2   :  { %1554 = vmax.xlane.f32.xlu1 %v1553_v39  ;;  %v1651_v40 = vpop.f32.mrf.mxu0  ;;  %v5408_v39 = vld [vmem:[%s6748_s10 + $0x20] sm:$0xff]  }
 0x3e3   :  { %v1652_v41 = vadd.f32 %v1651_v40, %v6054_v4 }
 0x3e4   :  { %v5142_v42 = vpop.f32.mrf.mxu0 }
 0x3e5   :  { %v1658_v43 = vsel %vm1333_vm8, %v1652_v41, -inf }
 0x3e6   :  { %1659 = vmax.xlane.f32.xlu1 %v1658_v43  ;;  %v1654_v45 = vpop.f32.mrf.mxu0 }
 0x3e7   :  { %v1655_v46 = vadd.f32 %v1654_v45, %v6061_v12 }
 0x3e8   :  { %v5143_v47 = vpop.f32.mrf.mxu0 }
 0x3e9   :  { %v1661_v48 = vsel %vm1333_vm8, %v1655_v46, -inf  ;;  %v1223_v47 = vpop.f32.mrf.mxu1 }
 0x3ea   :  { %1662 = vmax.xlane.f32.xlu1 %v1661_v48 }
 0x447   :  { %v1336_v49 = vpop.xlane.xlu0 %1335 }
 0x448   :  { %v1340_v50 = vsub.f32 %v1327_v19, %v1336_v49 }
 0x44a   :  { %v1342_v21 = vmul.f32 1.442695, %v1340_v50 }
 0x44b   :  { %v1339_v51 = vpop.xlane.xlu1 %1338 }
 0x44c   :  { %5633 = vpow2.f32 %v1342_v21  ;;  %v1341_v52 = vsub.f32 %v1330_v15, %v1339_v51  ;;  %v1233_v21 = vpack.c.bf16 %v6059_v6, %v6006_v8  ;;  %v1225_v51 = vpop.f32.mrf.mxu1 }
 0x44e   :  { %v1344_v53 = vmul.f32 1.442695, %v1341_v52 }
 0x44f   :  { %v1444_v33 = vpop.xlane.xlu1 %1443 }
 0x450   :  { %5635 = vpow2.f32 %v1344_v53  ;;  %v1448_v54 = vsub.f32 %v1436_v20, %v1444_v33  ;;  %v1227_v33 = vpop.f32.mrf.mxu1 }
 0x452   :  { %v1450_v55 = vmul.f32 1.442695, %v1448_v54 }
 0x453   :  { %v1447_v56 = vpop.xlane.xlu1 %1446 }
 0x454   :  { %5637 = vpow2.f32 %v1450_v55  ;;  %v1449_v57 = vsub.f32 %v1439_v26, %v1447_v56 }
 0x456   :  { %v1452_v58 = vmul.f32 1.442695, %v1449_v57  ;;  %v1234_v57 = vpack.c.bf16 %v1227_v33, %v1223_v47 }
 0x458   :  { %5639 = vpow2.f32 %v1452_v58 }
 0x459   :  { %v6079_v16 = vpop.eup %5633 }
 0x45a   :  { %v1346_v59 = vsel %vm1333_vm8, %v6079_v16, 0.0 }
 0x45b   :  { %1347 = vadd.xlane.f32.xlu1 %v1346_v59 }
 0x45d   :  { %v6083_v60 = vpop.eup %5635 }
 0x45e   :  { %v1349_v61 = vsel %vm1333_vm8, %v6083_v60, 0.0 }
 0x45f   :  { %1350 = vadd.xlane.f32.xlu0 %v1349_v61  ;;  %v1229_v61 = vpop.f32.mrf.mxu1 }
 0x461   :  { %v6087_v62 = vpop.eup %5637 }
 0x462   :  { %v1454_v63 = vsel %vm1333_vm8, %v6087_v62, 0.0 }
 0x463   :  { %1455 = vadd.xlane.f32.xlu1 %v1454_v63 }
 0x465   :  { %v6091_v25 = vpop.eup %5639 }
 0x466   :  { %v1457_v1 = vsel %vm1333_vm8, %v6091_v25, 0.0 }
 0x467   :  { %1458 = vadd.xlane.f32.xlu0 %v1457_v1  ;;  %v1552_v44 = vpop.xlane.xlu1 %1551  ;;  %v1235_v1 = vpack.c.bf16 %v1229_v61, %v1225_v51 }
 0x468   :  { %v1556_v2 = vsub.f32 %v1544_v32, %v1552_v44  ;;  %v5402_v32 = vld [vmem:[%s6748_s10 + $0x38] sm:$0xff]  }
 0x469   :  { %4973 = vmatpush3.bf16.msra.mxu0 %v5402_v32  ;;  %v5425_v32 = vld [vmem:[%s6748_s10 + $0xd8] sm:$0xff]  }
 0x46a   :  { %v1558_v3 = vmul.f32 1.442695, %v1556_v2  ;;  %4974 = vmatprep.subr.bf16.mxu0 %v5403_v34  ;;  %v5426_v34 = vld [vmem:[%s6748_s10 + $0x98] sm:$0xff]  }
 0x46b   :  { %v1555_v18 = vpop.xlane.xlu1 %1554 }
 0x46c   :  { %5641 = vpow2.f32 %v1558_v3  ;;  %v1557_v9 = vsub.f32 %v1547_v37, %v1555_v18  ;;  %v5406_v37 = vld [vmem:[%s6748_s10 + $0x28] sm:$0xff]  }
 0x46d   :  { %4975 = vmatpush3.bf16.msra.mxu0 %v5404_v35  ;;  %v5427_v35 = vld [vmem:[%s6748_s10 + $0xd0] sm:$0xff]  }
 0x46e   :  { %v1560_v19 = vmul.f32 1.442695, %v1557_v9  ;;  %4976 = vmatprep.subr.bf16.mxu0 %v5405_v36  ;;  %v5428_v36 = vld [vmem:[%s6748_s10 + $0x90] sm:$0xff]  }
 0x46f   :  { %v1660_v13 = vpop.xlane.xlu1 %1659 }
 0x470   :  { %5643 = vpow2.f32 %v1560_v19  ;;  %v1664_v5 = vsub.f32 %v1652_v41, %v1660_v13  ;;  %v5409_v19 = vld [vmem:[%s6748_s10 + $0x58] sm:$0xff]  }
 0x471   :  { %4977 = vmatpush3.bf16.msra.mxu0 %v5406_v37  ;;  %v5410_v13 = vld [vmem:[%s6748_s10 + $0x18] sm:$0xff]   ;;  %v5429_v37 = vld [vmem:[%s6748_s10 + $0xc8] sm:$0xff]  }
 0x472   :  { %v1666_v14 = vmul.f32 1.442695, %v1664_v5  ;;  %4978 = vmatprep.subr.bf16.mxu0 %v5407_v38  ;;  %v5411_v5 = vld [vmem:[%s6748_s10 + $0x50] sm:$0xff]   ;;  %v5430_v38 = vld [vmem:[%s6748_s10 + $0x88] sm:$0xff]  }
 0x473   :  { %v1663_v15 = vpop.xlane.xlu1 %1662 }
 0x474   :  { %5645 = vpow2.f32 %v1666_v14  ;;  %v1665_v10 = vsub.f32 %v1655_v46, %v1663_v15  ;;  %v5412_v14 = vld [vmem:[%s6748_s10 + $0x10] sm:$0xff]   ;;  %v5413_v15 = vld [vmem:[%s6748_s10 + $0x48] sm:$0xff]  }
 0x475   :  { %4979 = vmatpush3.bf16.msra.mxu0 %v5408_v39  ;;  %v5431_v39 = vld [vmem:[%s6748_s10 + $0xc0] sm:$0xff]  }
 0x476   :  { %v1668_v11 = vmul.f32 1.442695, %v1665_v10  ;;  %4980 = vmatprep.subr.bf16.mxu0 %v5409_v19  ;;  %v5414_v10 = vld [vmem:[%s6748_s10 + $0x8] sm:$0xff]  }
 0x478   :  { %5647 = vpow2.f32 %v1668_v11  ;;  %v5415_v11 = vld [vmem:[%s6748_s10 + $0x40] sm:$0xff]  }
 0x479   :  { %v6095_v17 = vpop.eup %5641  ;;  %4981 = vmatpush3.bf16.msra.mxu0 %v5410_v13 }
 0x47a   :  { %v1562_v20 = vsel %vm1333_vm8, %v6095_v17, 0.0  ;;  %4982 = vmatprep.subr.bf16.mxu0 %v5411_v5 }
 0x47b   :  { %1563 = vadd.xlane.f32.xlu1 %v1562_v20  ;;  %v5417_v20 = vld [vmem:[%s6748_s10 + $0xf8] sm:$0xff]  }
 0x47d   :  { %v6099_v22 = vpop.eup %5643  ;;  %4983 = vmatpush3.bf16.msra.mxu0 %v5412_v14 }
 0x47e   :  { %v1565_v23 = vsel %vm1333_vm8, %v6099_v22, 0.0  ;;  %4984 = vmatprep.subr.bf16.mxu0 %v5413_v15 }
 0x47f   :  { %1566 = vadd.xlane.f32.xlu0 %v1565_v23  ;;  %v5419_v23 = vld [vmem:[%s6748_s10 + $0xf0] sm:$0xff]  }
 0x481   :  { %v6103_v24 = vpop.eup %5645  ;;  %4985 = vmatpush3.bf16.msra.mxu0 %v5414_v10 }
 0x482   :  { %v1670_v26 = vsel %vm1333_vm8, %v6103_v24, 0.0  ;;  %4986 = vmatprep.subr.bf16.mxu0 %v5415_v11  ;;  %v5433_v11 = vld [vmem:[%s6749_s11 + $0x30] ss:$8 sps:$4 sm:$0xff]  }
 0x483   :  { %1671 = vadd.xlane.f32.xlu1 %v1670_v26  ;;  %v5421_v26 = vld [vmem:[%s6748_s10 + $0xe8] sm:$0xff]  }
 0x485   :  { %v6107_v28 = vpop.eup %5647 }
 0x486   :  { %v1673_v29 = vsel %vm1333_vm8, %v6107_v28, 0.0 }
 0x487   :  { %1674 = vadd.xlane.f32.xlu0 %v1673_v29  ;;  %v5423_v29 = vld [vmem:[%s6748_s10 + $0xe0] sm:$0xff]  }
 0x4e4   :  { %v1348_v40 = vpop.xlane.xlu1 %1347 }
 0x4e5   :  { %5649 = vrcp.f32 %v1348_v40  ;;  %v5432_v40 = vld [vmem:[%s6748_s10 + $0x80] sm:$0xff]  }
 0x4e8   :  { %v1351_v41 = vpop.xlane.xlu0 %1350 }
 0x4e9   :  { %5651 = vrcp.f32 %v1351_v41 }
 0x4ec   :  { %v1456_v42 = vpop.xlane.xlu1 %1455 }
 0x4ed   :  { %5653 = vrcp.f32 %v1456_v42 }
 0x4f0   :  { %v1459_v43 = vpop.xlane.xlu0 %1458 }
 0x4f1   :  { %5655 = vrcp.f32 %v1459_v43 }
 0x4f2   :  { %v5650_v45 = vpop.eup %5649 }
 0x4f3   :  { %v1354_v48 = vmul.f32 %v5650_v45, %v6079_v16 }
 0x4f6   :  { %v5652_v46 = vpop.eup %5651 }
 0x4f7   :  { %v1355_v49 = vmul.f32 %v5652_v46, %v6083_v60 }
 0x4f9   :  { %v1356_v50 = vpack.c.bf16 %v1355_v49, %v1354_v48 }
 0x4fa   :  { %v5654_v52 = vpop.eup %5653 }
 0x4fb   :  { %5111 = vmatmul.mubr.msk.bf16.vlgmr.msra.gmra.mxu1 %vm1333_vm8, %v1356_v50  ;;  %v1462_v54 = vmul.f32 %v5654_v52, %v6087_v62 }
 0x4fc   :  { %5121 = vmatpush3.bf16.msra.mxu1 %v1233_v21  ;;  %5122 = vmatprep.mubr.msk.bf16.mxu1 %vm5771_vm7, %v5770_v7 }
 0x4fd   :  { %5132 = vmatprep.subr.bf16.mxu1 %v5770_v7 }
 0x4fe   :  { %v5656_v53 = vpop.eup %5655 }
 0x4ff   :  { %v1463_v55 = vmul.f32 %v5656_v53, %v6091_v25 }
 0x501   :  { %v1464_v56 = vpack.c.bf16 %v1463_v55, %v1462_v54 }
 0x503   :  { %5123 = vmatmul.mubr.msk.bf16.vlgmr.msra.gmra.mxu1 %vm1333_vm8, %v1464_v56 }
 0x504   :  { %5133 = vmatpush3.bf16.msra.mxu1 %v1234_v57  ;;  %v1564_v8 = vpop.xlane.xlu1 %1563  ;;  %5134 = vmatprep.mubr.msk.bf16.mxu1 %vm5771_vm7, %v5770_v7 }
 0x505   :  { %5144 = vmatprep.subr.bf16.mxu1 %v5770_v7  ;;  %5657 = vrcp.f32 %v1564_v8 }
 0x508   :  { %v1567_v6 = vpop.xlane.xlu0 %1566 }
 0x509   :  { %5659 = vrcp.f32 %v1567_v6 }
 0x50c   :  { %v1672_v58 = vpop.xlane.xlu1 %1671 }
 0x50d   :  { %5661 = vrcp.f32 %v1672_v58 }
 0x510   :  { %v1675_v16 = vpop.xlane.xlu0 %1674 }
 0x511   :  { %5663 = vrcp.f32 %v1675_v16 }
 0x512   :  { %v5658_v59 = vpop.eup %5657 }
 0x513   :  { %v1570_v62 = vmul.f32 %v5658_v59, %v6095_v17  ;;  %v5416_v17 = vld [vmem:[%s6748_s10] sm:$0xff]  }
 0x514   :  { %4987 = vmatpush3.bf16.msra.mxu0 %v5416_v17  ;;  %v5436_v17 = vld [vmem:[%s6749_s11 + $0x20] ss:$8 sps:$4 sm:$0xff]  }
 0x516   :  { %v5660_v60 = vpop.eup %5659 }
 0x517   :  { %v1571_v63 = vmul.f32 %v5660_v60, %v6099_v22  ;;  %v5418_v22 = vld [vmem:[%s6748_s10 + $0xb8] sm:$0xff]  }
 0x519   :  { %v1572_v25 = vpack.c.bf16 %v1571_v63, %v1570_v62 }
 0x51a   :  { %v5662_v44 = vpop.eup %5661 }
 0x51b   :  { %5135 = vmatmul.mubr.msk.bf16.vlgmr.msra.gmra.mxu1 %vm1333_vm8, %v1572_v25  ;;  %v1678_v3 = vmul.f32 %v5662_v44, %v6103_v24  ;;  %v5420_v24 = vld [vmem:[%s6748_s10 + $0xb0] sm:$0xff]  }
 0x51c   :  { %5145 = vmatpush3.bf16.msra.mxu1 %v1235_v1  ;;  %5146 = vmatprep.mubr.msk.bf16.mxu1 %vm5771_vm7, %v5770_v7 }
 0x51d   :  { %4994 = vmatprep.subr.bf16.mxu1 %v5417_v20  ;;  %v5441_v20 = vld [vmem:[%s6749_s11 + $0x14] ss:$8 sps:$4 sm:$0xff]  }
 0x51e   :  { %v5664_v2 = vpop.eup %5663 }
 0x51f   :  { %v1679_v18 = vmul.f32 %v5664_v2, %v6107_v28  ;;  %v5422_v28 = vld [vmem:[%s6748_s10 + $0xa8] sm:$0xff]  }
 0x521   :  { %v1680_v9 = vpack.c.bf16 %v1679_v18, %v1678_v3 }
 0x523   :  { %5147 = vmatmul.mubr.msk.bf16.vlgmr.msra.gmra.mxu1 %vm1333_vm8, %v1680_v9 }
 0x524   :  { %4995 = vmatpush3.bf16.msra.mxu1 %v5418_v22  ;;  %v5439_v22 = vld [vmem:[%s6749_s11 + $0x10] ss:$8 sps:$4 sm:$0xff]  }
 0x525   :  { %4996 = vmatprep.subr.bf16.mxu1 %v5419_v23  ;;  %v5442_v23 = vld [vmem:[%s6749_s11] ss:$8 sps:$4 sm:$0xff]  }
 0x528   :  { %4997 = vmatpush3.bf16.msra.mxu1 %v5420_v24  ;;  %v5444_v24 = vld [vmem:[%s6749_s11 + $0x4] ss:$8 sps:$4 sm:$0xff]  }
 0x529   :  { %4998 = vmatprep.subr.bf16.mxu1 %v5421_v26 }
 0x52c   :  { %4999 = vmatpush3.bf16.msra.mxu1 %v5422_v28 }
 0x52d   :  { %5000 = vmatprep.subr.bf16.mxu1 %v5423_v29 }
 0x530   :  { %5001 = vmatpush3.bf16.msra.mxu1 %v5424_v30 }
 0x531   :  { %5002 = vmatprep.subr.bf16.mxu1 %v5425_v32 }
 0x534   :  { %5003 = vmatpush3.bf16.msra.mxu1 %v5426_v34 }
 0x535   :  { %5004 = vmatprep.subr.bf16.mxu1 %v5427_v35 }
 0x538   :  { %5005 = vmatpush3.bf16.msra.mxu1 %v5428_v36 }
 0x539   :  { %5006 = vmatprep.subr.bf16.mxu1 %v5429_v37 }
 0x53c   :  { %5007 = vmatpush3.bf16.msra.mxu1 %v5430_v38  ;;  %v4669_v38 = vld [vmem:[%s6746_s8] ss:$0 sm:$0xff] }
 0x53d   :  { %5008 = vmatprep.subr.bf16.mxu1 %v5431_v39 }
 0x540   :  { %5009 = vmatpush3.bf16.msra.mxu1 %v5432_v40 }
 0x541   :  { %5150 = vmatprep.subr.bf16.mxu1 %v5770_v7 }
 0x5bb   :  { %v1394_v41 = vpop.f32.mrf.mxu1 }
 0x5bd   :  { %v5112_v42 = vpop.f32.mrf.mxu1 }
 0x5bf   :  { %v1397_v43 = vpop.f32.mrf.mxu1 }
 0x5c0   :  { %v1725_v50 = vpack.c.bf16 %v1397_v43, %v1394_v41  ;;  %v5445_v43 = vld [vmem:[%s6750_s12 + $0x38] sm:$0xff]  }
 0x5c1   :  { %v5113_v45 = vpop.f32.mrf.mxu1 }
 0x5c2   :  { %v5446_v45 = vld [vmem:[%s6750_s12 + $0x30] sm:$0xff]  }
 0x5c3   :  { %v1502_v46 = vpop.f32.mrf.mxu1 }
 0x5c5   :  { %v5124_v47 = vpop.f32.mrf.mxu1 }
 0x5c6   :  { %v5448_v47 = vld [vmem:[%s6750_s12 + $0x20] sm:$0xff]  }
 0x5c7   :  { %v1505_v48 = vpop.f32.mrf.mxu1 }
 0x5c8   :  { %v1726_v49 = vpack.c.bf16 %v1505_v48, %v1502_v46  ;;  %v5447_v46 = vld [vmem:[%s6750_s12 + $0x28] sm:$0xff]   ;;  %v5449_v48 = vld [vmem:[%s6750_s12 + $0x18] sm:$0xff]  }
 0x5c9   :  { %v5125_v21 = vpop.f32.mrf.mxu1 }
 0x5ca   :  { %2017 = vmatprep.mubr.bf16.mxu0 %v1726_v49  ;;  %v5450_v49 = vld [vmem:[%s6750_s12 + $0x10] sm:$0xff]   ;;  %v5452_v21 = vld [vmem:[%s6750_s12] sm:$0xff]  }
 0x5cb   :  { %2018 = vmatmul.mubr.bf16.vlgmr.msra.gmra.mxu0 %v1725_v50  ;;  %v5451_v50 = vld [vmem:[%s6750_s12 + $0x8] sm:$0xff]  }
 0x5cc   :  { %2178 = vmatprep.mubr.bf16.mxu0 %v5768_v0 }
 0x5db   :  { %v1610_v51 = vpop.f32.mrf.mxu1 }
 0x5dd   :  { %v5136_v52 = vpop.f32.mrf.mxu1 }
 0x5df   :  { %v1613_v53 = vpop.f32.mrf.mxu1 }
 0x5e0   :  { %v1727_v8 = vpack.c.bf16 %v1613_v53, %v1610_v51 }
 0x5e1   :  { %v5137_v33 = vpop.f32.mrf.mxu1 }
 0x5e3   :  { %v1718_v54 = vpop.f32.mrf.mxu1 }
 0x5e5   :  { %v5148_v55 = vpop.f32.mrf.mxu1 }
 0x5e7   :  { %v1721_v56 = vpop.f32.mrf.mxu1 }
 0x5e8   :  { %v1728_v57 = vpack.c.bf16 %v1721_v56, %v1718_v54 }
 0x5e9   :  { %v5149_v6 = vpop.f32.mrf.mxu1 }
 0x5ea   :  { %2058 = vmatprep.mubr.bf16.mxu1 %v1728_v57 }
 0x5eb   :  { %2059 = vmatmul.mubr.bf16.vlgmr.msra.gmra.mxu1 %v1727_v8 }
 0x5ec   :  { %5166 = vmatprep.mubr.msk.bf16.mxu1 %vm5771_vm7, %v5770_v7  ;;  %5151 = vmatpush3.bf16.msra.mxu1 %v5445_v43 }
 0x5ed   :  { %5152 = vmatprep.subr.bf16.mxu1 %v5770_v7 }
 0x5f0   :  { %5153 = vmatpush3.bf16.msra.mxu1 %v5446_v45 }
 0x5f1   :  { %5154 = vmatprep.subr.bf16.mxu1 %v5770_v7 }
 0x5f4   :  { %5155 = vmatpush3.bf16.msra.mxu1 %v5447_v46  ;;  %v4690_v46 = vld [vmem:[%s6745_s7 + $0x1] ss:$0 sm:$0xff] }
 0x5f5   :  { %5156 = vmatprep.subr.bf16.mxu1 %v5770_v7 }
 0x5f8   :  { %5157 = vmatpush3.bf16.msra.mxu1 %v5448_v47 }
 0x5f9   :  { %5158 = vmatprep.subr.bf16.mxu1 %v5770_v7 }
 0x5fc   :  { %5159 = vmatpush3.bf16.msra.mxu1 %v5449_v48 }
 0x5fd   :  { %5160 = vmatprep.subr.bf16.mxu1 %v5770_v7 }
 0x600   :  { %5161 = vmatpush3.bf16.msra.mxu1 %v5450_v49 }
 0x601   :  { %5162 = vmatprep.subr.bf16.mxu1 %v5770_v7 }
 0x604   :  { %5163 = vmatpush3.bf16.msra.mxu1 %v5451_v50  ;;  %v5477_v50 = vld [vmem:[#allocation2 + $0x468] ss:$80 sps:$4 sm:$0xff]  }
 0x605   :  { %5164 = vmatprep.subr.bf16.mxu1 %v5770_v7 }
 0x608   :  { %5165 = vmatpush3.bf16.msra.mxu1 %v5452_v21  ;;  %v5480_v21 = vld [vmem:[#allocation2 + $0x480] ss:$80 sps:$4 sm:$0xff]  }
 0x68b   :  { %v4988_v58 = vpop.f32.mrf.mxu0 }
 0x68d   :  { %v4989_v16 = vpop.f32.mrf.mxu0 }
 0x68e   :  { %v4990_v62 = vadd.f32 %v4989_v16, %v4988_v58 }
 0x68f   :  { %v4991_v59 = vpop.f32.mrf.mxu0 }
 0x691   :  { %v4992_v25 = vpop.f32.mrf.mxu0 }
 0x692   :  { %v4993_v3 = vadd.f32 %v4992_v25, %v4991_v59 }
 0x6ab   :  { %v5010_v60 = vpop.f32.mrf.mxu1 }
 0x6ad   :  { %v5011_v61 = vpop.f32.mrf.mxu1 }
 0x6ae   :  { %v5012_v63 = vadd.f32 %v5011_v61, %v5010_v60 }
 0x6af   :  { %v5013_v1 = vpop.f32.mrf.mxu1 }
 0x6b0   :  { %v2061_v44 = vadd.f32 %v5012_v63, %v4990_v62 }
 0x6b1   :  { %v5014_v2 = vpop.f32.mrf.mxu1 }
 0x6b2   :  { %v6234_v18 = vadd.f32 %v5918_v27, %v2061_v44  ;;  %v5015_v9 = vadd.f32 %v5014_v2, %v5013_v1  ;;  %v5435_v27 = vld [vmem:[%s6749_s11 + $0x34] ss:$8 sps:$4 sm:$0xff]  }
 0x6b3   :  { %2154 = vmatprep.subr.bf16.mxu0 %v5435_v27  ;;  %v5453_v27 = vld [vmem:[#allocation2 + $0x460] ss:$80 sps:$4 sm:$0xff]  }
 0x6b4   :  { %v2064_v19 = vadd.f32 %v5015_v9, %v4993_v3  ;;  %v2070_v13 = vmul.f32 %v6234_v18, %v6234_v18  ;;  %2155 = vmatpush1.bf16.msra.mxu0 %v5433_v11  ;;  %v5456_v11 = vld [vmem:[#allocation2 + $0x470] ss:$80 sps:$4 sm:$0xff]  }
 0x6b6   :  { %v6239_v5 = vadd.f32 %v5922_v31, %v2064_v19  ;;  %v2072_v14 = vsel %vm294_vm6, %v2070_v13, 0.0  ;;  %v5438_v31 = vld [vmem:[%s6749_s11 + $0x24] ss:$8 sps:$4 sm:$0xff]  }
 0x6b7   :  { %2073 = vadd.xlane.f32.xlu1 %v2072_v14  ;;  %2156 = vmatprep.subr.bf16.mxu0 %v5438_v31  ;;  %v5464_v31 = vld [vmem:[#allocation2 + $0x3d4] ss:$80 sps:$4 sm:$0xff]  }
 0x6b8   :  { %v2071_v15 = vmul.f32 %v6239_v5, %v6239_v5  ;;  %2157 = vmatpush1.bf16.msra.mxu0 %v5436_v17  ;;  %v5459_v17 = vld [vmem:[#allocation2 + $0x3c0] ss:$80 sps:$4 sm:$0xff]  }
 0x6b9   :  { %2158 = vmatprep.subr.bf16.mxu0 %v5441_v20  ;;  %v5462_v20 = vld [vmem:[#allocation2 + $0x3d0] ss:$80 sps:$4 sm:$0xff]  }
 0x6ba   :  { %v2075_v10 = vsel %vm294_vm6, %v2071_v15, 0.0 }
 0x6bb   :  { %2076 = vadd.xlane.f32.xlu0 %v2075_v10  ;;  %v5458_v10 = vld [vmem:[#allocation2 + $0x474] ss:$80 sps:$4 sm:$0xff]  }
 0x6bc   :  { %2159 = vmatpush1.bf16.msra.mxu0 %v5439_v22  ;;  %2918 = vmatprep.subr.bf16.mxu1 %v5458_v10  ;;  %v5467_v22 = vld [vmem:[#allocation2 + $0x324] ss:$80 sps:$4 sm:$0xff]  }
 0x6bd   :  { %2160 = vmatprep.subr.bf16.mxu0 %v5444_v24  ;;  %v5465_v24 = vld [vmem:[#allocation2 + $0x320] ss:$80 sps:$4 sm:$0xff]   ;;  %v5524_v10 = vld [vmem:[#allocation2 + $0x2b4] ss:$80 sps:$4 sm:$0xff]  }
 0x6c0   :  { %2161 = vmatpush1.bf16.msra.mxu0 %v5442_v23  ;;  %v5470_v23 = vld [vmem:[#allocation2 + $0x334] ss:$80 sps:$4 sm:$0xff]  }
 0x740   :  { %v2074_v26 = vpop.xlane.xlu1 %2073 }
 0x741   :  { %v2078_v28 = vmul.f32 0.015625, %v2074_v26  ;;  %v5468_v26 = vld [vmem:[#allocation2 + $0x330] ss:$80 sps:$4 sm:$0xff]  }
 0x743   :  { %v2080_v29 = vadd.f32 1e-06, %v2078_v28  ;;  %v5473_v28 = vld [vmem:[#allocation2 + $0x284] ss:$80 sps:$4 sm:$0xff]  }
 0x744   :  { %v2077_v30 = vpop.xlane.xlu0 %2076 }
 0x745   :  { %5665 = vrsqrt.f32 %v2080_v29  ;;  %v2079_v32 = vmul.f32 0.015625, %v2077_v30  ;;  %v5476_v29 = vld [vmem:[#allocation2 + $0x294] ss:$80 sps:$4 sm:$0xff]   ;;  %v5471_v30 = vld [vmem:[#allocation2 + $0x280] ss:$80 sps:$4 sm:$0xff]  }
 0x747   :  { %v2081_v34 = vadd.f32 1e-06, %v2079_v32  ;;  %v5474_v32 = vld [vmem:[#allocation2 + $0x290] ss:$80 sps:$4 sm:$0xff]  }
 0x749   :  { %5667 = vrsqrt.f32 %v2081_v34  ;;  %v5479_v34 = vld [vmem:[#allocation2 + $0x46c] ss:$80 sps:$4 sm:$0xff]  }
 0x752   :  { %v5666_v35 = vpop.eup %5665 }
 0x753   :  { %v2084_v36 = vmul.f32 %v5666_v35, %v6234_v18  ;;  %v5482_v35 = vld [vmem:[#allocation2 + $0x484] ss:$80 sps:$4 sm:$0xff]  }
 0x755   :  { %v2092_v40 = vmul.f32 %v4669_v38, %v2084_v36 }
 0x756   :  { %v5668_v37 = vpop.eup %5667 }
 0x757   :  { %v2085_v39 = vmul.f32 %v5668_v37, %v6239_v5 }
 0x759   :  { %v2093_v41 = vmul.f32 %v4669_v38, %v2085_v39 }
 0x75b   :  { %v2094_v42 = vpack.c.bf16 %v2093_v41, %v2092_v40 }
 0x75d   :  { %4678 = vmatmul.mubr.msk.bf16.vlgmr.msra.gmra.mxu0 %vm294_vm6, %v2094_v42 }
 0x75e   :  { %2856 = vmatprep.mubr.bf16.mxu0 %v5768_v0 }
 0x81d   :  { %v2180_v51 = vpop.f32.mrf.mxu0 }
 0x81e   :  { %v4679_v52 = vmul.f32 -1.442695, %v2180_v51 }
 0x81f   :  { %v2182_v53 = vpop.f32.mrf.mxu0 }
 0x820   :  { %5669 = vpow2.f32 %v4679_v52  ;;  %v5485_v52 = vld [vmem:[#allocation2 + $0x3cc] ss:$80 sps:$4 sm:$0xff]  }
 0x821   :  { %v2184_v33 = vpop.f32.mrf.mxu0 }
 0x822   :  { %v4680_v54 = vmul.f32 -1.442695, %v2184_v33 }
 0x823   :  { %v2186_v60 = vpop.f32.mrf.mxu0 }
 0x824   :  { %5671 = vpow2.f32 %v4680_v54  ;;  %v5486_v54 = vld [vmem:[#allocation2 + $0x3e0] ss:$80 sps:$4 sm:$0xff]  }
 0x82d   :  { %v5670_v55 = vpop.eup %5669 }
 0x82e   :  { %v2195_v56 = vadd.f32 1.0, %v5670_v55  ;;  %v5491_v55 = vld [vmem:[#allocation2 + $0x32c] ss:$80 sps:$4 sm:$0xff]  }
 0x830   :  { %5673 = vrcp.f32 %v2195_v56  ;;  %v5494_v56 = vld [vmem:[#allocation2 + $0x344] ss:$80 sps:$4 sm:$0xff]  }
 0x831   :  { %v5672_v57 = vpop.eup %5671 }
 0x832   :  { %v2196_v8 = vadd.f32 1.0, %v5672_v57  ;;  %v5489_v57 = vld [vmem:[#allocation2 + $0x328] ss:$80 sps:$4 sm:$0xff]  }
 0x834   :  { %5675 = vrcp.f32 %v2196_v8  ;;  %v5492_v8 = vld [vmem:[#allocation2 + $0x340] ss:$80 sps:$4 sm:$0xff]  }
 0x83d   :  { %v5674_v6 = vpop.eup %5673 }
 0x83e   :  { %v2201_v58 = vmul.f32 %v5674_v6, %v2180_v51  ;;  %v5497_v6 = vld [vmem:[#allocation2 + $0x28c] ss:$80 sps:$4 sm:$0xff]  }
 0x840   :  { %v2203_v61 = vmul.f32 %v2201_v58, %v2182_v53  ;;  %v5488_v53 = vld [vmem:[#allocation2 + $0x3e4] ss:$80 sps:$4 sm:$0xff]  }
 0x841   :  { %v5676_v16 = vpop.eup %5675  ;;  %v5500_v58 = vld [vmem:[#allocation2 + $0x2a4] ss:$80 sps:$4 sm:$0xff]  }
 0x842   :  { %v2202_v59 = vmul.f32 %v5676_v16, %v2184_v33  ;;  %v5483_v33 = vld [vmem:[#allocation2 + $0x3c8] ss:$80 sps:$4 sm:$0xff]  }
 0x843   :  { %v5495_v16 = vld [vmem:[#allocation2 + $0x288] ss:$80 sps:$4 sm:$0xff]  }
 0x844   :  { %v2204_v62 = vmul.f32 %v2202_v59, %v2186_v60  ;;  %v5498_v59 = vld [vmem:[#allocation2 + $0x2a0] ss:$80 sps:$4 sm:$0xff]   ;;  %v5503_v60 = vld [vmem:[#allocation2 + $0x47c] ss:$80 sps:$4 sm:$0xff]  }
 0x846   :  { %v2205_v63 = vpack.c.bf16 %v2204_v62, %v2203_v61  ;;  %v5506_v61 = vld [vmem:[#allocation2 + $0x494] ss:$80 sps:$4 sm:$0xff]   ;;  %v5501_v62 = vld [vmem:[#allocation2 + $0x478] ss:$80 sps:$4 sm:$0xff]  }
 0x848   :  { %5167 = vmatmul.mubr.bf16.vlgmr.msra.gmra.mxu1 %v2205_v63  ;;  %v5504_v63 = vld [vmem:[#allocation2 + $0x490] ss:$80 sps:$4 sm:$0xff]  }
 0x849   :  { %2942 = vmatprep.mubr.bf16.mxu1 %v5768_v0  ;;  %2919 = vmatpush1.bf16.msra.mxu1 %v5456_v11  ;;  %v5522_v11 = vld [vmem:[#allocation2 + $0x2b0] ss:$80 sps:$4 sm:$0xff]  }
 0x84a   :  { %2920 = vmatprep.subr.bf16.mxu1 %v5464_v31  ;;  %v5530_v31 = vld [vmem:[#allocation2 + $0x4a4] ss:$80 sps:$4 sm:$0xff]  }
 0x84d   :  { %2921 = vmatpush1.bf16.msra.mxu1 %v5462_v20  ;;  %v5528_v20 = vld [vmem:[#allocation2 + $0x4a0] ss:$80 sps:$4 sm:$0xff]  }
 0x84e   :  { %2922 = vmatprep.subr.bf16.mxu1 %v5470_v23  ;;  %v5536_v23 = vld [vmem:[#allocation2 + $0x404] ss:$80 sps:$4 sm:$0xff]  }
 0x851   :  { %2923 = vmatpush1.bf16.msra.mxu1 %v5468_v26  ;;  %v5534_v26 = vld [vmem:[#allocation2 + $0x400] ss:$80 sps:$4 sm:$0xff]  }
 0x852   :  { %2924 = vmatprep.subr.bf16.mxu1 %v5476_v29  ;;  %v5542_v29 = vld [vmem:[#allocation2 + $0x364] ss:$80 sps:$4 sm:$0xff]  }
 0x855   :  { %2925 = vmatpush1.bf16.msra.mxu1 %v5474_v32  ;;  %v5540_v32 = vld [vmem:[#allocation2 + $0x360] ss:$80 sps:$4 sm:$0xff]  }
 0x856   :  { %3004 = vmatprep.subr.bf16.mxu1 %v5482_v35  ;;  %v5548_v35 = vld [vmem:[#allocation2 + $0x2c4] ss:$80 sps:$4 sm:$0xff]  }
 0x908   :  { %v2304_v25 = vpop.f32.mrf.mxu1 }
 0x909   :  { %v6309_v1 = vadd.f32 %v2304_v25, %v6234_v18  ;;  %v5455_v18 = vld [vmem:[#allocation2 + $0x464] ss:$80 sps:$4 sm:$0xff]   ;;  %v5509_v25 = vld [vmem:[#allocation2 + $0x3dc] ss:$80 sps:$4 sm:$0xff]  }
 0x90a   :  { %v5168_v44 = vpop.f32.mrf.mxu1  ;;  %2832 = vmatprep.subr.bf16.mxu0 %v5455_v18  ;;  %v5521_v18 = vld [vmem:[#allocation2 + $0x29c] ss:$80 sps:$4 sm:$0xff]  }
 0x90b   :  { %v2315_v2 = vmul.f32 %v6309_v1, %v6309_v1  ;;  %2833 = vmatpush1.bf16.msra.mxu0 %v5453_v27  ;;  %v5512_v44 = vld [vmem:[#allocation2 + $0x3f4] ss:$80 sps:$4 sm:$0xff]   ;;  %v5519_v27 = vld [vmem:[#allocation2 + $0x298] ss:$80 sps:$4 sm:$0xff]  }
 0x90c   :  { %v2307_v3 = vpop.f32.mrf.mxu1 }
 0x90d   :  { %v6314_v9 = vadd.f32 %v2307_v3, %v6239_v5  ;;  %v2317_v19 = vsel %vm294_vm6, %v2315_v2, 0.0  ;;  %v5461_v5 = vld [vmem:[#allocation2 + $0x3c4] ss:$80 sps:$4 sm:$0xff]   ;;  %v5507_v2 = vld [vmem:[#allocation2 + $0x3d8] ss:$80 sps:$4 sm:$0xff]  }
 0x90e   :  { %2318 = vadd.xlane.f32.xlu1 %v2317_v19  ;;  %v5169_v13 = vpop.f32.mrf.mxu1  ;;  %2834 = vmatprep.subr.bf16.mxu0 %v5461_v5  ;;  %v5510_v3 = vld [vmem:[#allocation2 + $0x3f0] ss:$80 sps:$4 sm:$0xff]   ;;  %v5515_v19 = vld [vmem:[#allocation2 + $0x33c] ss:$80 sps:$4 sm:$0xff]  }
 0x90f   :  { %v2316_v14 = vmul.f32 %v6314_v9, %v6314_v9  ;;  %2835 = vmatpush1.bf16.msra.mxu0 %v5459_v17  ;;  %v5518_v13 = vld [vmem:[#allocation2 + $0x354] ss:$80 sps:$4 sm:$0xff]   ;;  %v5527_v5 = vld [vmem:[#allocation2 + $0x48c] ss:$80 sps:$4 sm:$0xff]   ;;  %v5525_v17 = vld [vmem:[#allocation2 + $0x488] ss:$80 sps:$4 sm:$0xff]  }
 0x910   :  { %2836 = vmatprep.subr.bf16.mxu0 %v5467_v22  ;;  %v5533_v22 = vld [vmem:[#allocation2 + $0x3ec] ss:$80 sps:$4 sm:$0xff]  }
 0x911   :  { %v2320_v15 = vsel %vm294_vm6, %v2316_v14, 0.0  ;;  %v5513_v14 = vld [vmem:[#allocation2 + $0x338] ss:$80 sps:$4 sm:$0xff]  }
 0x912   :  { %2321 = vadd.xlane.f32.xlu0 %v2320_v15  ;;  %v5516_v15 = vld [vmem:[#allocation2 + $0x350] ss:$80 sps:$4 sm:$0xff]  }
 0x913   :  { %2837 = vmatpush1.bf16.msra.mxu0 %v5465_v24  ;;  %v5531_v24 = vld [vmem:[#allocation2 + $0x3e8] ss:$80 sps:$4 sm:$0xff]  }
 0x914   :  { %2838 = vmatprep.subr.bf16.mxu0 %v5473_v28  ;;  %v5539_v28 = vld [vmem:[#allocation2 + $0x34c] ss:$80 sps:$4 sm:$0xff]  }
 0x917   :  { %2839 = vmatpush1.bf16.msra.mxu0 %v5471_v30  ;;  %v5537_v30 = vld [vmem:[#allocation2 + $0x348] ss:$80 sps:$4 sm:$0xff]  }
 0x918   :  { %2875 = vmatprep.subr.bf16.mxu0 %v5479_v34  ;;  %v5545_v34 = vld [vmem:[#allocation2 + $0x2ac] ss:$80 sps:$4 sm:$0xff]  }
 0x997   :  { %v2319_v36 = vpop.xlane.xlu1 %2318 }
 0x998   :  { %v2323_v37 = vmul.f32 0.015625, %v2319_v36  ;;  %v5543_v36 = vld [vmem:[#allocation2 + $0x2a8] ss:$80 sps:$4 sm:$0xff]  }
 0x99a   :  { %v2325_v38 = vadd.f32 1e-06, %v2323_v37  ;;  %v5546_v37 = vld [vmem:[#allocation2 + $0x2c0] ss:$80 sps:$4 sm:$0xff]  }
 0x99b   :  { %v2322_v39 = vpop.xlane.xlu0 %2321 }
 0x99c   :  { %5677 = vrsqrt.f32 %v2325_v38  ;;  %v2324_v40 = vmul.f32 0.015625, %v2322_v39  ;;  %v5551_v38 = vld [vmem:[#allocation2 + $0x49c] ss:$80 sps:$4 sm:$0xff]   ;;  %v5549_v39 = vld [vmem:[#allocation2 + $0x498] ss:$80 sps:$4 sm:$0xff]  }
 0x99e   :  { %v2326_v41 = vadd.f32 1e-06, %v2324_v40  ;;  %v5554_v40 = vld [vmem:[#allocation2 + $0x3fc] ss:$80 sps:$4 sm:$0xff]  }
 0x9a0   :  { %5679 = vrsqrt.f32 %v2326_v41  ;;  %v5552_v41 = vld [vmem:[#allocation2 + $0x3f8] ss:$80 sps:$4 sm:$0xff]  }
 0x9a9   :  { %v5678_v42 = vpop.eup %5677 }
 0x9aa   :  { %v2329_v43 = vmul.f32 %v5678_v42, %v6309_v1  ;;  %v5557_v42 = vld [vmem:[#allocation2 + $0x35c] ss:$80 sps:$4 sm:$0xff]  }
 0x9ac   :  { %v2337_v48 = vmul.f32 %v4690_v46, %v2329_v43  ;;  %v5555_v43 = vld [vmem:[#allocation2 + $0x358] ss:$80 sps:$4 sm:$0xff]  }
 0x9ad   :  { %v5680_v45 = vpop.eup %5679 }
 0x9ae   :  { %v2330_v47 = vmul.f32 %v5680_v45, %v6314_v9  ;;  %v5560_v45 = vld [vmem:[#allocation2 + $0x2bc] ss:$80 sps:$4 sm:$0xff]  }
 0x9b0   :  { %v2338_v49 = vmul.f32 %v4690_v46, %v2330_v47  ;;  %v5558_v46 = vld [vmem:[#allocation2 + $0x2b8] ss:$80 sps:$4 sm:$0xff]   ;;  %v5563_v47 = vld [vmem:[#allocation2 + $0x4ac] ss:$80 sps:$4 sm:$0xff]  }
 0x9b2   :  { %v6325_v51 = vpack.c.bf16 %v2338_v49, %v2337_v48  ;;  %v5561_v48 = vld [vmem:[#allocation2 + $0x4a8] ss:$80 sps:$4 sm:$0xff]   ;;  %v5566_v49 = vld [vmem:[#allocation2 + $0x40c] ss:$80 sps:$4 sm:$0xff]  }
 0x9b4   :  { %4771 = vmatmul.mubr.msk.bf16.vlgmr.msra.gmra.mxu0 %vm294_vm6, %v6325_v51  ;;  %4773 = vmatmul.mubr.msk.bf16.vlgmr.msra.gmra.mxu1 %vm294_vm6, %v6325_v51 }
 0x9b5   :  { %2876 = vmatpush1.bf16.msra.mxu0 %v5477_v50  ;;  %3005 = vmatpush1.bf16.msra.mxu1 %v5480_v21  ;;  %v5564_v50 = vld [vmem:[#allocation2 + $0x408] ss:$80 sps:$4 sm:$0xff]   ;;  %v5569_v21 = vld [vmem:[#allocation2 + $0x36c] ss:$80 sps:$4 sm:$0xff]  }
 0x9b6   :  { %2877 = vmatprep.subr.bf16.mxu0 %v5485_v52  ;;  %3006 = vmatprep.subr.bf16.mxu1 %v5488_v53  ;;  %v5567_v52 = vld [vmem:[#allocation2 + $0x368] ss:$80 sps:$4 sm:$0xff]   ;;  %v5572_v53 = vld [vmem:[#allocation2 + $0x2cc] ss:$80 sps:$4 sm:$0xff]  }
 0x9b7   :  { %2899 = vmatprep.mubr.bf16.mxu0 %v5768_v0  ;;  %3028 = vmatprep.mubr.bf16.mxu1 %v5768_v0 }
 0x9b9   :  { %2878 = vmatpush1.bf16.msra.mxu0 %v5483_v33  ;;  %3007 = vmatpush1.bf16.msra.mxu1 %v5486_v54  ;;  %v5570_v33 = vld [vmem:[#allocation2 + $0x2c8] ss:$80 sps:$4 sm:$0xff]  }
 0x9ba   :  { %2879 = vmatprep.subr.bf16.mxu0 %v5491_v55  ;;  %3008 = vmatprep.subr.bf16.mxu1 %v5494_v56 }
 0x9bd   :  { %2880 = vmatpush1.bf16.msra.mxu0 %v5489_v57  ;;  %3009 = vmatpush1.bf16.msra.mxu1 %v5492_v8 }
 0x9be   :  { %2881 = vmatprep.subr.bf16.mxu0 %v5497_v6  ;;  %3010 = vmatprep.subr.bf16.mxu1 %v5500_v58 }
 0x9c1   :  { %2882 = vmatpush1.bf16.msra.mxu0 %v5495_v16  ;;  %3011 = vmatpush1.bf16.msra.mxu1 %v5498_v59 }
 0x9c2   :  { %2961 = vmatprep.subr.bf16.mxu0 %v5503_v60  ;;  %3090 = vmatprep.subr.bf16.mxu1 %v5506_v61 }
 0x9c4   :  { %4772 = vmatmul.mubr.msk.bf16.vlgmr.msra.gmra.mxu0 %vm294_vm6, %v6325_v51  ;;  %4775 = vmatmul.mubr.msk.bf16.vlgmr.msra.gmra.mxu1 %vm294_vm6, %v6325_v51 }
 0x9c5   :  { %2962 = vmatpush1.bf16.msra.mxu0 %v5501_v62  ;;  %3091 = vmatpush1.bf16.msra.mxu1 %v5504_v63 }
 0x9c6   :  { %2963 = vmatprep.subr.bf16.mxu0 %v5509_v25  ;;  %3092 = vmatprep.subr.bf16.mxu1 %v5512_v44 }
 0x9c7   :  { %2985 = vmatprep.mubr.bf16.mxu0 %v5768_v0  ;;  %3114 = vmatprep.mubr.bf16.mxu1 %v5768_v0 }
 0x9c9   :  { %2964 = vmatpush1.bf16.msra.mxu0 %v5507_v2  ;;  %3093 = vmatpush1.bf16.msra.mxu1 %v5510_v3 }
 0x9ca   :  { %2965 = vmatprep.subr.bf16.mxu0 %v5515_v19  ;;  %3094 = vmatprep.subr.bf16.mxu1 %v5518_v13  ;;  %v5727_v19 = vld [vmem:[%s6742_s4] sm:$0xff] }
 0x9cd   :  { %2966 = vmatpush1.bf16.msra.mxu0 %v5513_v14  ;;  %3095 = vmatpush1.bf16.msra.mxu1 %v5516_v15 }
 0x9ce   :  { %2967 = vmatprep.subr.bf16.mxu0 %v5521_v18  ;;  %3096 = vmatprep.subr.bf16.mxu1 %v5524_v10  ;;  %v5728_v18 = vld [vmem:[%s6741_s3] sm:$0xff] }
 0x9d1   :  { %2968 = vmatpush1.bf16.msra.mxu0 %v5519_v27  ;;  %3097 = vmatpush1.bf16.msra.mxu1 %v5522_v11  ;;  %v5729_v27 = vld [vmem:[%s6741_s3 + $0x20] sm:$0xff] }
 0x9d2   :  { %3047 = vmatprep.subr.bf16.mxu0 %v5527_v5  ;;  %3176 = vmatprep.subr.bf16.mxu1 %v5530_v31  ;;  %v5730_v5 = vld [vmem:[%s6742_s4 + $0x8] sm:$0xff] }
 0x9d4   :  { %4774 = vmatmul.mubr.msk.bf16.vlgmr.msra.gmra.mxu0 %vm294_vm6, %v6325_v51  ;;  %4777 = vmatmul.mubr.msk.bf16.vlgmr.msra.gmra.mxu1 %vm294_vm6, %v6325_v51 }
 0x9d5   :  { %3048 = vmatpush1.bf16.msra.mxu0 %v5525_v17  ;;  %3177 = vmatpush1.bf16.msra.mxu1 %v5528_v20  ;;  %v5731_v17 = vld [vmem:[%s6742_s4 + $0x20] sm:$0xff] }
 0x9d6   :  { %3049 = vmatprep.subr.bf16.mxu0 %v5533_v22  ;;  %3178 = vmatprep.subr.bf16.mxu1 %v5536_v23  ;;  %v5732_v22 = vld [vmem:[%s6741_s3 + $0x8] sm:$0xff] }
 0x9d7   :  { %3071 = vmatprep.mubr.bf16.mxu0 %v5768_v0  ;;  %3200 = vmatprep.mubr.bf16.mxu1 %v5768_v0 }
 0x9d9   :  { %3050 = vmatpush1.bf16.msra.mxu0 %v5531_v24  ;;  %3179 = vmatpush1.bf16.msra.mxu1 %v5534_v26  ;;  %v5733_v26 = vld [vmem:[%s6741_s3 + $0x28] sm:$0xff] }
 0x9da   :  { %3051 = vmatprep.subr.bf16.mxu0 %v5539_v28  ;;  %3180 = vmatprep.subr.bf16.mxu1 %v5542_v29 }
 0x9dd   :  { %3052 = vmatpush1.bf16.msra.mxu0 %v5537_v30  ;;  %3181 = vmatpush1.bf16.msra.mxu1 %v5540_v32  ;;  %v5734_v32 = vld [vmem:[%s6742_s4 + $0x28] sm:$0xff] }
 0x9de   :  { %3053 = vmatprep.subr.bf16.mxu0 %v5545_v34  ;;  %3182 = vmatprep.subr.bf16.mxu1 %v5548_v35 }
 0x9e1   :  { %3054 = vmatpush1.bf16.msra.mxu0 %v5543_v36  ;;  %3183 = vmatpush1.bf16.msra.mxu1 %v5546_v37 }
 0x9e2   :  { %3133 = vmatprep.subr.bf16.mxu0 %v5551_v38  ;;  %5170 = vmatprep.subr.bf16.mxu1 %v5770_v7 }
 0x9e4   :  { %4776 = vmatmul.mubr.msk.bf16.vlgmr.msra.gmra.mxu0 %vm294_vm6, %v6325_v51  ;;  %4779 = vmatmul.mubr.msk.bf16.vlgmr.msra.gmra.mxu1 %vm294_vm6, %v6325_v51 }
 0x9e5   :  { %3134 = vmatpush1.bf16.msra.mxu0 %v5549_v39  ;;  %3157 = vmatprep.mubr.bf16.mxu0 %v5768_v0 }
 0x9e6   :  { %3135 = vmatprep.subr.bf16.mxu0 %v5554_v40  ;;  %5172 = vmatprep.mubr.msk.bf16.mxu1 %vm5771_vm7, %v5770_v7 }
 0x9e9   :  { %3136 = vmatpush1.bf16.msra.mxu0 %v5552_v41 }
 0x9ea   :  { %3137 = vmatprep.subr.bf16.mxu0 %v5557_v42 }
 0x9ed   :  { %3138 = vmatpush1.bf16.msra.mxu0 %v5555_v43 }
 0x9ee   :  { %3139 = vmatprep.subr.bf16.mxu0 %v5560_v45 }
 0x9f1   :  { %3140 = vmatpush1.bf16.msra.mxu0 %v5558_v46 }
 0x9f2   :  { %3219 = vmatprep.subr.bf16.mxu0 %v5563_v47 }
 0x9f4   :  { %4778 = vmatmul.mubr.msk.bf16.vlgmr.msra.gmra.mxu0 %vm294_vm6, %v6325_v51 }
 0x9f5   :  { %3220 = vmatpush1.bf16.msra.mxu0 %v5561_v48  ;;  %3243 = vmatprep.mubr.bf16.mxu0 %v5768_v0 }
 0x9f6   :  { %3221 = vmatprep.subr.bf16.mxu0 %v5566_v49 }
 0x9f9   :  { %3222 = vmatpush1.bf16.msra.mxu0 %v5564_v50 }
 0x9fa   :  { %3223 = vmatprep.subr.bf16.mxu0 %v5569_v21 }
 0x9fd   :  { %3224 = vmatpush1.bf16.msra.mxu0 %v5567_v52 }
 0x9fe   :  { %3225 = vmatprep.subr.bf16.mxu0 %v5572_v53 }
 0xa01   :  { %3226 = vmatpush1.bf16.msra.mxu0 %v5570_v33 }
 0xa02   :  { %5182 = vmatprep.subr.bf16.mxu0 %v5770_v7 }
 0xa04   :  { %4780 = vmatmul.mubr.msk.bf16.vlgmr.msra.gmra.mxu0 %vm294_vm6, %v6325_v51 }
 0xa05   :  { %5184 = vmatprep.mubr.msk.bf16.mxu0 %vm5771_vm7, %v5770_v7 }
 0xa74   :  { %v2944_v54 = vpop.f32.mrf.mxu1  ;;  %v2858_v55 = vpop.f32.mrf.mxu0 }
 0xa75   :  { %v3258_v41 = vmul.f32 %v5728_v18, %v2858_v55  ;;  %v3266_v42 = vmul.f32 %v5727_v19, %v2944_v54 }
 0xa76   :  { %v2946_v56 = vpop.f32.mrf.mxu1  ;;  %v2860_v57 = vpop.f32.mrf.mxu0 }
 0xa77   :  { %v3259_v47 = vmul.f32 %v5732_v22, %v2860_v57  ;;  %v3267_v48 = vmul.f32 %v5730_v5, %v2946_v56  ;;  %v3274_v21 = vadd.f32 %v3266_v42, %v3258_v41 }
 0xa78   :  { %v2948_v8 = vpop.f32.mrf.mxu1  ;;  %v2862_v6 = vpop.f32.mrf.mxu0 }
 0xa79   :  { %v3262_v35 = vmul.f32 %v5729_v27, %v2862_v6  ;;  %v3270_v36 = vmul.f32 %v5731_v17, %v2948_v8  ;;  %v3275_v53 = vadd.f32 %v3267_v48, %v3259_v47 }
 0xa7a   :  { %v2950_v58 = vpop.f32.mrf.mxu1  ;;  %v2864_v59 = vpop.f32.mrf.mxu0 }
 0xa7b   :  { %v3263_v43 = vmul.f32 %v5733_v26, %v2864_v59  ;;  %v3271_v45 = vmul.f32 %v5734_v32, %v2950_v58  ;;  %v3278_v49 = vadd.f32 %v3270_v36, %v3262_v35 }
 0xa7d   :  { %v3279_v52 = vadd.f32 %v3271_v45, %v3263_v43  ;;  %v3282_v33 = vpack.c.bf16 %v3278_v49, %v3274_v21 }
 0xa7f   :  { %v3283_v54 = vpack.c.bf16 %v3279_v52, %v3275_v53 }
 0xa84   :  { %v3030_v16 = vpop.f32.mrf.mxu1  ;;  %v6361_v60 = vpop.f32.mrf.mxu0 }
 0xa85   :  { %v3286_v10 = vmul.f32 %v5728_v18, %v3030_v16  ;;  %v5737_v18 = vld [vmem:[%s6741_s3 + $0x30] sm:$0xff] }
 0xa86   :  { %v3032_v61 = vpop.f32.mrf.mxu1  ;;  %v6363_v62 = vpop.f32.mrf.mxu0 }
 0xa87   :  { %v3287_v23 = vmul.f32 %v5732_v22, %v3032_v61 }
 0xa88   :  { %v3034_v63 = vpop.f32.mrf.mxu1  ;;  %v6365_v25 = vpop.f32.mrf.mxu0 }
 0xa89   :  { %v3290_v11 = vmul.f32 %v5729_v27, %v3034_v63  ;;  %v5738_v27 = vld [vmem:[%s6742_s4 + $0x30] sm:$0xff] }
 0xa8a   :  { %v3036_v51 = vpop.f32.mrf.mxu1  ;;  %v6367_v2 = vpop.f32.mrf.mxu0 }
 0xa8b   :  { %v3291_v28 = vmul.f32 %v5733_v26, %v3036_v51  ;;  %v3264_v26 = vmul.f32 %v5737_v18, %v6365_v25  ;;  %v5742_v25 = vld [vmem:[%s6741_s3 + $0x18] sm:$0xff] }
 0xa8c   :  { %v3261_v48 = vmul.f32 %v5742_v25, %v6363_v62 }
 0xa94   :  { %v3116_v44 = vpop.f32.mrf.mxu1  ;;  %v6372_v14 = vpop.f32.mrf.mxu0 }
 0xa95   :  { %v3294_v13 = vmul.f32 %v5727_v19, %v3116_v44  ;;  %v5735_v44 = vld [vmem:[%s6742_s4 + $0x10] sm:$0xff] }
 0xa96   :  { %v3118_v3 = vpop.f32.mrf.mxu1  ;;  %v6395_v37 = vpop.f32.mrf.mxu0 }
 0xa97   :  { %v3295_v31 = vmul.f32 %v5730_v5, %v3118_v3  ;;  %v3302_v29 = vadd.f32 %v3294_v13, %v3286_v10  ;;  %v5736_v13 = vld [vmem:[%s6741_s3 + $0x10] sm:$0xff] }
 0xa98   :  { %v3120_v15 = vpop.f32.mrf.mxu1  ;;  %v2991_v50 = vpop.f32.mrf.mxu0  ;;  %v3260_v35 = vmul.f32 %v5736_v13, %v6361_v60 }
 0xa99   :  { %v3298_v20 = vmul.f32 %v5731_v17, %v3120_v15  ;;  %v3303_v38 = vadd.f32 %v3295_v31, %v3287_v23  ;;  %v5739_v23 = vld [vmem:[%s6742_s4 + $0x38] sm:$0xff] }
 0xa9a   :  { %v3122_v24 = vpop.f32.mrf.mxu1  ;;  %v2993_v8 = vpop.f32.mrf.mxu0 }
 0xa9b   :  { %v3306_v30 = vadd.f32 %v3298_v20, %v3290_v11  ;;  %v3299_v34 = vmul.f32 %v5734_v32, %v3122_v24  ;;  %v3272_v20 = vmul.f32 %v5738_v27, %v2991_v50  ;;  %v5741_v32 = vld [vmem:[%s6742_s4 + $0x18] sm:$0xff]  ;;  %v3273_v42 = vmul.f32 %v5739_v23, %v2993_v8 }
 0xa9c   :  { %v3269_v60 = vmul.f32 %v5741_v32, %v6395_v37 }
 0xa9d   :  { %v3310_v39 = vpack.c.bf16 %v3306_v30, %v3302_v29  ;;  %v3307_v40 = vadd.f32 %v3299_v34, %v3291_v28  ;;  %v3268_v28 = vmul.f32 %v5735_v44, %v6372_v14  ;;  %v5740_v29 = vld [vmem:[%s6741_s3 + $0x38] sm:$0xff]  ;;  %v3280_v36 = vadd.f32 %v3272_v20, %v3264_v26 }
 0xa9e   :  { %v3277_v52 = vadd.f32 %v3269_v60, %v3261_v48 }
 0xa9f   :  { %v3311_v46 = vpack.c.bf16 %v3307_v40, %v3303_v38  ;;  %5171 = vmatpush3.bf16.xpose.msra.mxu1 %v3310_v39  ;;  %v3276_v39 = vadd.f32 %v3268_v28, %v3260_v35 }
 0xaa0   :  { %5176 = vmatprep.subr.bf16.mxu1 %v5770_v7 }
 0xaa1   :  { %5183 = vmatpush3.bf16.xpose.msra.mxu0 %v3311_v46  ;;  %v3284_v41 = vpack.c.bf16 %v3280_v36, %v3276_v39  ;;  %v3265_v46 = vmul.f32 %v5740_v29, %v6367_v2 }
 0xaa2   :  { %5194 = vmatprep.subr.bf16.mxu0 %v5770_v7 }
 0xaa3   :  { %v3281_v49 = vadd.f32 %v3273_v42, %v3265_v46 }
 0xaa4   :  { %v3202_v55 = vpop.f32.mrf.mxu1  ;;  %v3073_v6 = vpop.f32.mrf.mxu0 }
 0xaa5   :  { %v3288_v15 = vmul.f32 %v5736_v13, %v3073_v6  ;;  %v3285_v53 = vpack.c.bf16 %v3281_v49, %v3277_v52 }
 0xaa6   :  { %v6399_v58 = vpop.f32.mrf.mxu1  ;;  %5173 = vmatmul.mubr.bf16.vlgmr.msra.gmra.mxu1 %v3282_v33  ;;  %v3075_v16 = vpop.f32.mrf.mxu0 }
 0xaa7   :  { %5178 = vmatprep.mubr.msk.bf16.mxu1 %vm5771_vm7, %v5770_v7  ;;  %v3289_v14 = vmul.f32 %v5742_v25, %v3075_v16 }
 0xaa8   :  { %v3206_v56 = vpop.f32.mrf.mxu1  ;;  %5185 = vmatmul.mubr.bf16.vlgmr.msra.gmra.mxu0 %v3283_v54  ;;  %v3077_v59 = vpop.f32.mrf.mxu0 }
 0xaa9   :  { %v3254_v57 = vpack.c.bf16 %v3206_v56, %v3202_v55  ;;  %5196 = vmatprep.mubr.msk.bf16.mxu0 %vm5771_vm7, %v5770_v7  ;;  %v3292_v10 = vmul.f32 %v5737_v18, %v3077_v59 }
 0xaaa   :  { %v3079_v61 = vpop.f32.mrf.mxu0  ;;  %v6447_v2 = vpop.f32.mrf.mxu1 }
 0xaab   :  { %5177 = vmatpush3.bf16.msra.mxu1 %v3254_v57  ;;  %v3293_v30 = vmul.f32 %v5740_v29, %v3079_v61 }
 0xaac   :  { %5188 = vmatprep.subr.bf16.mxu1 %v5770_v7 }
 0xab4   :  { %v3159_v63 = vpop.f32.mrf.mxu0 }
 0xab5   :  { %v3296_v3 = vmul.f32 %v5735_v44, %v3159_v63 }
 0xab6   :  { %v3161_v51 = vpop.f32.mrf.mxu0 }
 0xab7   :  { %v3304_v31 = vadd.f32 %v3296_v3, %v3288_v15  ;;  %v3297_v34 = vmul.f32 %v5741_v32, %v3161_v51 }
 0xab8   :  { %v3163_v19 = vpop.f32.mrf.mxu0 }
 0xab9   :  { %v3300_v11 = vmul.f32 %v5738_v27, %v3163_v19  ;;  %v3305_v40 = vadd.f32 %v3297_v34, %v3289_v14 }
 0xaba   :  { %v3165_v5 = vpop.f32.mrf.mxu0 }
 0xabb   :  { %v3308_v17 = vadd.f32 %v3300_v11, %v3292_v10  ;;  %v3301_v24 = vmul.f32 %v5739_v23, %v3165_v5 }
 0xabd   :  { %v3312_v22 = vpack.c.bf16 %v3308_v17, %v3304_v31  ;;  %v3309_v38 = vadd.f32 %v3301_v24, %v3293_v30 }
 0xabf   :  { %5195 = vmatpush3.bf16.xpose.msra.mxu0 %v3312_v22  ;;  %v3313_v45 = vpack.c.bf16 %v3309_v38, %v3305_v40 }
 0xac0   :  { %5206 = vmatprep.subr.bf16.mxu0 %v5770_v7 }
 0xac4   :  { %v6434_v43 = vpop.f32.mrf.mxu0 }
 0xac6   :  { %v6438_v47 = vpop.f32.mrf.mxu0  ;;  %5197 = vmatmul.mubr.bf16.vlgmr.msra.gmra.mxu0 %v3284_v41 }
 0xac7   :  { %5207 = vmatpush3.bf16.xpose.msra.mxu0 %v3313_v45  ;;  %5208 = vmatprep.mubr.msk.bf16.mxu0 %vm5771_vm7, %v5770_v7 }
 0xac8   :  { %v6443_v50 = vpop.f32.mrf.mxu0 }
 0xac9   :  { %v3256_v21 = vpack.c.bf16 %v6443_v50, %v6434_v43 }
 0xaca   :  { %v6449_v37 = vpop.f32.mrf.mxu0 }
 0xacb   :  { %v3257_v50 = vpack.c.bf16 %v6449_v37, %v6438_v47  ;;  %v5582_v47 = vld [vmem:[%s6748_s10 + $0x118] sm:$0xff]   ;;  %v5583_v37 = vld [vmem:[%s6748_s10 + $0x150] sm:$0xff]  }
 0xace   :  { %5209 = vmatmul.mubr.bf16.vlgmr.msra.gmra.mxu0 %v3285_v53 }
 0xb66   :  { %v3348_v33 = vpop.f32.mrf.mxu1 }
 0xb67   :  { %v3349_v8 = vadd.f32 %v3348_v33, %v6054_v4 }
 0xb68   :  { %v5174_v55 = vpop.f32.mrf.mxu1  ;;  %v3456_v54 = vpop.f32.mrf.mxu0 }
 0xb69   :  { %v3457_v62 = vadd.f32 %v3456_v54, %v6054_v4  ;;  %v3355_v6 = vsel %vm1333_vm8, %v3349_v8, -inf }
 0xb6a   :  { %v5186_v56 = vpop.f32.mrf.mxu0  ;;  %3356 = vmax.xlane.f32.xlu1 %v3355_v6  ;;  %v3351_v57 = vpop.f32.mrf.mxu1 }
 0xb6b   :  { %v3352_v16 = vadd.f32 %v3351_v57, %v6061_v12  ;;  %v3463_v51 = vsel %vm1333_vm8, %v3457_v62, -inf }
 0xb6c   :  { %v5175_v59 = vpop.f32.mrf.mxu1  ;;  %v3459_v61 = vpop.f32.mrf.mxu0 }
 0xb6d   :  { %v3460_v63 = vadd.f32 %v3459_v61, %v6061_v12  ;;  %v3358_v44 = vsel %vm1333_vm8, %v3352_v16, -inf }
 0xb6e   :  { %v5187_v3 = vpop.f32.mrf.mxu0  ;;  %3464 = vmax.xlane.f32.xlu1 %v3463_v51  ;;  %3359 = vmax.xlane.f32.xlu0 %v3358_v44 }
 0xb6f   :  { %v3466_v19 = vsel %vm1333_vm8, %v3460_v63, -inf }
 0xb72   :  { %3467 = vmax.xlane.f32.xlu0 %v3466_v19 }
 0xb86   :  { %v3564_v13 = vpop.f32.mrf.mxu0 }
 0xb87   :  { %v3565_v15 = vadd.f32 %v3564_v13, %v6054_v4 }
 0xb88   :  { %v5198_v18 = vpop.f32.mrf.mxu0 }
 0xb89   :  { %v3571_v10 = vsel %vm1333_vm8, %v3565_v15, -inf }
 0xb8a   :  { %v3567_v27 = vpop.f32.mrf.mxu0  ;;  %3572 = vmax.xlane.f32.xlu1 %v3571_v10  ;;  %v5573_v10 = vld [vmem:[%s6748_s10 + $0x178] sm:$0xff]  }
 0xb8b   :  { %v3568_v11 = vadd.f32 %v3567_v27, %v6061_v12  ;;  %v5574_v27 = vld [vmem:[%s6748_s10 + $0x138] sm:$0xff]   ;;  %5041 = vmatprep.subr.bf16.mxu0 %v5573_v10  ;;  %v5603_v10 = vld [vmem:[%s6748_s10 + $0x1c0] sm:$0xff]  }
 0xb8c   :  { %v5199_v5 = vpop.f32.mrf.mxu0  ;;  %5042 = vmatpush3.bf16.msra.mxu0 %v5574_v27  ;;  %v5604_v27 = vld [vmem:[%s6748_s10 + $0x180] sm:$0xff]  }
 0xb8d   :  { %v3574_v31 = vsel %vm1333_vm8, %v3568_v11, -inf  ;;  %v5576_v5 = vld [vmem:[%s6748_s10 + $0x130] sm:$0xff]  }
 0xb8e   :  { %v3672_v17 = vpop.f32.mrf.mxu0  ;;  %3575 = vmax.xlane.f32.xlu0 %v3574_v31  ;;  %v5577_v31 = vld [vmem:[%s6748_s10 + $0x168] sm:$0xff]  }
 0xb8f   :  { %v3673_v20 = vadd.f32 %v3672_v17, %v6054_v4  ;;  %v5578_v17 = vld [vmem:[%s6748_s10 + $0x128] sm:$0xff]  }
 0xb90   :  { %v5210_v22 = vpop.f32.mrf.mxu0 }
 0xb91   :  { %v3679_v23 = vsel %vm1333_vm8, %v3673_v20, -inf  ;;  %v5580_v22 = vld [vmem:[%s6748_s10 + $0x120] sm:$0xff]  }
 0xb92   :  { %v3675_v24 = vpop.f32.mrf.mxu0  ;;  %3680 = vmax.xlane.f32.xlu1 %v3679_v23 }
 0xb93   :  { %v3676_v26 = vadd.f32 %v3675_v24, %v6061_v12 }
 0xb94   :  { %v5211_v28 = vpop.f32.mrf.mxu0 }
 0xb95   :  { %v3682_v29 = vsel %vm1333_vm8, %v3676_v26, -inf }
 0xb96   :  { %3683 = vmax.xlane.f32.xlu0 %v3682_v29 }
 0xbf3   :  { %v3357_v30 = vpop.xlane.xlu1 %3356 }
 0xbf4   :  { %v3361_v32 = vsub.f32 %v3349_v8, %v3357_v30 }
 0xbf6   :  { %v3363_v34 = vmul.f32 1.442695, %v3361_v32 }
 0xbf7   :  { %v3465_v35 = vpop.xlane.xlu1 %3464  ;;  %v3360_v36 = vpop.xlane.xlu0 %3359 }
 0xbf8   :  { %5681 = vpow2.f32 %v3363_v34  ;;  %v3469_v25 = vsub.f32 %v3457_v62, %v3465_v35  ;;  %v3362_v14 = vsub.f32 %v3352_v16, %v3360_v36 }
 0xbfa   :  { %v3471_v4 = vmul.f32 1.442695, %v3469_v25  ;;  %v3365_v38 = vmul.f32 1.442695, %v3362_v14  ;;  %v3255_v25 = vpack.c.bf16 %v6447_v2, %v6399_v58 }
 0xbfb   :  { %v3468_v39 = vpop.xlane.xlu0 %3467 }
 0xbfc   :  { %5683 = vpow2.f32 %v3471_v4  ;;  %v3470_v40 = vsub.f32 %v3460_v63, %v3468_v39 }
 0xbfd   :  { %5685 = vpow2.f32 %v3365_v38 }
 0xbfe   :  { %v3473_v41 = vmul.f32 1.442695, %v3470_v40 }
 0xc00   :  { %5687 = vpow2.f32 %v3473_v41 }
 0xc05   :  { %v6467_v12 = vpop.eup %5681 }
 0xc06   :  { %v3367_v42 = vsel %vm1333_vm8, %v6467_v12, 0.0 }
 0xc07   :  { %3368 = vadd.xlane.f32.xlu1 %v3367_v42 }
 0xc09   :  { %v6471_v45 = vpop.eup %5683 }
 0xc0a   :  { %v6473_v46 = vpop.eup %5685  ;;  %v3475_v60 = vsel %vm1333_vm8, %v6471_v45, 0.0 }
 0xc0b   :  { %3476 = vadd.xlane.f32.xlu1 %v3475_v60  ;;  %v3370_v48 = vsel %vm1333_vm8, %v6473_v46, 0.0 }
 0xc0c   :  { %3371 = vadd.xlane.f32.xlu0 %v3370_v48 }
 0xc0d   :  { %v6479_v49 = vpop.eup %5687 }
 0xc0e   :  { %v3478_v52 = vsel %vm1333_vm8, %v6479_v49, 0.0 }
 0xc10   :  { %3479 = vadd.xlane.f32.xlu0 %v3478_v52 }
 0xc13   :  { %v3573_v53 = vpop.xlane.xlu1 %3572 }
 0xc14   :  { %v3577_v33 = vsub.f32 %v3565_v15, %v3573_v53  ;;  %v5581_v53 = vld [vmem:[%s6748_s10 + $0x158] sm:$0xff]  }
 0xc16   :  { %v3579_v8 = vmul.f32 1.442695, %v3577_v33  ;;  %v5584_v33 = vld [vmem:[%s6748_s10 + $0x110] sm:$0xff]  }
 0xc17   :  { %v3576_v55 = vpop.xlane.xlu0 %3575 }
 0xc18   :  { %5689 = vpow2.f32 %v3579_v8  ;;  %v3578_v54 = vsub.f32 %v3568_v11, %v3576_v55  ;;  %v5575_v11 = vld [vmem:[%s6748_s10 + $0x170] sm:$0xff]   ;;  %v5585_v8 = vld [vmem:[%s6748_s10 + $0x148] sm:$0xff]  }
 0xc19   :  { %5043 = vmatprep.subr.bf16.mxu0 %v5575_v11  ;;  %v5586_v55 = vld [vmem:[%s6748_s10 + $0x108] sm:$0xff]  }
 0xc1a   :  { %v3581_v62 = vmul.f32 1.442695, %v3578_v54  ;;  %5044 = vmatpush3.bf16.msra.mxu0 %v5576_v5  ;;  %v5587_v54 = vld [vmem:[%s6748_s10 + $0x140] sm:$0xff]  }
 0xc1b   :  { %v3681_v6 = vpop.xlane.xlu1 %3680  ;;  %5045 = vmatprep.subr.bf16.mxu0 %v5577_v31 }
 0xc1c   :  { %5691 = vpow2.f32 %v3581_v62  ;;  %v3685_v56 = vsub.f32 %v3673_v20, %v3681_v6  ;;  %v5579_v20 = vld [vmem:[%s6748_s10 + $0x160] sm:$0xff]   ;;  %v5589_v6 = vld [vmem:[%s6748_s10 + $0x1f8] sm:$0xff]  }
 0xc1d   :  { %v5588_v62 = vld [vmem:[%s6748_s10 + $0x100] sm:$0xff]  }
 0xc1e   :  { %v3687_v57 = vmul.f32 1.442695, %v3685_v56  ;;  %5046 = vmatpush3.bf16.msra.mxu0 %v5578_v17  ;;  %v5590_v56 = vld [vmem:[%s6748_s10 + $0x1b8] sm:$0xff]  }
 0xc1f   :  { %v3684_v16 = vpop.xlane.xlu0 %3683  ;;  %5047 = vmatprep.subr.bf16.mxu0 %v5579_v20 }
 0xc20   :  { %5693 = vpow2.f32 %v3687_v57  ;;  %v3686_v59 = vsub.f32 %v3676_v26, %v3684_v16  ;;  %v5591_v57 = vld [vmem:[%s6748_s10 + $0x1f0] sm:$0xff]  }
 0xc21   :  { %v5592_v16 = vld [vmem:[%s6748_s10 + $0x1b0] sm:$0xff]  }
 0xc22   :  { %v3689_v61 = vmul.f32 1.442695, %v3686_v59  ;;  %5048 = vmatpush3.bf16.msra.mxu0 %v5580_v22  ;;  %v5593_v59 = vld [vmem:[%s6748_s10 + $0x1e8] sm:$0xff]  }
 0xc23   :  { %5049 = vmatprep.subr.bf16.mxu0 %v5581_v53 }
 0xc24   :  { %5695 = vpow2.f32 %v3689_v61  ;;  %v5594_v61 = vld [vmem:[%s6748_s10 + $0x1a8] sm:$0xff]  }
 0xc25   :  { %v6483_v63 = vpop.eup %5689 }
 0xc26   :  { %v3583_v51 = vsel %vm1333_vm8, %v6483_v63, 0.0  ;;  %5050 = vmatpush3.bf16.msra.mxu0 %v5582_v47 }
 0xc27   :  { %3584 = vadd.xlane.f32.xlu1 %v3583_v51  ;;  %5051 = vmatprep.subr.bf16.mxu0 %v5583_v37  ;;  %v5596_v51 = vld [vmem:[%s6748_s10 + $0x1a0] sm:$0xff]  }
 0xc29   :  { %v6487_v44 = vpop.eup %5691 }
 0xc2a   :  { %v3586_v3 = vsel %vm1333_vm8, %v6487_v44, 0.0  ;;  %5052 = vmatpush3.bf16.msra.mxu0 %v5584_v33  ;;  %v5605_v33 = vld [vmem:[%s6749_s11 + $0x70] ss:$8 sps:$4 sm:$0xff]  }
 0xc2b   :  { %3587 = vadd.xlane.f32.xlu0 %v3586_v3  ;;  %5053 = vmatprep.subr.bf16.mxu0 %v5585_v8  ;;  %v5598_v3 = vld [vmem:[%s6748_s10 + $0x198] sm:$0xff]   ;;  %v5608_v8 = vld [vmem:[%s6749_s11 + $0x60] ss:$8 sps:$4 sm:$0xff]  }
 0xc2d   :  { %v6491_v19 = vpop.eup %5693 }
 0xc2e   :  { %v3691_v13 = vsel %vm1333_vm8, %v6491_v19, 0.0  ;;  %5054 = vmatpush3.bf16.msra.mxu0 %v5586_v55  ;;  %v5613_v55 = vld [vmem:[%s6749_s11 + $0x54] ss:$8 sps:$4 sm:$0xff]  }
 0xc2f   :  { %3692 = vadd.xlane.f32.xlu1 %v3691_v13  ;;  %5055 = vmatprep.subr.bf16.mxu0 %v5587_v54  ;;  %v5600_v13 = vld [vmem:[%s6748_s10 + $0x190] sm:$0xff]  }
 0xc30   :  { %v5611_v54 = vld [vmem:[%s6749_s11 + $0x50] ss:$8 sps:$4 sm:$0xff]  }
 0xc31   :  { %v6495_v15 = vpop.eup %5695 }
 0xc32   :  { %v3694_v18 = vsel %vm1333_vm8, %v6495_v15, 0.0  ;;  %5056 = vmatpush3.bf16.msra.mxu0 %v5588_v62  ;;  %v5616_v62 = vld [vmem:[%s6749_s11 + $0x44] ss:$8 sps:$4 sm:$0xff]  }
 0xc33   :  { %3695 = vadd.xlane.f32.xlu0 %v3694_v18  ;;  %v5602_v18 = vld [vmem:[%s6748_s10 + $0x188] sm:$0xff]  }
 0xc90   :  { %v3369_v23 = vpop.xlane.xlu1 %3368 }
 0xc91   :  { %5697 = vrcp.f32 %v3369_v23 }
 0xc94   :  { %v3477_v26 = vpop.xlane.xlu1 %3476 }
 0xc95   :  { %v3372_v24 = vpop.xlane.xlu0 %3371 }
 0xc96   :  { %5699 = vrcp.f32 %v3372_v24 }
 0xc99   :  { %v3480_v28 = vpop.xlane.xlu0 %3479 }
 0xc9a   :  { %5701 = vrcp.f32 %v3480_v28 }
 0xc9b   :  { %5703 = vrcp.f32 %v3477_v26 }
 0xc9e   :  { %v5698_v29 = vpop.eup %5697 }
 0xc9f   :  { %v3375_v32 = vmul.f32 %v5698_v29, %v6467_v12 }
 0xca3   :  { %v5700_v30 = vpop.eup %5699 }
 0xca4   :  { %v3376_v34 = vmul.f32 %v5700_v30, %v6473_v46 }
 0xca6   :  { %v3377_v35 = vpack.c.bf16 %v3376_v34, %v3375_v32 }
 0xca7   :  { %v5702_v36 = vpop.eup %5701 }
 0xca8   :  { %5179 = vmatmul.mubr.msk.bf16.vlgmr.msra.gmra.mxu1 %vm1333_vm8, %v3377_v35  ;;  %v5704_v14 = vpop.eup %5703  ;;  %v3484_v4 = vmul.f32 %v5702_v36, %v6479_v49 }
 0xca9   :  { %5189 = vmatpush3.bf16.msra.mxu1 %v3255_v25  ;;  %5190 = vmatprep.mubr.msk.bf16.mxu1 %vm5771_vm7, %v5770_v7  ;;  %v3483_v38 = vmul.f32 %v5704_v14, %v6471_v45 }
 0xcaa   :  { %5200 = vmatprep.subr.bf16.mxu1 %v5770_v7 }
 0xcab   :  { %v3485_v39 = vpack.c.bf16 %v3484_v4, %v3483_v38 }
 0xcb0   :  { %5191 = vmatmul.mubr.msk.bf16.vlgmr.msra.gmra.mxu1 %vm1333_vm8, %v3485_v39  ;;  %v3585_v40 = vpop.xlane.xlu1 %3584 }
 0xcb1   :  { %5201 = vmatpush3.bf16.msra.mxu1 %v3256_v21  ;;  %5202 = vmatprep.mubr.msk.bf16.mxu1 %vm5771_vm7, %v5770_v7  ;;  %5705 = vrcp.f32 %v3585_v40 }
 0xcb2   :  { %5212 = vmatprep.subr.bf16.mxu1 %v5770_v7 }
 0xcb4   :  { %v3588_v58 = vpop.xlane.xlu0 %3587 }
 0xcb5   :  { %5707 = vrcp.f32 %v3588_v58 }
 0xcb8   :  { %v3693_v2 = vpop.xlane.xlu1 %3692 }
 0xcb9   :  { %5709 = vrcp.f32 %v3693_v2 }
 0xcbc   :  { %v3696_v41 = vpop.xlane.xlu0 %3695 }
 0xcbd   :  { %5711 = vrcp.f32 %v3696_v41 }
 0xcbe   :  { %v5706_v12 = vpop.eup %5705 }
 0xcbf   :  { %v3591_v45 = vmul.f32 %v5706_v12, %v6483_v63  ;;  %v5595_v63 = vld [vmem:[%s6748_s10 + $0x1e0] sm:$0xff]  }
 0xcc2   :  { %v5708_v42 = vpop.eup %5707 }
 0xcc3   :  { %v3592_v46 = vmul.f32 %v5708_v42, %v6487_v44  ;;  %v5597_v44 = vld [vmem:[%s6748_s10 + $0x1d8] sm:$0xff]  }
 0xcc5   :  { %v3593_v43 = vpack.c.bf16 %v3592_v46, %v3591_v45 }
 0xcc6   :  { %v5710_v21 = vpop.eup %5709 }
 0xcc7   :  { %5203 = vmatmul.mubr.msk.bf16.vlgmr.msra.gmra.mxu1 %vm1333_vm8, %v3593_v43  ;;  %v3699_v48 = vmul.f32 %v5710_v21, %v6491_v19  ;;  %v5599_v19 = vld [vmem:[%s6748_s10 + $0x1d0] sm:$0xff]  }
 0xcc8   :  { %5213 = vmatpush3.bf16.msra.mxu1 %v3257_v50  ;;  %5214 = vmatprep.mubr.msk.bf16.mxu1 %vm5771_vm7, %v5770_v7 }
 0xcc9   :  { %5063 = vmatprep.subr.bf16.mxu1 %v5589_v6  ;;  %v5614_v6 = vld [vmem:[%s6749_s11 + $0x40] ss:$8 sps:$4 sm:$0xff]  }
 0xcca   :  { %v5712_v60 = vpop.eup %5711 }
 0xccb   :  { %v3700_v49 = vmul.f32 %v5712_v60, %v6495_v15  ;;  %v5601_v15 = vld [vmem:[%s6748_s10 + $0x1c8] sm:$0xff]  }
 0xccd   :  { %v3701_v52 = vpack.c.bf16 %v3700_v49, %v3699_v48 }
 0xccf   :  { %5215 = vmatmul.mubr.msk.bf16.vlgmr.msra.gmra.mxu1 %vm1333_vm8, %v3701_v52 }
 0xcd0   :  { %5064 = vmatpush3.bf16.msra.mxu1 %v5590_v56 }
 0xcd1   :  { %5065 = vmatprep.subr.bf16.mxu1 %v5591_v57 }
 0xcd4   :  { %5066 = vmatpush3.bf16.msra.mxu1 %v5592_v16 }
 0xcd5   :  { %5067 = vmatprep.subr.bf16.mxu1 %v5593_v59 }
 0xcd8   :  { %5068 = vmatpush3.bf16.msra.mxu1 %v5594_v61 }
 0xcd9   :  { %5069 = vmatprep.subr.bf16.mxu1 %v5595_v63 }
 0xcdc   :  { %5070 = vmatpush3.bf16.msra.mxu1 %v5596_v51 }
 0xcdd   :  { %5071 = vmatprep.subr.bf16.mxu1 %v5597_v44 }
 0xce0   :  { %5072 = vmatpush3.bf16.msra.mxu1 %v5598_v3 }
 0xce1   :  { %5073 = vmatprep.subr.bf16.mxu1 %v5599_v19  ;;  %v4882_v19 = vld [vmem:[%s6746_s8 + $0x1] ss:$0 sm:$0xff] }
 0xce4   :  { %5074 = vmatpush3.bf16.msra.mxu1 %v5600_v13 }
 0xce5   :  { %5075 = vmatprep.subr.bf16.mxu1 %v5601_v15 }
 0xce8   :  { %5076 = vmatpush3.bf16.msra.mxu1 %v5602_v18 }
 0xce9   :  { %5077 = vmatprep.subr.bf16.mxu1 %v5603_v10 }
 0xcec   :  { %5078 = vmatpush3.bf16.msra.mxu1 %v5604_v27  ;;  %v5617_v27 = vld [vmem:[%s6750_s12 + $0x78] sm:$0xff]  }
 0xced   :  { %5218 = vmatprep.subr.bf16.mxu1 %v5770_v7 }
 0xd68   :  { %v3415_v11 = vpop.f32.mrf.mxu1 }
 0xd6a   :  { %v5180_v5 = vpop.f32.mrf.mxu1 }
 0xd6b   :  { %v5619_v5 = vld [vmem:[%s6750_s12 + $0x68] sm:$0xff]  }
 0xd6c   :  { %v3418_v31 = vpop.f32.mrf.mxu1 }
 0xd6d   :  { %v3746_v26 = vpack.c.bf16 %v3418_v31, %v3415_v11  ;;  %v5618_v11 = vld [vmem:[%s6750_s12 + $0x70] sm:$0xff]   ;;  %v5620_v31 = vld [vmem:[%s6750_s12 + $0x60] sm:$0xff]  }
 0xd6e   :  { %v5181_v17 = vpop.f32.mrf.mxu1 }
 0xd6f   :  { %v5621_v17 = vld [vmem:[%s6750_s12 + $0x58] sm:$0xff]  }
 0xd70   :  { %v3523_v20 = vpop.f32.mrf.mxu1 }
 0xd72   :  { %v5192_v22 = vpop.f32.mrf.mxu1 }
 0xd73   :  { %v5623_v22 = vld [vmem:[%s6750_s12 + $0x48] sm:$0xff]  }
 0xd74   :  { %v3526_v23 = vpop.f32.mrf.mxu1 }
 0xd75   :  { %v3747_v24 = vpack.c.bf16 %v3526_v23, %v3523_v20  ;;  %v5622_v20 = vld [vmem:[%s6750_s12 + $0x50] sm:$0xff]   ;;  %v5624_v23 = vld [vmem:[%s6750_s12 + $0x40] sm:$0xff]  }
 0xd76   :  { %v5193_v28 = vpop.f32.mrf.mxu1 }
 0xd77   :  { %4039 = vmatprep.mubr.bf16.mxu0 %v3747_v24 }
 0xd78   :  { %4040 = vmatmul.mubr.bf16.vlgmr.msra.gmra.mxu0 %v3746_v26 }
 0xd79   :  { %4202 = vmatprep.mubr.bf16.mxu0 %v5768_v0 }
 0xd87   :  { %v3631_v29 = vpop.f32.mrf.mxu1 }
 0xd89   :  { %v5204_v30 = vpop.f32.mrf.mxu1 }
 0xd8b   :  { %v3634_v32 = vpop.f32.mrf.mxu1 }
 0xd8c   :  { %v3748_v4 = vpack.c.bf16 %v3634_v32, %v3631_v29 }
 0xd8d   :  { %v5205_v34 = vpop.f32.mrf.mxu1 }
 0xd8f   :  { %v3739_v35 = vpop.f32.mrf.mxu1 }
 0xd91   :  { %v5216_v36 = vpop.f32.mrf.mxu1 }
 0xd93   :  { %v3742_v25 = vpop.f32.mrf.mxu1 }
 0xd94   :  { %v3749_v14 = vpack.c.bf16 %v3742_v25, %v3739_v35 }
 0xd95   :  { %v5217_v38 = vpop.f32.mrf.mxu1 }
 0xd96   :  { %4080 = vmatprep.mubr.bf16.mxu1 %v3749_v14 }
 0xd97   :  { %4081 = vmatmul.mubr.bf16.vlgmr.msra.gmra.mxu1 %v3748_v4 }
 0xd98   :  { %5234 = vmatprep.mubr.msk.bf16.mxu1 %vm5771_vm7, %v5770_v7  ;;  %5219 = vmatpush3.bf16.msra.mxu1 %v5617_v27 }
 0xd99   :  { %5220 = vmatprep.subr.bf16.mxu1 %v5770_v7 }
 0xd9c   :  { %5221 = vmatpush3.bf16.msra.mxu1 %v5618_v11 }
 0xd9d   :  { %5222 = vmatprep.subr.bf16.mxu1 %v5770_v7 }
 0xda0   :  { %5223 = vmatpush3.bf16.msra.mxu1 %v5619_v5 }
 0xda1   :  { %5224 = vmatprep.subr.bf16.mxu1 %v5770_v7 }
 0xda4   :  { %5225 = vmatpush3.bf16.msra.mxu1 %v5620_v31 }
 0xda5   :  { %5226 = vmatprep.subr.bf16.mxu1 %v5770_v7 }
 0xda8   :  { %5227 = vmatpush3.bf16.msra.mxu1 %v5621_v17 }
 0xda9   :  { %5228 = vmatprep.subr.bf16.mxu1 %v5770_v7 }
 0xdac   :  { %5229 = vmatpush3.bf16.msra.mxu1 %v5622_v20 }
 0xdad   :  { %5230 = vmatprep.subr.bf16.mxu1 %v5770_v7 }
 0xdb0   :  { %5231 = vmatpush3.bf16.msra.mxu1 %v5623_v22 }
 0xdb1   :  { %5232 = vmatprep.subr.bf16.mxu1 %v5770_v7 }
 0xdb4   :  { %5233 = vmatpush3.bf16.msra.mxu1 %v5624_v23 }
 0xdb5   :  { %5238 = vmatprep.subr.mxu1 %v5770_v7 }
 0xe38   :  { %v5057_v39 = vpop.f32.mrf.mxu0 }
 0xe3a   :  { %v5058_v40 = vpop.f32.mrf.mxu0 }
 0xe3b   :  { %v5059_v41 = vadd.f32 %v5058_v40, %v5057_v39 }
 0xe3c   :  { %v5060_v58 = vpop.f32.mrf.mxu0 }
 0xe3e   :  { %v5061_v42 = vpop.f32.mrf.mxu0 }
 0xe3f   :  { %v5062_v50 = vadd.f32 %v5061_v42, %v5060_v58 }
 0xe57   :  { %v5079_v2 = vpop.f32.mrf.mxu1 }
 0xe59   :  { %v5080_v0 = vpop.f32.mrf.mxu1 }
 0xe5a   :  { %v5081_v12 = vadd.f32 %v5080_v0, %v5079_v2 }
 0xe5b   :  { %v5082_v45 = vpop.f32.mrf.mxu1 }
 0xe5c   :  { %v4083_v46 = vadd.f32 %v5081_v12, %v5059_v41 }
 0xe5d   :  { %v5083_v43 = vpop.f32.mrf.mxu1 }
 0xe5e   :  { %v6627_v21 = vadd.f32 %v4083_v46, %v6309_v1  ;;  %v5084_v60 = vadd.f32 %v5083_v43, %v5082_v45  ;;  %v5607_v1 = vld [vmem:[%s6749_s11 + $0x74] ss:$8 sps:$4 sm:$0xff]   ;;  %v4338_v43 = vld [vmem:[%s6743_s5] sm:$0xff] }
 0xe5f   :  { %4178 = vmatprep.subr.bf16.mxu0 %v5607_v1 }
 0xe60   :  { %v4086_v48 = vadd.f32 %v5084_v60, %v5062_v50  ;;  %v4093_v49 = vmul.f32 %v6627_v21, %v6627_v21  ;;  %4179 = vmatpush1.bf16.msra.mxu0 %v5605_v33 }
 0xe62   :  { %v6632_v52 = vadd.f32 %v4086_v48, %v6314_v9  ;;  %v4095_v53 = vsel %vm294_vm6, %v4093_v49, 0.0  ;;  %v5610_v9 = vld [vmem:[%s6749_s11 + $0x64] ss:$8 sps:$4 sm:$0xff]  }
 0xe63   :  { %4096 = vadd.xlane.f32.xlu1 %v4095_v53  ;;  %4180 = vmatprep.subr.bf16.mxu0 %v5610_v9  ;;  %v5627_v53 = vld [vmem:[%s6752_s14 + $0x8] sm:$0xff]  }
 0xe64   :  { %v4094_v47 = vmul.f32 %v6632_v52, %v6632_v52  ;;  %4181 = vmatpush1.bf16.msra.mxu0 %v5608_v8  ;;  %v4927_v8 = vld [vmem:[%s6751_s13] ss:$0 sm:$0xff] }
 0xe65   :  { %4182 = vmatprep.subr.bf16.mxu0 %v5613_v55 }
 0xe66   :  { %v4098_v37 = vsel %vm294_vm6, %v4094_v47, 0.0  ;;  %v5628_v47 = vld [vmem:[%s6752_s14] sm:$0xff]  }
 0xe67   :  { %4099 = vadd.xlane.f32.xlu0 %v4098_v37 }
 0xe68   :  { %4183 = vmatpush1.bf16.msra.mxu0 %v5611_v54 }
 0xe69   :  { %4184 = vmatprep.subr.bf16.mxu0 %v5616_v62 }
 0xe6c   :  { %4185 = vmatpush1.bf16.msra.mxu0 %v5614_v6  ;;  %v4928_v6 = vld [vmem:[%s6753_s15] ss:$0 sm:$0xff] }
 0xe6d   :  { %5245 = vmatprep.subr.bf16.mxu0 %v5770_v7 }
 0xeec   :  { %v4097_v56 = vpop.xlane.xlu1 %4096 }
 0xeed   :  { %v4101_v57 = vmul.f32 0.015625, %v4097_v56 }
 0xeef   :  { %v4103_v16 = vadd.f32 1e-06, %v4101_v57 }
 0xef0   :  { %v4100_v59 = vpop.xlane.xlu0 %4099 }
 0xef1   :  { %5713 = vrsqrt.f32 %v4103_v16  ;;  %v4102_v61 = vmul.f32 0.015625, %v4100_v59 }
 0xef3   :  { %v4104_v63 = vadd.f32 1e-06, %v4102_v61 }
 0xef5   :  { %5715 = vrsqrt.f32 %v4104_v63 }
 0xefe   :  { %v5714_v51 = vpop.eup %5713 }
 0xeff   :  { %v4107_v44 = vmul.f32 %v5714_v51, %v6627_v21 }
 0xf01   :  { %v4115_v15 = vmul.f32 %v4882_v19, %v4107_v44 }
 0xf02   :  { %v5716_v3 = vpop.eup %5715 }
 0xf03   :  { %v4108_v13 = vmul.f32 %v5716_v3, %v6632_v52 }
 0xf05   :  { %v4116_v18 = vmul.f32 %v4882_v19, %v4108_v13 }
 0xf07   :  { %v4117_v10 = vpack.c.bf16 %v4116_v18, %v4115_v15 }
 0xf09   :  { %4899 = vmatmul.mubr.msk.bf16.vlgmr.msra.gmra.mxu0 %vm294_vm6, %v4117_v10 }
 0xf0a   :  { %5253 = vmatprep.mubr.msk.bf16.mxu0 %vm5771_vm7, %v5770_v7 }
 0xfc9   :  { %v4204_v24 = vpop.f32.mrf.mxu0 }
 0xfca   :  { %v4900_v26 = vmul.f32 -1.442695, %v4204_v24 }
 0xfcb   :  { %v4206_v28 = vpop.f32.mrf.mxu0 }
 0xfcc   :  { %5717 = vpow2.f32 %v4900_v26 }
 0xfcd   :  { %v4208_v29 = vpop.f32.mrf.mxu0 }
 0xfce   :  { %v4901_v30 = vmul.f32 -1.442695, %v4208_v29 }
 0xfcf   :  { %v4210_v39 = vpop.f32.mrf.mxu0 }
 0xfd0   :  { %5719 = vpow2.f32 %v4901_v30 }
 0xfd9   :  { %v5718_v32 = vpop.eup %5717 }
 0xfda   :  { %v4219_v34 = vadd.f32 1.0, %v5718_v32 }
 0xfdc   :  { %5721 = vrcp.f32 %v4219_v34 }
 0xfdd   :  { %v5720_v35 = vpop.eup %5719 }
 0xfde   :  { %v4220_v36 = vadd.f32 1.0, %v5720_v35 }
 0xfe0   :  { %5723 = vrcp.f32 %v4220_v36 }
 0xfe9   :  { %v5722_v25 = vpop.eup %5721 }
 0xfea   :  { %v4225_v14 = vmul.f32 %v5722_v25, %v4204_v24 }
 0xfec   :  { %v4227_v40 = vmul.f32 %v4225_v14, %v4206_v28 }
 0xfed   :  { %v5724_v4 = vpop.eup %5723 }
 0xfee   :  { %v4226_v38 = vmul.f32 %v5724_v4, %v4208_v29 }
 0xff0   :  { %v4228_v58 = vmul.f32 %v4226_v38, %v4210_v39 }
 0xff2   :  { %v4229_v2 = vpack.c.bf16 %v4228_v58, %v4227_v40 }
 0xff4   :  { %5235 = vmatmul.mubr.bf16.vlgmr.msra.gmra.mxu1 %v4229_v2 }
 0xff5   :  { %5242 = vmatprep.mubr.msk.f32.mxu1 %vm5771_vm7, %v5770_v7 }
0x10b4   :  { %v4329_v0 = vpop.f32.mrf.mxu1 }
0x10b5   :  { %v4336_v46 = vadd.f32 %v4329_v0, %v6627_v21  ;;  %v5625_v21 = vld [vmem:[%s6752_s14 + $0x18] sm:$0xff]  }
0x10b6   :  { %v5236_v41 = vpop.f32.mrf.mxu1  ;;  %5246 = vmatpush3.bf16.msra.mxu0 %v5625_v21 }
0x10b7   :  { %5247 = vmatprep.subr.bf16.mxu0 %v5770_v7 }
0x10b8   :  { %v4332_v12 = vpop.f32.mrf.mxu1 }
0x10b9   :  { %v4337_v42 = vadd.f32 %v4332_v12, %v6632_v52  ;;  %v5626_v52 = vld [vmem:[%s6752_s14 + $0x10] sm:$0xff]  }
0x10ba   :  { %v5237_v45 = vpop.f32.mrf.mxu1  ;;  %5248 = vmatpush3.bf16.msra.mxu0 %v5626_v52 }
0x10bb   :  { %5239 = vmatpush3.msra.mxu1 %v4337_v42  ;;  %5249 = vmatprep.subr.bf16.mxu0 %v5770_v7 }
0x10bc   :  { %5240 = vmatprep.subr.mxu1 %v5770_v7 }
0x10bd   :  { %5241 = vmatpush3.msra.mxu1 %v4336_v46 }
0x10be   :  { %5243 = vmatmul.mubr.msk.f32.vlgmr.msra.gmra.mxu1 %vm1333_vm8, %v4338_v43  ;;  %5250 = vmatpush3.bf16.msra.mxu0 %v5627_v53 }
0x10bf   :  { %5251 = vmatprep.subr.bf16.mxu0 %v5770_v7 }
0x10c2   :  { %5252 = vmatpush3.bf16.msra.mxu0 %v5628_v47 }
0x117e   :  { %v4408_v50 = vpop.f32.mrf.mxu1 }
0x117f   :  { %v4413_v60 = vmul.f32 %v4408_v50, %v4408_v50 }
0x1180   :  { %v5244_v48 = vpop.f32.mrf.mxu1 }
0x1181   :  { %v4414_v49 = vsel %vm294_vm6, %v4413_v60, 0.0 }
0x1182   :  { %4415 = vadd.xlane.f32.xlu1 %v4414_v49 }
0x120b   :  { %v4416_v37 = vpop.xlane.xlu1 %4415 }
0x120c   :  { %v4417_v1 = vmul.f32 0.015625, %v4416_v37 }
0x120e   :  { %v4418_v33 = vadd.f32 1e-06, %v4417_v1 }
0x1210   :  { %5725 = vrsqrt.f32 %v4418_v33 }
0x121d   :  { %v5726_v9 = vpop.eup %5725 }
0x121e   :  { %v4420_v55 = vmul.f32 %v5726_v9, %v4408_v50 }
0x1220   :  { %v4427_v54 = vmul.f32 %v4927_v8, %v4420_v55 }
0x1222   :  { %v4428_v62 = vpack.c.bf16 %v4427_v54, %v4427_v54 }
0x1224   :  { %5254 = vmatmul.mubr.msk.bf16.vlgmr.msra.gmra.mxu0 %vm294_vm6, %v4428_v62 }
0x12e4   :  { %v4505_v7 = vpop.f32.mrf.mxu0 }
0x12e5   :  { %v4506_v56 = vadd.f32 %v4928_v6, %v4505_v7 }
0x12e6   :  { %v5255_v57 = vpop.f32.mrf.mxu0 }
0x12e7   :  { %4511 = vst [vmem:[%s6754_s16] sm:$0xff] %v4506_v56 }
0x12e8   :  { %v4508_v16 = vpop.f32.mrf.mxu0 }
0x12ea   :  { %v5256_v59 = vpop.f32.mrf.mxu0 }
0x12eb   :  { %4516 = vsyncpa [#allocation3], 1 }

</bundles_post_ra>
